<compile_context>
chip_gen: v6e
topology: v6e:2x2x1
jax: 0.10.0
libtpu: 0.0.40
codegen_flags: <defaults>
</compile_context>

<pallas_src>
import jax
import jax.numpy as jnp
import numpy as np
from jax.experimental import pallas as pl
from jax.experimental.pallas import tpu as pltpu

KSIZE = 7                 # spatial-attention conv kernel size
PAD = KSIZE // 2


def spatial_layout(W):
    """Lane layout of the fused [avg | max] conv canvas for map width W."""
    maxoff = W + 2 * PAD                                  # max-map lane offset
    slab_w = maxoff + W                                   # per-tap FMA / acc width
    canvas_w = -(-(maxoff + W + 2 * PAD) // 128) * 128    # round up to full vregs
    return maxoff, slab_w, canvas_w


def cbam_kernel(x_ref, w1_ref, w2_ref, wtab_ref, o_ref, canvas):
    H, W, C = x_ref.shape
    HW = H * W
    maxoff, slab_w, _ = spatial_layout(W)

    x3 = x_ref[...].astype(jnp.float32)                            # (H, W, C)
    # Flat view for the MXU pool; layout-preserving when W % 8 == 0.
    x2 = x3.reshape(HW, C)

    # ---- Channel attention: global avg/max pool over (H, W) ---------------
    # sum on the MXU (otherwise idle here), max on the VPU/XLU.
    ones_row = jnp.ones((1, HW), jnp.float32)
    sum_c = jnp.dot(ones_row, x2, preferred_element_type=jnp.float32)   # (1, C)
    avg_c = sum_c * (1.0 / HW)
    max_c = jnp.max(x2, axis=0, keepdims=True)                           # (1, C)

    # Two per-branch 1x1-conv MLPs batched into two matmuls
    # (block-diagonal W1, stacked W2; built in the wrapper).
    pooled = jnp.concatenate([avg_c, max_c], axis=-1)                    # (1, 2C)
    hmid = jnp.maximum(
        jnp.dot(pooled, w1_ref[...], preferred_element_type=jnp.float32), 0.0)
    scale_c = jax.nn.sigmoid(
        jnp.dot(hmid, w2_ref[...], preferred_element_type=jnp.float32))  # (1, C)
    scale_c3 = scale_c.reshape(1, 1, C)

    # ---- Spatial attention pooled maps (channel scale fused in) -----------
    # Both maps are produced directly in (H rows, W lanes) layout so the only
    # lane<->sublane relayout in the kernel is the final scale_s broadcast.
    x_sc3 = x3 * scale_c3                                                 # (H, W, C)
    avg_s = jnp.mean(x_sc3, axis=-1)                                      # (H, W)
    max_s = jnp.max(x_sc3, axis=-1)                                       # (H, W)

    # ---- 7x7 "same" conv over [avg_s | max_s] ------------------------------
    # One fused canvas holds both zero-padded maps side by side: avg at lanes
    # [0, W+6), max at lanes [maxoff, maxoff+W+6).  The 7 lane (kw) shifts are
    # taken once and reused across the 7 sublane (kh) offsets; each of the 49
    # taps is one FMA against a precomputed per-lane weight row that covers
    # both maps at once.  Per-step zeroing is cheap and required under
    # "parallel" batch semantics.
    canvas[...] = jnp.zeros_like(canvas)
    canvas[PAD:PAD + H, PAD:PAD + W] = avg_s
    canvas[PAD:PAD + H, maxoff + PAD:maxoff + PAD + W] = max_s

    acc = jnp.zeros((H, slab_w), jnp.float32)
    for kw in range(KSIZE):
        slab = canvas[:, kw:kw + slab_w]                                  # (H+6, slab_w)
        for kh in range(KSIZE):
            t = kh * KSIZE + kw
            acc = acc + slab[kh:kh + H, :] * wtab_ref[t:t + 1, :]
    conv = acc[:, 0:W] + acc[:, maxoff:maxoff + W]                        # (H, W)
    scale_s = jax.nn.sigmoid(conv)

    # ---- Apply both attention scales in one fused, lane-dense output pass --
    # scale_s[:, :, None] is the single H*W-scalar lane->sublane relayout.
    o_ref[...] = (x_sc3 * scale_s[:, :, None]).astype(o_ref.dtype)


def pack_channel_mlp(w1a, w2a, w1m, w2m):
    """Batch the two branch MLPs: block-diagonal layer-1, stacked layer-2."""
    C, Cr = w1a.shape
    w1_blk = np.zeros((2 * C, 2 * Cr), np.float32)
    w1_blk[:C, :Cr] = np.asarray(w1a)
    w1_blk[C:, Cr:] = np.asarray(w1m)
    w2_blk = np.concatenate([np.asarray(w2a), np.asarray(w2m)], axis=0)
    return jnp.asarray(w1_blk), jnp.asarray(w2_blk)


def pack_spatial_weights(wsa, W):
    """Per-tap lane weight rows: wsa[0] over avg lanes [0, W), wsa[1] over
    max lanes [maxoff, maxoff+W)."""
    wsa = np.asarray(wsa)
    maxoff, slab_w, _ = spatial_layout(W)
    wtab = np.zeros((KSIZE * KSIZE, slab_w), np.float32)
    for kh in range(KSIZE):
        for kw in range(KSIZE):
            wtab[kh * KSIZE + kw, 0:W] = wsa[0, kh, kw]
            wtab[kh * KSIZE + kw, maxoff:maxoff + W] = wsa[1, kh, kw]
    return jnp.asarray(wtab)


def cbam(x, w1_blk, w2_blk, wtab):
    """x: (N, H, W, C) NHWC, any float dtype (bf16 recommended for HBM I/O).
    Output dtype == x.dtype; all in-kernel math is f32."""
    N, H, W, C = x.shape
    maxoff, slab_w, canvas_w = spatial_layout(W)
    assert wtab.shape == (KSIZE * KSIZE, slab_w), "wtab built for a different W"

    # VMEM budget: Pallas double-buffers the (H, W, C) input and output blocks;
    # add the canvas plus headroom for the f32 temporaries (x3, x_sc3, output).
    blk = H * W * C
    io_bytes = 2 * 2 * blk * jnp.dtype(x.dtype).itemsize
    vmem_bytes = int(io_bytes + (H + 2 * PAD) * canvas_w * 4 + 6 * blk * 4 + (2 << 20))
    # TODO(synk): for feature maps that overflow this budget (e.g. 112x112x256
    # f32) split into a two-pass, H-tiled grid (pass 1: pooled stats + scale_c
    # + scale_s; pass 2: elementwise apply) -- that also gives v7x more grid
    # steps per TensorCore to pipeline when N is small.
    assert vmem_bytes <= (100 << 20), "block too large for single-pass VMEM; H-tile"

    return pl.pallas_call(
        cbam_kernel,
        out_shape=jax.ShapeDtypeStruct((N, H, W, C), x.dtype),
        grid=(N,),
        in_specs=[
            pl.BlockSpec((None, H, W, C), lambda b: (b, 0, 0, 0)),
            pl.BlockSpec(w1_blk.shape, lambda b: (0, 0)),
            pl.BlockSpec(w2_blk.shape, lambda b: (0, 0)),
            pl.BlockSpec(wtab.shape, lambda b: (0, 0)),
        ],
        out_specs=pl.BlockSpec((None, H, W, C), lambda b: (b, 0, 0, 0)),
        scratch_shapes=[pltpu.VMEM((H + 2 * PAD, canvas_w), jnp.float32)],
        compiler_params=pltpu.CompilerParams(
            dimension_semantics=("parallel",),
            vmem_limit_bytes=max(32 << 20, vmem_bytes)),
    )(x, w1_blk, w2_blk, wtab)


def cbam_ref(x, w1a, w2a, w1m, w2m, wsa):
    """Plain-JAX reference (mirrors the PyTorch forward, NHWC)."""
    N, H, W, C = x.shape
    x2 = x.reshape(N, H * W, C)
    avg_c = jnp.mean(x2, axis=1)
    max_c = jnp.max(x2, axis=1)
    out_a = jnp.maximum(avg_c @ w1a, 0.0) @ w2a
    out_m = jnp.maximum(max_c @ w1m, 0.0) @ w2m
    scale_c = jax.nn.sigmoid(out_a + out_m)
    x_ca = x * scale_c[:, None, None, :]
    avg_s = jnp.mean(x_ca, axis=-1)
    max_s = jnp.max(x_ca, axis=-1)
    maps = jnp.stack([avg_s, max_s], axis=-1)
    padded = jnp.pad(maps, ((0, 0), (PAD, PAD), (PAD, PAD), (0, 0)))
    acc = jnp.zeros((N, H, W), jnp.float32)
    for kh in range(KSIZE):
        for kw in range(KSIZE):
            acc = acc + padded[:, kh:kh + H, kw:kw + W, 0] * wsa[0, kh, kw]
            acc = acc + padded[:, kh:kh + H, kw:kw + W, 1] * wsa[1, kh, kw]
    scale_s = jax.nn.sigmoid(acc)
    return x_ca * scale_s[..., None]


if __name__ == "__main__":
    # Small but lane-dense demo: C = 128 fills the 128-lane vreg axis.
    N, C, H, W = 4, 128, 16, 16
    ratio = 8
    Cr = C // ratio

    key = jax.random.PRNGKey(0)
    k = jax.random.split(key, 6)
    x = jax.random.normal(k[0], (N, H, W, C), jnp.float32)

    s1 = 1.0 / np.sqrt(C)
    s2 = 1.0 / np.sqrt(Cr)
    s3 = 1.0 / np.sqrt(2 * KSIZE * KSIZE)
    # channel-MLP 1x1 convs stored directly in matmul layout: (C, Cr), (Cr, C)
    w1a = jax.random.uniform(k[1], (C, Cr), jnp.float32, -s1, s1)
    w2a = jax.random.uniform(k[2], (Cr, C), jnp.float32, -s2, s2)
    w1m = jax.random.uniform(k[3], (C, Cr), jnp.float32, -s1, s1)
    w2m = jax.random.uniform(k[4], (Cr, C), jnp.float32, -s2, s2)
    # spatial conv weight (in_ch=2, kh=7, kw=7)
    wsa = jax.random.uniform(k[5], (2, KSIZE, KSIZE), jnp.float32, -s3, s3)

    w1_blk, w2_blk = pack_channel_mlp(w1a, w2a, w1m, w2m)
    wtab = pack_spatial_weights(wsa, W)

    ref = cbam_ref(x, w1a, w2a, w1m, w2m, wsa)

    # f32 HBM I/O: close-to-exact check against the reference.
    out_f32 = jax.block_until_ready(cbam(x, w1_blk, w2_blk, wtab))
    np.testing.assert_allclose(np.asarray(out_f32), np.asarray(ref),
                               atol=1e-3, rtol=1e-3)

    # bf16 HBM I/O (recommended deployment dtype): f32 math in-kernel, so the
    # only extra error is bf16 rounding of x and of the stored output.
    x_bf = x.astype(jnp.bfloat16)
    out_bf = jax.block_until_ready(cbam(x_bf, w1_blk, w2_blk, wtab))
    ref_bf = cbam_ref(x_bf.astype(jnp.float32), w1a, w2a, w1m, w2m, wsa)
    np.testing.assert_allclose(np.asarray(out_bf.astype(jnp.float32)),
                               np.asarray(ref_bf), atol=5e-2, rtol=5e-2)

    print("KERNEL_OK")
</pallas_src>

<mosaic_0001>
module attributes {stable_mosaic.version = 11 : i64} {
  func.func @cbam_kernel(%arg0: i32, %arg1: memref<1x16x16x128xf32, #tpu.memory_space<vmem>>, %arg2: memref<256x32xf32, #tpu.memory_space<vmem>>, %arg3: memref<32x128xf32, #tpu.memory_space<vmem>>, %arg4: memref<49x38xf32, #tpu.memory_space<vmem>>, %arg5: memref<1x16x16x128xf32, #tpu.memory_space<vmem>>, %arg6: memref<22x128xf32, #tpu.memory_space<vmem>>) attributes {dimension_semantics = [#tpu.dimension_semantics<parallel>], iteration_bounds = array<i64: 4>, scalar_prefetch = 0 : i64, scratch_operands = 1 : i64, tpu.core_type = #tpu.core_type<tc>, window_params = [{transform_indices = @transform_0, window_bounds = array<i64: 1, 16, 16, 128>}, {pipeline_mode = #tpu.pipeline_mode<synchronous>, transform_indices = @transform_1, window_bounds = array<i64: 256, 32>}, {pipeline_mode = #tpu.pipeline_mode<synchronous>, transform_indices = @transform_2, window_bounds = array<i64: 32, 128>}, {pipeline_mode = #tpu.pipeline_mode<synchronous>, transform_indices = @transform_3, window_bounds = array<i64: 49, 38>}, {transform_indices = @transform_4, window_bounds = array<i64: 1, 16, 16, 128>}]} {
    %c0 = arith.constant 0 : index
    %c0_0 = arith.constant 0 : index
    %c0_1 = arith.constant 0 : index
    %c0_2 = arith.constant 0 : index
    %0 = vector.load %arg1[%c0, %c0_0, %c0_1, %c0_2] : memref<1x16x16x128xf32, #tpu.memory_space<vmem>>, vector<1x16x16x128xf32>
    %1 = vector.shape_cast %0 : vector<1x16x16x128xf32> to vector<16x16x128xf32>
    %2 = vector.shape_cast %1 : vector<16x16x128xf32> to vector<256x128xf32>
    %cst = arith.constant 1.000000e+00 : f32
    %3 = vector.broadcast %cst : f32 to vector<1x256xf32>
    %cst_3 = arith.constant dense<0.000000e+00> : vector<1x128xf32>
    %4 = tpu.matmul %3, %2, %cst_3 {dimension_numbers = #tpu.dot_dimension_numbers<[1], [0], [0], [1], [0, 0, 1, 1], [], []>} : vector<1x256xf32>, vector<256x128xf32>, vector<1x128xf32> -> vector<1x128xf32>
    %cst_4 = arith.constant 3.906250e-03 : f32
    %5 = vector.broadcast %cst_4 : f32 to vector<1x128xf32>
    %6 = arith.mulf %4, %5 : vector<1x128xf32>
    %cst_5 = arith.constant dense<0xFF800000> : vector<128xf32>
    %7 = vector.multi_reduction <maximumf>, %2, %cst_5 [0] : vector<256x128xf32> to vector<128xf32>
    %8 = vector.shape_cast %7 : vector<128xf32> to vector<1x128xf32>
    %9 = tpu.concatenate %6, %8 in 1 : vector<1x128xf32>, vector<1x128xf32> -> vector<1x256xf32>
    %c0_6 = arith.constant 0 : index
    %c0_7 = arith.constant 0 : index
    %10 = vector.load %arg2[%c0_6, %c0_7] : memref<256x32xf32, #tpu.memory_space<vmem>>, vector<256x32xf32>
    %cst_8 = arith.constant dense<0.000000e+00> : vector<1x32xf32>
    %11 = tpu.matmul %9, %10, %cst_8 {dimension_numbers = #tpu.dot_dimension_numbers<[1], [0], [0], [1], [0, 0, 1, 1], [], []>} : vector<1x256xf32>, vector<256x32xf32>, vector<1x32xf32> -> vector<1x32xf32>
    %cst_9 = arith.constant 0.000000e+00 : f32
    %12 = vector.broadcast %cst_9 : f32 to vector<1x32xf32>
    %13 = arith.maximumf %11, %12 : vector<1x32xf32>
    %c0_10 = arith.constant 0 : index
    %c0_11 = arith.constant 0 : index
    %14 = vector.load %arg3[%c0_10, %c0_11] : memref<32x128xf32, #tpu.memory_space<vmem>>, vector<32x128xf32>
    %cst_12 = arith.constant dense<0.000000e+00> : vector<1x128xf32>
    %15 = tpu.matmul %13, %14, %cst_12 {dimension_numbers = #tpu.dot_dimension_numbers<[1], [0], [0], [1], [0, 0, 1, 1], [], []>} : vector<1x32xf32>, vector<32x128xf32>, vector<1x128xf32> -> vector<1x128xf32>
    %16 = arith.negf %15 : vector<1x128xf32>
    %17 = math.exp %16 : vector<1x128xf32>
    %cst_13 = arith.constant 1.000000e+00 : f32
    %18 = vector.broadcast %cst_13 : f32 to vector<1x128xf32>
    %19 = arith.addf %18, %17 : vector<1x128xf32>
    %20 = arith.divf %18, %19 : vector<1x128xf32>
    %21 = vector.shape_cast %20 : vector<1x128xf32> to vector<1x1x128xf32>
    %22 = vector.broadcast %21 : vector<1x1x128xf32> to vector<16x16x128xf32>
    %23 = arith.mulf %1, %22 : vector<16x16x128xf32>
    %cst_14 = arith.constant dense<0.000000e+00> : vector<16x16xf32>
    %24 = vector.multi_reduction <add>, %23, %cst_14 [2] : vector<16x16x128xf32> to vector<16x16xf32>
    %cst_15 = arith.constant 1.280000e+02 : f32
    %25 = vector.broadcast %cst_15 : f32 to vector<16x16xf32>
    %26 = arith.divf %24, %25 : vector<16x16xf32>
    %cst_16 = arith.constant dense<0xFF800000> : vector<16x16xf32>
    %27 = vector.multi_reduction <maximumf>, %23, %cst_16 [2] : vector<16x16x128xf32> to vector<16x16xf32>
    %cst_17 = arith.constant 0.000000e+00 : f32
    %28 = vector.broadcast %cst_17 : f32 to vector<22x128xf32>
    %c0_18 = arith.constant 0 : index
    %c0_19 = arith.constant 0 : index
    %29 = vector.load %arg6[%c0_18, %c0_19] : memref<22x128xf32, #tpu.memory_space<vmem>>, vector<22x128xf32>
    tpu.vector_store %arg6[%c0_18, %c0_19], %28 {strides = array<i32>} : memref<22x128xf32, #tpu.memory_space<vmem>>, vector<22x128xf32>,
    %c3 = arith.constant 3 : index
    %c3_20 = arith.constant 3 : index
    %30 = vector.load %arg6[%c3, %c3_20] : memref<22x128xf32, #tpu.memory_space<vmem>>, vector<16x16xf32>
    tpu.vector_store %arg6[%c3, %c3_20], %26 {strides = array<i32>} : memref<22x128xf32, #tpu.memory_space<vmem>>, vector<16x16xf32>,
    %c3_21 = arith.constant 3 : index
    %c25 = arith.constant 25 : index
    %31 = vector.load %arg6[%c3_21, %c25] : memref<22x128xf32, #tpu.memory_space<vmem>>, vector<16x16xf32>
    tpu.vector_store %arg6[%c3_21, %c25], %27 {strides = array<i32>} : memref<22x128xf32, #tpu.memory_space<vmem>>, vector<16x16xf32>,
    %cst_22 = arith.constant 0.000000e+00 : f32
    %32 = vector.broadcast %cst_22 : f32 to vector<16x38xf32>
    %c0_23 = arith.constant 0 : index
    %c0_24 = arith.constant 0 : index
    %33 = vector.load %arg6[%c0_23, %c0_24] : memref<22x128xf32, #tpu.memory_space<vmem>>, vector<22x38xf32>
    %34 = vector.extract_strided_slice %33 {offsets = [0, 0], sizes = [16, 38], strides = [1, 1]} : vector<22x38xf32> to vector<16x38xf32>
    %c0_25 = arith.constant 0 : index
    %c0_26 = arith.constant 0 : index
    %35 = vector.load %arg4[%c0_25, %c0_26] : memref<49x38xf32, #tpu.memory_space<vmem>>, vector<1x38xf32>
    %36 = vector.broadcast %35 : vector<1x38xf32> to vector<16x38xf32>
    %37 = arith.mulf %34, %36 : vector<16x38xf32>
    %38 = arith.addf %32, %37 : vector<16x38xf32>
    %39 = vector.extract_strided_slice %33 {offsets = [1, 0], sizes = [16, 38], strides = [1, 1]} : vector<22x38xf32> to vector<16x38xf32>
    %c7 = arith.constant 7 : index
    %c0_27 = arith.constant 0 : index
    %40 = vector.load %arg4[%c7, %c0_27] : memref<49x38xf32, #tpu.memory_space<vmem>>, vector<1x38xf32>
    %41 = vector.broadcast %40 : vector<1x38xf32> to vector<16x38xf32>
    %42 = arith.mulf %39, %41 : vector<16x38xf32>
    %43 = arith.addf %38, %42 : vector<16x38xf32>
    %44 = vector.extract_strided_slice %33 {offsets = [2, 0], sizes = [16, 38], strides = [1, 1]} : vector<22x38xf32> to vector<16x38xf32>
    %c14 = arith.constant 14 : index
    %c0_28 = arith.constant 0 : index
    %45 = vector.load %arg4[%c14, %c0_28] : memref<49x38xf32, #tpu.memory_space<vmem>>, vector<1x38xf32>
    %46 = vector.broadcast %45 : vector<1x38xf32> to vector<16x38xf32>
    %47 = arith.mulf %44, %46 : vector<16x38xf32>
    %48 = arith.addf %43, %47 : vector<16x38xf32>
    %49 = vector.extract_strided_slice %33 {offsets = [3, 0], sizes = [16, 38], strides = [1, 1]} : vector<22x38xf32> to vector<16x38xf32>
    %c21 = arith.constant 21 : index
    %c0_29 = arith.constant 0 : index
    %50 = vector.load %arg4[%c21, %c0_29] : memref<49x38xf32, #tpu.memory_space<vmem>>, vector<1x38xf32>
    %51 = vector.broadcast %50 : vector<1x38xf32> to vector<16x38xf32>
    %52 = arith.mulf %49, %51 : vector<16x38xf32>
    %53 = arith.addf %48, %52 : vector<16x38xf32>
    %54 = vector.extract_strided_slice %33 {offsets = [4, 0], sizes = [16, 38], strides = [1, 1]} : vector<22x38xf32> to vector<16x38xf32>
    %c28 = arith.constant 28 : index
    %c0_30 = arith.constant 0 : index
    %55 = vector.load %arg4[%c28, %c0_30] : memref<49x38xf32, #tpu.memory_space<vmem>>, vector<1x38xf32>
    %56 = vector.broadcast %55 : vector<1x38xf32> to vector<16x38xf32>
    %57 = arith.mulf %54, %56 : vector<16x38xf32>
    %58 = arith.addf %53, %57 : vector<16x38xf32>
    %59 = vector.extract_strided_slice %33 {offsets = [5, 0], sizes = [16, 38], strides = [1, 1]} : vector<22x38xf32> to vector<16x38xf32>
    %c35 = arith.constant 35 : index
    %c0_31 = arith.constant 0 : index
    %60 = vector.load %arg4[%c35, %c0_31] : memref<49x38xf32, #tpu.memory_space<vmem>>, vector<1x38xf32>
    %61 = vector.broadcast %60 : vector<1x38xf32> to vector<16x38xf32>
    %62 = arith.mulf %59, %61 : vector<16x38xf32>
    %63 = arith.addf %58, %62 : vector<16x38xf32>
    %64 = vector.extract_strided_slice %33 {offsets = [6, 0], sizes = [16, 38], strides = [1, 1]} : vector<22x38xf32> to vector<16x38xf32>
    %c42 = arith.constant 42 : index
    %c0_32 = arith.constant 0 : index
    %65 = vector.load %arg4[%c42, %c0_32] : memref<49x38xf32, #tpu.memory_space<vmem>>, vector<1x38xf32>
    %66 = vector.broadcast %65 : vector<1x38xf32> to vector<16x38xf32>
    %67 = arith.mulf %64, %66 : vector<16x38xf32>
    %68 = arith.addf %63, %67 : vector<16x38xf32>
    %c0_33 = arith.constant 0 : index
    %c1 = arith.constant 1 : index
    %69 = vector.load %arg6[%c0_33, %c1] : memref<22x128xf32, #tpu.memory_space<vmem>>, vector<22x38xf32>
    %70 = vector.extract_strided_slice %69 {offsets = [0, 0], sizes = [16, 38], strides = [1, 1]} : vector<22x38xf32> to vector<16x38xf32>
    %c1_34 = arith.constant 1 : index
    %c0_35 = arith.constant 0 : index
    %71 = vector.load %arg4[%c1_34, %c0_35] : memref<49x38xf32, #tpu.memory_space<vmem>>, vector<1x38xf32>
    %72 = vector.broadcast %71 : vector<1x38xf32> to vector<16x38xf32>
    %73 = arith.mulf %70, %72 : vector<16x38xf32>
    %74 = arith.addf %68, %73 : vector<16x38xf32>
    %75 = vector.extract_strided_slice %69 {offsets = [1, 0], sizes = [16, 38], strides = [1, 1]} : vector<22x38xf32> to vector<16x38xf32>
    %c8 = arith.constant 8 : index
    %c0_36 = arith.constant 0 : index
    %76 = vector.load %arg4[%c8, %c0_36] : memref<49x38xf32, #tpu.memory_space<vmem>>, vector<1x38xf32>
    %77 = vector.broadcast %76 : vector<1x38xf32> to vector<16x38xf32>
    %78 = arith.mulf %75, %77 : vector<16x38xf32>
    %79 = arith.addf %74, %78 : vector<16x38xf32>
    %80 = vector.extract_strided_slice %69 {offsets = [2, 0], sizes = [16, 38], strides = [1, 1]} : vector<22x38xf32> to vector<16x38xf32>
    %c15 = arith.constant 15 : index
    %c0_37 = arith.constant 0 : index
    %81 = vector.load %arg4[%c15, %c0_37] : memref<49x38xf32, #tpu.memory_space<vmem>>, vector<1x38xf32>
    %82 = vector.broadcast %81 : vector<1x38xf32> to vector<16x38xf32>
    %83 = arith.mulf %80, %82 : vector<16x38xf32>
    %84 = arith.addf %79, %83 : vector<16x38xf32>
    %85 = vector.extract_strided_slice %69 {offsets = [3, 0], sizes = [16, 38], strides = [1, 1]} : vector<22x38xf32> to vector<16x38xf32>
    %c22 = arith.constant 22 : index
    %c0_38 = arith.constant 0 : index
    %86 = vector.load %arg4[%c22, %c0_38] : memref<49x38xf32, #tpu.memory_space<vmem>>, vector<1x38xf32>
    %87 = vector.broadcast %86 : vector<1x38xf32> to vector<16x38xf32>
    %88 = arith.mulf %85, %87 : vector<16x38xf32>
    %89 = arith.addf %84, %88 : vector<16x38xf32>
    %90 = vector.extract_strided_slice %69 {offsets = [4, 0], sizes = [16, 38], strides = [1, 1]} : vector<22x38xf32> to vector<16x38xf32>
    %c29 = arith.constant 29 : index
    %c0_39 = arith.constant 0 : index
    %91 = vector.load %arg4[%c29, %c0_39] : memref<49x38xf32, #tpu.memory_space<vmem>>, vector<1x38xf32>
    %92 = vector.broadcast %91 : vector<1x38xf32> to vector<16x38xf32>
    %93 = arith.mulf %90, %92 : vector<16x38xf32>
    %94 = arith.addf %89, %93 : vector<16x38xf32>
    %95 = vector.extract_strided_slice %69 {offsets = [5, 0], sizes = [16, 38], strides = [1, 1]} : vector<22x38xf32> to vector<16x38xf32>
    %c36 = arith.constant 36 : index
    %c0_40 = arith.constant 0 : index
    %96 = vector.load %arg4[%c36, %c0_40] : memref<49x38xf32, #tpu.memory_space<vmem>>, vector<1x38xf32>
    %97 = vector.broadcast %96 : vector<1x38xf32> to vector<16x38xf32>
    %98 = arith.mulf %95, %97 : vector<16x38xf32>
    %99 = arith.addf %94, %98 : vector<16x38xf32>
    %100 = vector.extract_strided_slice %69 {offsets = [6, 0], sizes = [16, 38], strides = [1, 1]} : vector<22x38xf32> to vector<16x38xf32>
    %c43 = arith.constant 43 : index
    %c0_41 = arith.constant 0 : index
    %101 = vector.load %arg4[%c43, %c0_41] : memref<49x38xf32, #tpu.memory_space<vmem>>, vector<1x38xf32>
    %102 = vector.broadcast %101 : vector<1x38xf32> to vector<16x38xf32>
    %103 = arith.mulf %100, %102 : vector<16x38xf32>
    %104 = arith.addf %99, %103 : vector<16x38xf32>
    %c0_42 = arith.constant 0 : index
    %c2 = arith.constant 2 : index
    %105 = vector.load %arg6[%c0_42, %c2] : memref<22x128xf32, #tpu.memory_space<vmem>>, vector<22x38xf32>
    %106 = vector.extract_strided_slice %105 {offsets = [0, 0], sizes = [16, 38], strides = [1, 1]} : vector<22x38xf32> to vector<16x38xf32>
    %c2_43 = arith.constant 2 : index
    %c0_44 = arith.constant 0 : index
    %107 = vector.load %arg4[%c2_43, %c0_44] : memref<49x38xf32, #tpu.memory_space<vmem>>, vector<1x38xf32>
    %108 = vector.broadcast %107 : vector<1x38xf32> to vector<16x38xf32>
    %109 = arith.mulf %106, %108 : vector<16x38xf32>
    %110 = arith.addf %104, %109 : vector<16x38xf32>
    %111 = vector.extract_strided_slice %105 {offsets = [1, 0], sizes = [16, 38], strides = [1, 1]} : vector<22x38xf32> to vector<16x38xf32>
    %c9 = arith.constant 9 : index
    %c0_45 = arith.constant 0 : index
    %112 = vector.load %arg4[%c9, %c0_45] : memref<49x38xf32, #tpu.memory_space<vmem>>, vector<1x38xf32>
    %113 = vector.broadcast %112 : vector<1x38xf32> to vector<16x38xf32>
    %114 = arith.mulf %111, %113 : vector<16x38xf32>
    %115 = arith.addf %110, %114 : vector<16x38xf32>
    %116 = vector.extract_strided_slice %105 {offsets = [2, 0], sizes = [16, 38], strides = [1, 1]} : vector<22x38xf32> to vector<16x38xf32>
    %c16 = arith.constant 16 : index
    %c0_46 = arith.constant 0 : index
    %117 = vector.load %arg4[%c16, %c0_46] : memref<49x38xf32, #tpu.memory_space<vmem>>, vector<1x38xf32>
    %118 = vector.broadcast %117 : vector<1x38xf32> to vector<16x38xf32>
    %119 = arith.mulf %116, %118 : vector<16x38xf32>
    %120 = arith.addf %115, %119 : vector<16x38xf32>
    %121 = vector.extract_strided_slice %105 {offsets = [3, 0], sizes = [16, 38], strides = [1, 1]} : vector<22x38xf32> to vector<16x38xf32>
    %c23 = arith.constant 23 : index
    %c0_47 = arith.constant 0 : index
    %122 = vector.load %arg4[%c23, %c0_47] : memref<49x38xf32, #tpu.memory_space<vmem>>, vector<1x38xf32>
    %123 = vector.broadcast %122 : vector<1x38xf32> to vector<16x38xf32>
    %124 = arith.mulf %121, %123 : vector<16x38xf32>
    %125 = arith.addf %120, %124 : vector<16x38xf32>
    %126 = vector.extract_strided_slice %105 {offsets = [4, 0], sizes = [16, 38], strides = [1, 1]} : vector<22x38xf32> to vector<16x38xf32>
    %c30 = arith.constant 30 : index
    %c0_48 = arith.constant 0 : index
    %127 = vector.load %arg4[%c30, %c0_48] : memref<49x38xf32, #tpu.memory_space<vmem>>, vector<1x38xf32>
    %128 = vector.broadcast %127 : vector<1x38xf32> to vector<16x38xf32>
    %129 = arith.mulf %126, %128 : vector<16x38xf32>
    %130 = arith.addf %125, %129 : vector<16x38xf32>
    %131 = vector.extract_strided_slice %105 {offsets = [5, 0], sizes = [16, 38], strides = [1, 1]} : vector<22x38xf32> to vector<16x38xf32>
    %c37 = arith.constant 37 : index
    %c0_49 = arith.constant 0 : index
    %132 = vector.load %arg4[%c37, %c0_49] : memref<49x38xf32, #tpu.memory_space<vmem>>, vector<1x38xf32>
    %133 = vector.broadcast %132 : vector<1x38xf32> to vector<16x38xf32>
    %134 = arith.mulf %131, %133 : vector<16x38xf32>
    %135 = arith.addf %130, %134 : vector<16x38xf32>
    %136 = vector.extract_strided_slice %105 {offsets = [6, 0], sizes = [16, 38], strides = [1, 1]} : vector<22x38xf32> to vector<16x38xf32>
    %c44 = arith.constant 44 : index
    %c0_50 = arith.constant 0 : index
    %137 = vector.load %arg4[%c44, %c0_50] : memref<49x38xf32, #tpu.memory_space<vmem>>, vector<1x38xf32>
    %138 = vector.broadcast %137 : vector<1x38xf32> to vector<16x38xf32>
    %139 = arith.mulf %136, %138 : vector<16x38xf32>
    %140 = arith.addf %135, %139 : vector<16x38xf32>
    %c0_51 = arith.constant 0 : index
    %c3_52 = arith.constant 3 : index
    %141 = vector.load %arg6[%c0_51, %c3_52] : memref<22x128xf32, #tpu.memory_space<vmem>>, vector<22x38xf32>
    %142 = vector.extract_strided_slice %141 {offsets = [0, 0], sizes = [16, 38], strides = [1, 1]} : vector<22x38xf32> to vector<16x38xf32>
    %c3_53 = arith.constant 3 : index
    %c0_54 = arith.constant 0 : index
    %143 = vector.load %arg4[%c3_53, %c0_54] : memref<49x38xf32, #tpu.memory_space<vmem>>, vector<1x38xf32>
    %144 = vector.broadcast %143 : vector<1x38xf32> to vector<16x38xf32>
    %145 = arith.mulf %142, %144 : vector<16x38xf32>
    %146 = arith.addf %140, %145 : vector<16x38xf32>
    %147 = vector.extract_strided_slice %141 {offsets = [1, 0], sizes = [16, 38], strides = [1, 1]} : vector<22x38xf32> to vector<16x38xf32>
    %c10 = arith.constant 10 : index
    %c0_55 = arith.constant 0 : index
    %148 = vector.load %arg4[%c10, %c0_55] : memref<49x38xf32, #tpu.memory_space<vmem>>, vector<1x38xf32>
    %149 = vector.broadcast %148 : vector<1x38xf32> to vector<16x38xf32>
    %150 = arith.mulf %147, %149 : vector<16x38xf32>
    %151 = arith.addf %146, %150 : vector<16x38xf32>
    %152 = vector.extract_strided_slice %141 {offsets = [2, 0], sizes = [16, 38], strides = [1, 1]} : vector<22x38xf32> to vector<16x38xf32>
    %c17 = arith.constant 17 : index
    %c0_56 = arith.constant 0 : index
    %153 = vector.load %arg4[%c17, %c0_56] : memref<49x38xf32, #tpu.memory_space<vmem>>, vector<1x38xf32>
    %154 = vector.broadcast %153 : vector<1x38xf32> to vector<16x38xf32>
    %155 = arith.mulf %152, %154 : vector<16x38xf32>
    %156 = arith.addf %151, %155 : vector<16x38xf32>
    %157 = vector.extract_strided_slice %141 {offsets = [3, 0], sizes = [16, 38], strides = [1, 1]} : vector<22x38xf32> to vector<16x38xf32>
    %c24 = arith.constant 24 : index
    %c0_57 = arith.constant 0 : index
    %158 = vector.load %arg4[%c24, %c0_57] : memref<49x38xf32, #tpu.memory_space<vmem>>, vector<1x38xf32>
    %159 = vector.broadcast %158 : vector<1x38xf32> to vector<16x38xf32>
    %160 = arith.mulf %157, %159 : vector<16x38xf32>
    %161 = arith.addf %156, %160 : vector<16x38xf32>
    %162 = vector.extract_strided_slice %141 {offsets = [4, 0], sizes = [16, 38], strides = [1, 1]} : vector<22x38xf32> to vector<16x38xf32>
    %c31 = arith.constant 31 : index
    %c0_58 = arith.constant 0 : index
    %163 = vector.load %arg4[%c31, %c0_58] : memref<49x38xf32, #tpu.memory_space<vmem>>, vector<1x38xf32>
    %164 = vector.broadcast %163 : vector<1x38xf32> to vector<16x38xf32>
    %165 = arith.mulf %162, %164 : vector<16x38xf32>
    %166 = arith.addf %161, %165 : vector<16x38xf32>
    %167 = vector.extract_strided_slice %141 {offsets = [5, 0], sizes = [16, 38], strides = [1, 1]} : vector<22x38xf32> to vector<16x38xf32>
    %c38 = arith.constant 38 : index
    %c0_59 = arith.constant 0 : index
    %168 = vector.load %arg4[%c38, %c0_59] : memref<49x38xf32, #tpu.memory_space<vmem>>, vector<1x38xf32>
    %169 = vector.broadcast %168 : vector<1x38xf32> to vector<16x38xf32>
    %170 = arith.mulf %167, %169 : vector<16x38xf32>
    %171 = arith.addf %166, %170 : vector<16x38xf32>
    %172 = vector.extract_strided_slice %141 {offsets = [6, 0], sizes = [16, 38], strides = [1, 1]} : vector<22x38xf32> to vector<16x38xf32>
    %c45 = arith.constant 45 : index
    %c0_60 = arith.constant 0 : index
    %173 = vector.load %arg4[%c45, %c0_60] : memref<49x38xf32, #tpu.memory_space<vmem>>, vector<1x38xf32>
    %174 = vector.broadcast %173 : vector<1x38xf32> to vector<16x38xf32>
    %175 = arith.mulf %172, %174 : vector<16x38xf32>
    %176 = arith.addf %171, %175 : vector<16x38xf32>
    %c0_61 = arith.constant 0 : index
    %c4 = arith.constant 4 : index
    %177 = vector.load %arg6[%c0_61, %c4] : memref<22x128xf32, #tpu.memory_space<vmem>>, vector<22x38xf32>
    %178 = vector.extract_strided_slice %177 {offsets = [0, 0], sizes = [16, 38], strides = [1, 1]} : vector<22x38xf32> to vector<16x38xf32>
    %c4_62 = arith.constant 4 : index
    %c0_63 = arith.constant 0 : index
    %179 = vector.load %arg4[%c4_62, %c0_63] : memref<49x38xf32, #tpu.memory_space<vmem>>, vector<1x38xf32>
    %180 = vector.broadcast %179 : vector<1x38xf32> to vector<16x38xf32>
    %181 = arith.mulf %178, %180 : vector<16x38xf32>
    %182 = arith.addf %176, %181 : vector<16x38xf32>
    %183 = vector.extract_strided_slice %177 {offsets = [1, 0], sizes = [16, 38], strides = [1, 1]} : vector<22x38xf32> to vector<16x38xf32>
    %c11 = arith.constant 11 : index
    %c0_64 = arith.constant 0 : index
    %184 = vector.load %arg4[%c11, %c0_64] : memref<49x38xf32, #tpu.memory_space<vmem>>, vector<1x38xf32>
    %185 = vector.broadcast %184 : vector<1x38xf32> to vector<16x38xf32>
    %186 = arith.mulf %183, %185 : vector<16x38xf32>
    %187 = arith.addf %182, %186 : vector<16x38xf32>
    %188 = vector.extract_strided_slice %177 {offsets = [2, 0], sizes = [16, 38], strides = [1, 1]} : vector<22x38xf32> to vector<16x38xf32>
    %c18 = arith.constant 18 : index
    %c0_65 = arith.constant 0 : index
    %189 = vector.load %arg4[%c18, %c0_65] : memref<49x38xf32, #tpu.memory_space<vmem>>, vector<1x38xf32>
    %190 = vector.broadcast %189 : vector<1x38xf32> to vector<16x38xf32>
    %191 = arith.mulf %188, %190 : vector<16x38xf32>
    %192 = arith.addf %187, %191 : vector<16x38xf32>
    %193 = vector.extract_strided_slice %177 {offsets = [3, 0], sizes = [16, 38], strides = [1, 1]} : vector<22x38xf32> to vector<16x38xf32>
    %c25_66 = arith.constant 25 : index
    %c0_67 = arith.constant 0 : index
    %194 = vector.load %arg4[%c25_66, %c0_67] : memref<49x38xf32, #tpu.memory_space<vmem>>, vector<1x38xf32>
    %195 = vector.broadcast %194 : vector<1x38xf32> to vector<16x38xf32>
    %196 = arith.mulf %193, %195 : vector<16x38xf32>
    %197 = arith.addf %192, %196 : vector<16x38xf32>
    %198 = vector.extract_strided_slice %177 {offsets = [4, 0], sizes = [16, 38], strides = [1, 1]} : vector<22x38xf32> to vector<16x38xf32>
    %c32 = arith.constant 32 : index
    %c0_68 = arith.constant 0 : index
    %199 = vector.load %arg4[%c32, %c0_68] : memref<49x38xf32, #tpu.memory_space<vmem>>, vector<1x38xf32>
    %200 = vector.broadcast %199 : vector<1x38xf32> to vector<16x38xf32>
    %201 = arith.mulf %198, %200 : vector<16x38xf32>
    %202 = arith.addf %197, %201 : vector<16x38xf32>
    %203 = vector.extract_strided_slice %177 {offsets = [5, 0], sizes = [16, 38], strides = [1, 1]} : vector<22x38xf32> to vector<16x38xf32>
    %c39 = arith.constant 39 : index
    %c0_69 = arith.constant 0 : index
    %204 = vector.load %arg4[%c39, %c0_69] : memref<49x38xf32, #tpu.memory_space<vmem>>, vector<1x38xf32>
    %205 = vector.broadcast %204 : vector<1x38xf32> to vector<16x38xf32>
    %206 = arith.mulf %203, %205 : vector<16x38xf32>
    %207 = arith.addf %202, %206 : vector<16x38xf32>
    %208 = vector.extract_strided_slice %177 {offsets = [6, 0], sizes = [16, 38], strides = [1, 1]} : vector<22x38xf32> to vector<16x38xf32>
    %c46 = arith.constant 46 : index
    %c0_70 = arith.constant 0 : index
    %209 = vector.load %arg4[%c46, %c0_70] : memref<49x38xf32, #tpu.memory_space<vmem>>, vector<1x38xf32>
    %210 = vector.broadcast %209 : vector<1x38xf32> to vector<16x38xf32>
    %211 = arith.mulf %208, %210 : vector<16x38xf32>
    %212 = arith.addf %207, %211 : vector<16x38xf32>
    %c0_71 = arith.constant 0 : index
    %c5 = arith.constant 5 : index
    %213 = vector.load %arg6[%c0_71, %c5] : memref<22x128xf32, #tpu.memory_space<vmem>>, vector<22x38xf32>
    %214 = vector.extract_strided_slice %213 {offsets = [0, 0], sizes = [16, 38], strides = [1, 1]} : vector<22x38xf32> to vector<16x38xf32>
    %c5_72 = arith.constant 5 : index
    %c0_73 = arith.constant 0 : index
    %215 = vector.load %arg4[%c5_72, %c0_73] : memref<49x38xf32, #tpu.memory_space<vmem>>, vector<1x38xf32>
    %216 = vector.broadcast %215 : vector<1x38xf32> to vector<16x38xf32>
    %217 = arith.mulf %214, %216 : vector<16x38xf32>
    %218 = arith.addf %212, %217 : vector<16x38xf32>
    %219 = vector.extract_strided_slice %213 {offsets = [1, 0], sizes = [16, 38], strides = [1, 1]} : vector<22x38xf32> to vector<16x38xf32>
    %c12 = arith.constant 12 : index
    %c0_74 = arith.constant 0 : index
    %220 = vector.load %arg4[%c12, %c0_74] : memref<49x38xf32, #tpu.memory_space<vmem>>, vector<1x38xf32>
    %221 = vector.broadcast %220 : vector<1x38xf32> to vector<16x38xf32>
    %222 = arith.mulf %219, %221 : vector<16x38xf32>
    %223 = arith.addf %218, %222 : vector<16x38xf32>
    %224 = vector.extract_strided_slice %213 {offsets = [2, 0], sizes = [16, 38], strides = [1, 1]} : vector<22x38xf32> to vector<16x38xf32>
    %c19 = arith.constant 19 : index
    %c0_75 = arith.constant 0 : index
    %225 = vector.load %arg4[%c19, %c0_75] : memref<49x38xf32, #tpu.memory_space<vmem>>, vector<1x38xf32>
    %226 = vector.broadcast %225 : vector<1x38xf32> to vector<16x38xf32>
    %227 = arith.mulf %224, %226 : vector<16x38xf32>
    %228 = arith.addf %223, %227 : vector<16x38xf32>
    %229 = vector.extract_strided_slice %213 {offsets = [3, 0], sizes = [16, 38], strides = [1, 1]} : vector<22x38xf32> to vector<16x38xf32>
    %c26 = arith.constant 26 : index
    %c0_76 = arith.constant 0 : index
    %230 = vector.load %arg4[%c26, %c0_76] : memref<49x38xf32, #tpu.memory_space<vmem>>, vector<1x38xf32>
    %231 = vector.broadcast %230 : vector<1x38xf32> to vector<16x38xf32>
    %232 = arith.mulf %229, %231 : vector<16x38xf32>
    %233 = arith.addf %228, %232 : vector<16x38xf32>
    %234 = vector.extract_strided_slice %213 {offsets = [4, 0], sizes = [16, 38], strides = [1, 1]} : vector<22x38xf32> to vector<16x38xf32>
    %c33 = arith.constant 33 : index
    %c0_77 = arith.constant 0 : index
    %235 = vector.load %arg4[%c33, %c0_77] : memref<49x38xf32, #tpu.memory_space<vmem>>, vector<1x38xf32>
    %236 = vector.broadcast %235 : vector<1x38xf32> to vector<16x38xf32>
    %237 = arith.mulf %234, %236 : vector<16x38xf32>
    %238 = arith.addf %233, %237 : vector<16x38xf32>
    %239 = vector.extract_strided_slice %213 {offsets = [5, 0], sizes = [16, 38], strides = [1, 1]} : vector<22x38xf32> to vector<16x38xf32>
    %c40 = arith.constant 40 : index
    %c0_78 = arith.constant 0 : index
    %240 = vector.load %arg4[%c40, %c0_78] : memref<49x38xf32, #tpu.memory_space<vmem>>, vector<1x38xf32>
    %241 = vector.broadcast %240 : vector<1x38xf32> to vector<16x38xf32>
    %242 = arith.mulf %239, %241 : vector<16x38xf32>
    %243 = arith.addf %238, %242 : vector<16x38xf32>
    %244 = vector.extract_strided_slice %213 {offsets = [6, 0], sizes = [16, 38], strides = [1, 1]} : vector<22x38xf32> to vector<16x38xf32>
    %c47 = arith.constant 47 : index
    %c0_79 = arith.constant 0 : index
    %245 = vector.load %arg4[%c47, %c0_79] : memref<49x38xf32, #tpu.memory_space<vmem>>, vector<1x38xf32>
    %246 = vector.broadcast %245 : vector<1x38xf32> to vector<16x38xf32>
    %247 = arith.mulf %244, %246 : vector<16x38xf32>
    %248 = arith.addf %243, %247 : vector<16x38xf32>
    %c0_80 = arith.constant 0 : index
    %c6 = arith.constant 6 : index
    %249 = vector.load %arg6[%c0_80, %c6] : memref<22x128xf32, #tpu.memory_space<vmem>>, vector<22x38xf32>
    %250 = vector.extract_strided_slice %249 {offsets = [0, 0], sizes = [16, 38], strides = [1, 1]} : vector<22x38xf32> to vector<16x38xf32>
    %c6_81 = arith.constant 6 : index
    %c0_82 = arith.constant 0 : index
    %251 = vector.load %arg4[%c6_81, %c0_82] : memref<49x38xf32, #tpu.memory_space<vmem>>, vector<1x38xf32>
    %252 = vector.broadcast %251 : vector<1x38xf32> to vector<16x38xf32>
    %253 = arith.mulf %250, %252 : vector<16x38xf32>
    %254 = arith.addf %248, %253 : vector<16x38xf32>
    %255 = vector.extract_strided_slice %249 {offsets = [1, 0], sizes = [16, 38], strides = [1, 1]} : vector<22x38xf32> to vector<16x38xf32>
    %c13 = arith.constant 13 : index
    %c0_83 = arith.constant 0 : index
    %256 = vector.load %arg4[%c13, %c0_83] : memref<49x38xf32, #tpu.memory_space<vmem>>, vector<1x38xf32>
    %257 = vector.broadcast %256 : vector<1x38xf32> to vector<16x38xf32>
    %258 = arith.mulf %255, %257 : vector<16x38xf32>
    %259 = arith.addf %254, %258 : vector<16x38xf32>
    %260 = vector.extract_strided_slice %249 {offsets = [2, 0], sizes = [16, 38], strides = [1, 1]} : vector<22x38xf32> to vector<16x38xf32>
    %c20 = arith.constant 20 : index
    %c0_84 = arith.constant 0 : index
    %261 = vector.load %arg4[%c20, %c0_84] : memref<49x38xf32, #tpu.memory_space<vmem>>, vector<1x38xf32>
    %262 = vector.broadcast %261 : vector<1x38xf32> to vector<16x38xf32>
    %263 = arith.mulf %260, %262 : vector<16x38xf32>
    %264 = arith.addf %259, %263 : vector<16x38xf32>
    %265 = vector.extract_strided_slice %249 {offsets = [3, 0], sizes = [16, 38], strides = [1, 1]} : vector<22x38xf32> to vector<16x38xf32>
    %c27 = arith.constant 27 : index
    %c0_85 = arith.constant 0 : index
    %266 = vector.load %arg4[%c27, %c0_85] : memref<49x38xf32, #tpu.memory_space<vmem>>, vector<1x38xf32>
    %267 = vector.broadcast %266 : vector<1x38xf32> to vector<16x38xf32>
    %268 = arith.mulf %265, %267 : vector<16x38xf32>
    %269 = arith.addf %264, %268 : vector<16x38xf32>
    %270 = vector.extract_strided_slice %249 {offsets = [4, 0], sizes = [16, 38], strides = [1, 1]} : vector<22x38xf32> to vector<16x38xf32>
    %c34 = arith.constant 34 : index
    %c0_86 = arith.constant 0 : index
    %271 = vector.load %arg4[%c34, %c0_86] : memref<49x38xf32, #tpu.memory_space<vmem>>, vector<1x38xf32>
    %272 = vector.broadcast %271 : vector<1x38xf32> to vector<16x38xf32>
    %273 = arith.mulf %270, %272 : vector<16x38xf32>
    %274 = arith.addf %269, %273 : vector<16x38xf32>
    %275 = vector.extract_strided_slice %249 {offsets = [5, 0], sizes = [16, 38], strides = [1, 1]} : vector<22x38xf32> to vector<16x38xf32>
    %c41 = arith.constant 41 : index
    %c0_87 = arith.constant 0 : index
    %276 = vector.load %arg4[%c41, %c0_87] : memref<49x38xf32, #tpu.memory_space<vmem>>, vector<1x38xf32>
    %277 = vector.broadcast %276 : vector<1x38xf32> to vector<16x38xf32>
    %278 = arith.mulf %275, %277 : vector<16x38xf32>
    %279 = arith.addf %274, %278 : vector<16x38xf32>
    %280 = vector.extract_strided_slice %249 {offsets = [6, 0], sizes = [16, 38], strides = [1, 1]} : vector<22x38xf32> to vector<16x38xf32>
    %c48 = arith.constant 48 : index
    %c0_88 = arith.constant 0 : index
    %281 = vector.load %arg4[%c48, %c0_88] : memref<49x38xf32, #tpu.memory_space<vmem>>, vector<1x38xf32>
    %282 = vector.broadcast %281 : vector<1x38xf32> to vector<16x38xf32>
    %283 = arith.mulf %280, %282 : vector<16x38xf32>
    %284 = arith.addf %279, %283 : vector<16x38xf32>
    %285 = vector.extract_strided_slice %284 {offsets = [0, 0], sizes = [16, 16], strides = [1, 1]} : vector<16x38xf32> to vector<16x16xf32>
    %286 = vector.extract_strided_slice %284 {offsets = [0, 22], sizes = [16, 16], strides = [1, 1]} : vector<16x38xf32> to vector<16x16xf32>
    %287 = arith.addf %285, %286 : vector<16x16xf32>
    %288 = arith.negf %287 : vector<16x16xf32>
    %289 = math.exp %288 : vector<16x16xf32>
    %cst_89 = arith.constant 1.000000e+00 : f32
    %290 = vector.broadcast %cst_89 : f32 to vector<16x16xf32>
    %291 = arith.addf %290, %289 : vector<16x16xf32>
    %292 = arith.divf %290, %291 : vector<16x16xf32>
    %293 = vector.shape_cast %292 : vector<16x16xf32> to vector<16x16x1xf32>
    %294 = vector.broadcast %293 : vector<16x16x1xf32> to vector<16x16x128xf32>
    %295 = arith.mulf %23, %294 : vector<16x16x128xf32>
    %c0_90 = arith.constant 0 : index
    %c0_91 = arith.constant 0 : index
    %c0_92 = arith.constant 0 : index
    %c0_93 = arith.constant 0 : index
    %296 = vector.load %arg5[%c0_90, %c0_91, %c0_92, %c0_93] : memref<1x16x16x128xf32, #tpu.memory_space<vmem>>, vector<1x16x16x128xf32>
    %297 = vector.shape_cast %296 : vector<1x16x16x128xf32> to vector<16x16x128xf32>
    %298 = vector.shape_cast %295 : vector<16x16x128xf32> to vector<1x16x16x128xf32>
    tpu.vector_store %arg5[%c0_90, %c0_91, %c0_92, %c0_93], %298 {strides = array<i32>} : memref<1x16x16x128xf32, #tpu.memory_space<vmem>>, vector<1x16x16x128xf32>,
    return
  }
  func.func @transform_0(%arg0: i32) -> (i32, i32, i32, i32) {
    %c0_i32 = arith.constant 0 : i32
    %c0_i32_0 = arith.constant 0 : i32
    %c0_i32_1 = arith.constant 0 : i32
    %c0_i32_2 = arith.constant 0 : i32
    return %arg0, %c0_i32, %c0_i32_0, %c0_i32_1 : i32, i32, i32, i32
  }
  func.func @transform_1(%arg0: i32) -> (i32, i32) {
    %c0_i32 = arith.constant 0 : i32
    %c0_i32_0 = arith.constant 0 : i32
    %c0_i32_1 = arith.constant 0 : i32
    return %c0_i32, %c0_i32_0 : i32, i32
  }
  func.func @transform_2(%arg0: i32) -> (i32, i32) {
    %c0_i32 = arith.constant 0 : i32
    %c0_i32_0 = arith.constant 0 : i32
    %c0_i32_1 = arith.constant 0 : i32
    return %c0_i32, %c0_i32_0 : i32, i32
  }
  func.func @transform_3(%arg0: i32) -> (i32, i32) {
    %c0_i32 = arith.constant 0 : i32
    %c0_i32_0 = arith.constant 0 : i32
    %c0_i32_1 = arith.constant 0 : i32
    return %c0_i32, %c0_i32_0 : i32, i32
  }
  func.func @transform_4(%arg0: i32) -> (i32, i32, i32, i32) {
    %c0_i32 = arith.constant 0 : i32
    %c0_i32_0 = arith.constant 0 : i32
    %c0_i32_1 = arith.constant 0 : i32
    %c0_i32_2 = arith.constant 0 : i32
    return %arg0, %c0_i32, %c0_i32_0, %c0_i32_1 : i32, i32, i32, i32
  }
}

</mosaic_0001>

<bundles_post_ra>
// kernel: tpu_custom_call.1
= control target key start
LH: loop header
LB: loop body
LE: loop exit
PB: predicated region body
PF: predicated region fallthrough
CT: control target
= control target key end

     0   :  { %9 = vsyncpa [#allocation4], 0  ;;  %s5357_s0 = inlined_call_operand.hbm [shape: f32[4,16,16,128], index: 0, kind: input, shape index: {}]   ;;  %s5358_s1 = inlined_call_operand.vmem [shape: f32[256,32], index: 1, kind: input, shape index: {}]   ;;  %s5359_s2 = inlined_call_operand.vmem [shape: f32[32,128], index: 2, kind: input, shape index: {}]   ;;  %s5360_s3 = inlined_call_operand.vmem [shape: f32[49,38], index: 3, kind: input, shape index: {}]   ;;  %s5361_s4 = inlined_call_operand.hbm [shape: f32[4,16,16,128], index: 4, kind: output, shape index: {}]  }
   0x1   :  { %11 = vsyncpa [#allocation4 + $0x1], 0 }
   0x2   :  { %12 = vsyncpa [#allocation5], 0 }
   0x3   :  { %14 = vsyncpa [#allocation5 + $0x1], 0  ;;  %s3143_s15 = smov 0   ;;  %s3145_s16 = smov 0  }
   0x4   :  { %s3147_s17 = smov 0   ;;  %s3149_s18 = smov 0  }
   0x5 LB: > { %s3164_s19 = sadd.s32 4294967295, %s3094_s18   ;;  %s2769_s20 = sadd.s32 4294967294, %s3094_s18   ;;  %s3094_s18 = sphi %s3149_s18, %s5827_s18   ;;  %s3090_s17 = sphi %s3147_s17, %s5826_s17   ;;  %s3086_s16 = sphi %s3145_s16, %s5825_s16   ;;  %s3082_s15 = sphi %s3143_s15, %s5824_s15  }
   0x6   : > { %s3168_s21 = sadd.s32 1, %s3094_s18   ;;  %s27_s22 = sadd.s32 1, %s3090_s17 }
   0x7   : > { %s24_s23 = ssub.s32 %s3094_s18, %s3168_s21  ;;  %p34_p0 = scmp.ne.s32.totalorder %s3090_s17, %s3086_s16 }
   0x8   : > { %p25_p1 = scmp.eq.s32.totalorder %s24_s23, 0  ;;  %p35_p2 = scmp.eq.s32.totalorder %s3094_s18, 0 }
   0x9   : > { %p40_p3 = scmp.ne.s32.totalorder %s3086_s16, %s3082_s15  ;;  %p41_p4 = scmp.eq.s32.totalorder %s3164_s19, 0 }
   0xa   : > { %s3180_s24 = scalar_select %p25_p1, %s3090_s17, %s27_s22  }
   0xb   : > { %p3182_p5 = por %p35_p2, %p34_p0  ;;  %p3186_p6 = por %p41_p4, %p40_p3 }
   0xc   : > { %p127_p7 = scmp.eq.s32.totalorder %s3164_s19, 3  ;;  %p133_p8 = scmp.eq.s32.totalorder %s2769_s20, 3 }
   0xd   : > { %s5473_s26 = scalar_select %p3186_p6, 1, 0 }
   0xe   : > { %p2936_p9 = scmp.lt.s32.totalorder %s3094_s18, 4  ;;  %p3192_p10 = por %p127_p7, %p34_p0 }
   0xf   : > { %p3196_p11 = por %p133_p8, %p40_p3  ;;  %s162_s29 = sand.u32 1, %s3090_s17  }
  0x10   : > { %s5474_s27 = scalar_select %p3192_p10, 1, 0 }
  0x11   : > { %s5475_s28 = scalar_select %p3196_p11, 1, 0 }
  0x12   : > { %s2836_s30 = sshll.u32 %s3094_s18, 12  ;;  %s2772_s5 = sshll.u32 %s162_s29, 8 }
  0x13   : > { %s3205_s8 = scalar_lea.hbm %s5357_s0, %s2836_s30  ;;  %s166_s9 = scalar_lea.vmem [#allocation3], %s2772_s5 }
  0x14   : > { %s173_s10 = sshll.u32 %s166_s9, 4  ;;  %p3209_p12 = pnand %p2936_p9, %p3182_p5  ;;  %s3213_s10 = int_to_ptr.vmem [resolvable:$true] %s173_s10 }
  0x15   : > { %s3215_s12 = scalar_lea.sflag [#allocation4], %s162_s29  ;;  %s3002_s13 = scalar_lea.hbm %s3205_s8, 4096 }
  0x16   : > { %p3003_p13 = scmp.ne.s32.totalorder %s3205_s8, %s3002_s13  ;;  %p3004_p0 = pneg %p3209_p12 }
  0x17   : > { %s3007_s22 = scalar_lea.hbm %s5357_s0, 16384  ;;  %p3008_p3 = scmp.lt.s32.totalorder %s3205_s8, %s5357_s0 }
  0x18   : > { %p3005_p1 = pnand %p3004_p0, %p3003_p13  ;;  %p3009_p4 = scmp.lt.s32.totalorder %s3007_s22, %s3002_s13 }
  0x1a   : > { %p3006_p2 = pneg %p3005_p1  ;;  %p3010_p5 = por %p3009_p4, %p3008_p3 }
  0x1c   : > { %p3011_p7 = pnand %p3010_p5, %p3006_p2 }
  0x1e   : > { %3014 = shalt.err (!%p3011_p7)
}
  0x1f   : > { %s3015_s29 = scalar_lea.vmem %s3213_s10, 4096  ;;  %s3096_s30 = smov [#allocation3]  }
  0x20   : > { %p3016_p8 = scmp.ne.s32.totalorder %s3213_s10, %s3015_s29  ;;  %s3020_s5 = sshll.u32 %s3096_s30, 4  ;;  %s3021_s5 = int_to_ptr.vmem [resolvable:$false] %s3020_s5 }
  0x21   : > { %s3022_s6 = scalar_lea.vmem %s3021_s5, 8192  ;;  %p3023_p1 = scmp.lt.s32.totalorder %s3213_s10, %s3021_s5 }
  0x22   : > { %p3018_p9 = pnand %p3016_p8, %p3004_p0  ;;  %p3024_p11 = scmp.lt.s32.totalorder %s3022_s6, %s3015_s29 }
  0x24   : > { %p3019_p13 = pneg %p3018_p9  ;;  %p3025_p10 = por %p3024_p11, %p3023_p1 }
  0x26   : > { %p3026_p6 = pnand %p3025_p10, %p3019_p13 }
  0x28   : > { %3029 = shalt.err (!%p3026_p6)
}
  0x29   : > { %s3097_s7 = smov 128   ;;  %s3098_s9 = smov 8  }
  0x2a   : > { %2931 = dma.hbm_to_vmem [thread:$0]  (!%p3209_p12), %s3205_s8, 4096, %s3213_s10, %s3215_s12, %s3097_s7, %s3097_s7, %s3098_s9  }
  0x2b   : > { %p2775_p0 = scmp.ge.s32.totalorder %s3094_s18, 1  ;;  %p181_p2 = scmp.lt.s32.totalorder %s3094_s18, 5 }
  0x2d   : > { %p182_p3 = pnand %p2775_p0, %p181_p2 }
  0x2f   : > { %185 = sbr.rel (%p182_p3) target bundleno = 1643 (0x66b), region = 36 }
  0x34   : > { %s3239_s13 = sand.u32 1, %s3086_s16   ;;  %p5477_p6 = scmp.ne.s32.totalorder %s5473_s26, 0 }
  0x35   : > { %s2776_s14 = sshll.u32 %s3239_s13, 8  ;;  %s188_s20 = scalar_lea.sflag [#allocation4], %s3239_s13 }
  0x36   : > { %s3245_s22 = scalar_lea.vmem [#allocation3], %s2776_s14 }
  0x37   : > { %3073 = dma.done.wait (%p5477_p6), %s188_s20, 4096  }
  0x38   : > { %3075 = vsyncadd (%p5477_p6), %s188_s20, 4294963200  ;;  %v3099_v0 = vmov 1.0   ;;  %v3253_v1 = vld [vmem:[%s3245_s22 + $0xf8] sm:$0xff]  ;;  %v3259_v3 = vld [vmem:[%s3245_s22 + $0xf0] sm:$0xff]  ;;  %vm3101_vm0 = vmmov 0   ;;  %s3102_s10 = smov 1  }
  0x39   : > { %312 = vmatprep.mubr.f32.mxu0 %v3099_v0  ;;  %v3256_v2 = vld [vmem:[%s3245_s22 + $0x78] sm:$0xff]  ;;  %2838 = vmatprep.subr.mxu0 %v3253_v1  ;;  %v3263_v4 = vld [vmem:[%s3245_s22 + $0x70] sm:$0xff]  ;;  %v3267_v5 = vld [vmem:[%s3245_s22 + $0xe8] sm:$0xff]  ;;  %s3103_s23 = smov 2   ;;  %s3104_s11 = smov 3   ;;  %vm463_vm1 = vcmask 261120  }
  0x3a   : > { %2839 = vmatpush3.msra.mxu0 %v3256_v2  ;;  %v3271_v6 = vld [vmem:[%s3245_s22 + $0x68] sm:$0xff]  ;;  %v3275_v7 = vld [vmem:[%s3245_s22 + $0xe0] sm:$0xff]  ;;  %v3283_v9 = vld [vmem:[%s3245_s22 + $0xd8] sm:$0xff]  ;;  %s3105_s25 = smov 4   ;;  %s3106_s12 = smov 5   ;;  %vm787_vm2 = vcmask 154712  }
  0x3b   : > { %2840 = vmatprep.subr.mxu0 %v3259_v3  ;;  %v3279_v8 = vld [vmem:[%s3245_s22 + $0x60] sm:$0xff]  ;;  %v3287_v10 = vld [vmem:[%s3245_s22 + $0x58] sm:$0xff]  ;;  %v3291_v11 = vld [vmem:[%s3245_s22 + $0xd0] sm:$0xff]  ;;  %s3107_s30 = smov 6   ;;  %vm924_vm3 = vcmask 1041409   ;;  %vm926_vm4 = vcmask 1042434  }
  0x3c   : > { %2841 = vmatpush3.msra.mxu0 %v3263_v4  ;;  %v3295_v12 = vld [vmem:[%s3245_s22 + $0x50] sm:$0xff]  ;;  %v3299_v13 = vld [vmem:[%s3245_s22 + $0xc8] sm:$0xff]  ;;  %v387_v15 = vld [vmem:[%s5358_s1 + $0xf8] sm:$0xff]  ;;  %vm928_vm5 = vcmask 1043459   ;;  %vm930_vm6 = vcmask 1044484   ;;  %vm932_vm7 = vcmask 1045509  }
  0x3d   : > { %2842 = vmatprep.subr.mxu0 %v3267_v5  ;;  %v3302_v14 = vld [vmem:[%s3245_s22 + $0x48] sm:$0xff]  ;;  %2873 = vmatprep.subr.mxu1 %v387_v15  ;;  %v371_v16 = vld [vmem:[%s5358_s1 + $0x78] sm:$0xff]  ;;  %v386_v17 = vld [vmem:[%s5358_s1 + $0xf0] sm:$0xff]  ;;  %vm934_vm8 = vcmask 1046534   ;;  %vm936_vm9 = vcmask 1047559   ;;  %vm947_vm10 = vcmask 154648  }
  0x3e   : > { %2843 = vmatpush3.msra.mxu0 %v3271_v6  ;;  %v370_v18 = vld [vmem:[%s5358_s1 + $0x70] sm:$0xff]  ;;  %v3319_v19 = vld [vmem:[%s3245_s22 + $0xc0] sm:$0xff]  ;;  %2874 = vmatpush3.msra.mxu1 %v371_v16  ;;  %v385_v20 = vld [vmem:[%s5358_s1 + $0xe8] sm:$0xff]  ;;  %vm992_vm11 = vcmask 335112   ;;  %vm1145_vm12 = vcmask 335048   ;;  %s3108_s26 = smov 127  }
  0x3f   : > { %2844 = vmatprep.subr.mxu0 %v3275_v7  ;;  %v3326_v21 = vld [vmem:[%s3245_s22 + $0x40] sm:$0xff]  ;;  %2875 = vmatprep.subr.mxu1 %v386_v17  ;;  %v369_v22 = vld [vmem:[%s5358_s1 + $0x68] sm:$0xff]  ;;  %v3333_v23 = vld [vmem:[%s3245_s22 + $0xb8] sm:$0xff]  ;;  %s3109_s8 = smov 126   ;;  %s3111_s29 = smov 124   ;;  %vm1171_vm13 = vcmask 1046528  }
  0x40   : > { %2845 = vmatpush3.msra.mxu0 %v3279_v8  ;;  %2876 = vmatpush3.msra.mxu1 %v370_v18  ;;  %v384_v24 = vld [vmem:[%s5358_s1 + $0xe0] sm:$0xff]  ;;  %v3340_v25 = vld [vmem:[%s3245_s22 + $0x38] sm:$0xff]  ;;  %v3347_v27 = vld [vmem:[%s3245_s22 + $0xb0] sm:$0xff]  ;;  %s3113_s5 = smov 122   ;;  %vm1192_vm14 = vcmask 1045504   ;;  %vm1213_vm15 = vcmask 1044480  }
  0x41   : > { %2846 = vmatprep.subr.mxu0 %v3283_v9  ;;  %2877 = vmatprep.subr.mxu1 %v385_v20  ;;  %v368_v26 = vld [vmem:[%s5358_s1 + $0x60] sm:$0xff]  ;;  %v383_v28 = vld [vmem:[%s5358_s1 + $0xd8] sm:$0xff]  ;;  %v3354_v29 = vld [vmem:[%s3245_s22 + $0x30] sm:$0xff]  ;;  %p5822_p11 = scmp.ne.s32.totalorder %s5474_s27, 0 }
  0x42   : > { %2847 = vmatpush3.msra.mxu0 %v3287_v10  ;;  %2878 = vmatpush3.msra.mxu1 %v369_v22  ;;  %v367_v30 = vld [vmem:[%s5358_s1 + $0x58] sm:$0xff]  ;;  %v3361_v31 = vld [vmem:[%s3245_s22 + $0xa8] sm:$0xff]  ;;  %v382_v32 = vld [vmem:[%s5358_s1 + $0xd0] sm:$0xff] }
  0x43   : > { %2848 = vmatprep.subr.mxu0 %v3291_v11  ;;  %2879 = vmatprep.subr.mxu1 %v384_v24  ;;  %v3368_v33 = vld [vmem:[%s3245_s22 + $0x28] sm:$0xff]  ;;  %v366_v34 = vld [vmem:[%s5358_s1 + $0x50] sm:$0xff]  ;;  %v3375_v35 = vld [vmem:[%s3245_s22 + $0xa0] sm:$0xff] }
  0x44   : > { %2849 = vmatpush3.msra.mxu0 %v3295_v12  ;;  %2880 = vmatpush3.msra.mxu1 %v368_v26  ;;  %v381_v36 = vld [vmem:[%s5358_s1 + $0xc8] sm:$0xff]  ;;  %v3382_v37 = vld [vmem:[%s3245_s22 + $0x20] sm:$0xff]  ;;  %v3389_v39 = vld [vmem:[%s3245_s22 + $0x98] sm:$0xff] }
  0x45   : > { %2850 = vmatprep.subr.mxu0 %v3299_v13  ;;  %2881 = vmatprep.subr.mxu1 %v383_v28  ;;  %v365_v38 = vld [vmem:[%s5358_s1 + $0x48] sm:$0xff]  ;;  %v380_v40 = vld [vmem:[%s5358_s1 + $0xc0] sm:$0xff]  ;;  %v3396_v41 = vld [vmem:[%s3245_s22 + $0x18] sm:$0xff] }
  0x46   : > { %2851 = vmatpush3.msra.mxu0 %v3302_v14  ;;  %2882 = vmatpush3.msra.mxu1 %v367_v30  ;;  %v364_v42 = vld [vmem:[%s5358_s1 + $0x40] sm:$0xff]  ;;  %v3403_v43 = vld [vmem:[%s3245_s22 + $0x90] sm:$0xff]  ;;  %v379_v44 = vld [vmem:[%s5358_s1 + $0xb8] sm:$0xff]  ;;  %v322_v58 = vmax.f32 %v3396_v41, %v3340_v25 }
  0x47   : > { %2852 = vmatprep.subr.mxu0 %v3319_v19  ;;  %2883 = vmatprep.subr.mxu1 %v382_v32  ;;  %v3410_v45 = vld [vmem:[%s3245_s22 + $0x10] sm:$0xff]  ;;  %v363_v46 = vld [vmem:[%s5358_s1 + $0x38] sm:$0xff]  ;;  %v3417_v47 = vld [vmem:[%s3245_s22 + $0x88] sm:$0xff] }
  0x48   : > { %2853 = vmatpush3.msra.mxu0 %v3326_v21  ;;  %2884 = vmatpush3.msra.mxu1 %v366_v34  ;;  %v378_v48 = vld [vmem:[%s5358_s1 + $0xb0] sm:$0xff]  ;;  %v3424_v49 = vld [vmem:[%s3245_s22 + $0x8] sm:$0xff]  ;;  %v3431_v51 = vld [vmem:[%s3245_s22 + $0x80] sm:$0xff]  ;;  %v321_v59 = vmax.f32 %v3410_v45, %v3354_v29  ;;  %v326_v62 = vmax.f32 %v322_v58, %v3287_v10 }
  0x49   : > { %2854 = vmatprep.subr.mxu0 %v3333_v23  ;;  %2885 = vmatprep.subr.mxu1 %v381_v36  ;;  %v362_v50 = vld [vmem:[%s5358_s1 + $0x30] sm:$0xff]  ;;  %v377_v52 = vld [vmem:[%s5358_s1 + $0xa8] sm:$0xff]  ;;  %v3438_v53 = vld [vmem:[%s3245_s22] sm:$0xff]  ;;  %v320_v60 = vmax.f32 %v3424_v49, %v3368_v33  ;;  %s3110_s22 = smov 125  }
  0x4a   : > { %2855 = vmatpush3.msra.mxu0 %v3340_v25  ;;  %2886 = vmatpush3.msra.mxu1 %v365_v38  ;;  %v361_v54 = vld [vmem:[%s5358_s1 + $0x28] sm:$0xff]  ;;  %v376_v55 = vld [vmem:[%s5358_s1 + $0xa0] sm:$0xff]  ;;  %v375_v57 = vld [vmem:[%s5358_s1 + $0x98] sm:$0xff]  ;;  %v319_v61 = vmax.f32 %v3438_v53, %v3382_v37  ;;  %v325_v63 = vmax.f32 %v321_v59, %v3295_v12  ;;  %v330_v16 = vmax.f32 %v326_v62, %v3256_v2 }
  0x4b   : > { %2856 = vmatprep.subr.mxu0 %v3347_v27  ;;  %2887 = vmatprep.subr.mxu1 %v380_v40  ;;  %v360_v56 = vld [vmem:[%s5358_s1 + $0x20] sm:$0xff] }
  0x4c   : > { %2857 = vmatpush3.msra.mxu0 %v3354_v29  ;;  %2888 = vmatpush3.msra.mxu1 %v364_v42  ;;  %v323_v15 = vmax.f32 %v319_v61, %v3326_v21  ;;  %v329_v17 = vmax.f32 %v325_v63, %v3263_v4  ;;  %v334_v22 = vmax.f32 %v330_v16, %v3389_v39  ;;  %v374_v61 = vld [vmem:[%s5358_s1 + $0x90] sm:$0xff]  ;;  %v357_v16 = vld [vmem:[%s5358_s1 + $0x8] sm:$0xff] }
  0x4d   : > { %2858 = vmatprep.subr.mxu0 %v3361_v31  ;;  %2889 = vmatprep.subr.mxu1 %v379_v44  ;;  %v358_v63 = vld [vmem:[%s5358_s1 + $0x10] sm:$0xff] }
  0x4e   : > { %2859 = vmatpush3.msra.mxu0 %v3368_v33  ;;  %2890 = vmatpush3.msra.mxu1 %v363_v46  ;;  %v327_v20 = vmax.f32 %v323_v15, %v3279_v8  ;;  %v333_v24 = vmax.f32 %v329_v17, %v3403_v43  ;;  %v338_v30 = vmax.f32 %v334_v22, %v3333_v23  ;;  %v372_v17 = vld [vmem:[%s5358_s1 + $0x80] sm:$0xff]  ;;  %v3100_v22 = vmov 0.0  }
  0x4f   : > { %2860 = vmatprep.subr.mxu0 %v3375_v35  ;;  %2891 = vmatprep.subr.mxu1 %v378_v48  ;;  %740 = vst [vmem:[#allocation2] sm:$0xff] %v3100_v22  ;;  %741 = vst [vmem:[#allocation2 + $0x8] sm:$0xff] %v3100_v22 }
  0x50   : > { %2861 = vmatpush3.msra.mxu0 %v3382_v37  ;;  %2892 = vmatpush3.msra.mxu1 %v362_v50  ;;  %v331_v28 = vmax.f32 %v327_v20, %v3431_v51  ;;  %v337_v32 = vmax.f32 %v333_v24, %v3347_v27  ;;  %v342_v44 = vmax.f32 %v338_v30, %v3283_v9  ;;  %v356_v20 = vld [vmem:[%s5358_s1] sm:$0xff] }
  0x51   : > { %2862 = vmatprep.subr.mxu0 %v3389_v39  ;;  %2893 = vmatprep.subr.mxu1 %v377_v52  ;;  %742 = vst [vmem:[#allocation2 + $0x10] sm:$0x3f] %v3100_v22 }
  0x52   : > { %2863 = vmatpush3.msra.mxu0 %v3396_v41  ;;  %2894 = vmatpush3.msra.mxu1 %v361_v54  ;;  %v335_v36 = vmax.f32 %v331_v28, %v3375_v35  ;;  %v341_v42 = vmax.f32 %v337_v32, %v3291_v11  ;;  %v346_v52 = vmax.f32 %v342_v44, %v3253_v1  ;;  %v462_v32 = vld [vmem:[%s5359_s2 + $0x18] sm:$0xff]  ;;  %v2789_v44 = vld [vmem:[%s5360_s3 + $0xf] ss:$0 sm:$0xff] }
  0x53   : > { %2864 = vmatprep.subr.mxu0 %v3403_v43  ;;  %2895 = vmatprep.subr.mxu1 %v376_v55 }
  0x54   : > { %2865 = vmatpush3.msra.mxu0 %v3410_v45  ;;  %2896 = vmatpush3.msra.mxu1 %v360_v56  ;;  %v339_v38 = vmax.f32 %v335_v36, %v3319_v19  ;;  %v345_v50 = vmax.f32 %v341_v42, %v3259_v3  ;;  %v460_v36 = vld [vmem:[%s5359_s2 + $0x8] sm:$0xff] }
  0x55   : > { %2866 = vmatprep.subr.mxu0 %v3417_v47  ;;  %2897 = vmatprep.subr.mxu1 %v375_v57  ;;  %v2788_v42 = vld [vmem:[%s5360_s3 + $0x8] ss:$0 sm:$0xff] }
  0x56   : > { %2867 = vmatpush3.msra.mxu0 %v3424_v49  ;;  %v343_v46 = vmax.f32 %v339_v38, %v3275_v7  ;;  %v348_v55 = vmax.f32 %v345_v50, %v346_v52  ;;  %v459_v38 = vld [vmem:[%s5359_s2] sm:$0xff]  ;;  %1313 = vrot.lane.b32.xlu0 %v2788_v42, %s3102_s10  ;;  %v2793_v50 = vld [vmem:[%s5360_s3 + $0x2b] ss:$0 sm:$0xff]  ;;  %v2821_v42 = vld [vmem:[%s5360_s3 + $0x2f] ss:$0 sm:$0xff] }
  0x57   : > { %2868 = vmatprep.subr.mxu0 %v3431_v51  ;;  %v2792_v52 = vld [vmem:[%s5360_s3 + $0x24] ss:$0 sm:$0xff] }
  0x58   : > { %2869 = vmatpush3.msra.mxu0 %v3438_v53 }
  0x59   : > { %313 = vmatmul.mubr.f32.vlgmr.msra.gmra.mxu0 %v3099_v0  ;;  %v324_v0 = vmax.f32 %v320_v60, %v3302_v14  ;;  %v359_v60 = vld [vmem:[%s5358_s1 + $0x18] sm:$0xff]  ;;  %2913 = vmatprep.subr.mxu0 %v3100_v22 }
  0x5a   : > { %2898 = vmatpush3.msra.mxu1 %v359_v60  ;;  %2914 = vmatpush3.msra.mxu0 %v462_v32  ;;  %v2802_v60 = vld [vmem:[%s5360_s3 + $0xa] ss:$0 sm:$0xff]  ;;  %v2814_v32 = vld [vmem:[%s5360_s3 + $0x2e] ss:$0 sm:$0xff] }
  0x5b   : > { %v328_v18 = vmax.f32 %v324_v0, %v3271_v6  ;;  %2899 = vmatprep.subr.mxu1 %v374_v61  ;;  %v373_v0 = vld [vmem:[%s5358_s1 + $0x88] sm:$0xff]  ;;  %2915 = vmatprep.subr.mxu0 %v3100_v22 }
  0x5c   : > { %2900 = vmatpush3.msra.mxu1 %v358_v63  ;;  %2921 = vmatprep.mubr.msk.f32.mxu0 %vm3101_vm0, %v3100_v22  ;;  %v2800_v61 = vld [vmem:[%s5360_s3 + $0x2c] ss:$0 sm:$0xff]  ;;  %v2801_v63 = vld [vmem:[%s5360_s3 + $0x3] ss:$0 sm:$0xff]  ;;  %vm1234_vm0 = vcmask 1043456  }
  0x5d   : > { %v332_v26 = vmax.f32 %v328_v18, %v3417_v47  ;;  %2901 = vmatprep.subr.mxu1 %v373_v0  ;;  %v2805_v0 = vld [vmem:[%s5360_s3 + $0x1f] ss:$0 sm:$0xff] }
  0x5e   : > { %2902 = vmatpush3.msra.mxu1 %v357_v16  ;;  %v2807_v16 = vld [vmem:[%s5360_s3 + $0x2d] ss:$0 sm:$0xff] }
  0x5f   : > { %v336_v34 = vmax.f32 %v332_v26, %v3361_v31  ;;  %2903 = vmatprep.subr.mxu1 %v372_v17  ;;  %v2806_v17 = vld [vmem:[%s5360_s3 + $0x26] ss:$0 sm:$0xff] }
  0x60   : > { %2904 = vmatpush3.msra.mxu1 %v356_v20  ;;  %v2809_v20 = vld [vmem:[%s5360_s3 + $0xb] ss:$0 sm:$0xff] }
  0x61   : > { %v340_v40 = vmax.f32 %v336_v34, %v3299_v13  ;;  %v461_v34 = vld [vmem:[%s5359_s2 + $0x10] sm:$0xff] }
  0x62   : > { %2916 = vmatpush3.msra.mxu0 %v461_v34  ;;  %v2817_v34 = vld [vmem:[%s5360_s3 + $0x13] ss:$0 sm:$0xff] }
  0x63   : > { %v344_v48 = vmax.f32 %v340_v40, %v3267_v5  ;;  %2917 = vmatprep.subr.mxu0 %v3100_v22  ;;  %v2787_v40 = vld [vmem:[%s5360_s3 + $0x1] ss:$0 sm:$0xff] }
  0x64   : > { %2918 = vmatpush3.msra.mxu0 %v460_v36  ;;  %1292 = vrot.lane.b32.xlu1 %v2787_v40, %s3102_s10  ;;  %v2815_v36 = vld [vmem:[%s5360_s3 + $0x5] ss:$0 sm:$0xff]  ;;  %v2818_v40 = vld [vmem:[%s5360_s3 + $0x1a] ss:$0 sm:$0xff] }
  0x65   : > { %v347_v54 = vmax.f32 %v343_v46, %v344_v48  ;;  %2919 = vmatprep.subr.mxu0 %v3100_v22  ;;  %v2791_v46 = vld [vmem:[%s5360_s3 + $0x1d] ss:$0 sm:$0xff]  ;;  %v2790_v48 = vld [vmem:[%s5360_s3 + $0x16] ss:$0 sm:$0xff]  ;;  %v2811_v22 = vld [vmem:[%s5360_s3 + $0x19] ss:$0 sm:$0xff] }
  0x66   : > { %2920 = vmatpush3.msra.mxu0 %v459_v38  ;;  %1397 = vrot.lane.b32.xlu0 %v2791_v46, %s3102_s10  ;;  %v2819_v38 = vld [vmem:[%s5360_s3 + $0x21] ss:$0 sm:$0xff]  ;;  %v2822_v46 = vld [vmem:[%s5360_s3 + $0x6] ss:$0 sm:$0xff] }
  0x67   : > { %v349_v56 = vmax.f32 %v347_v54, %v348_v55  ;;  %v2794_v54 = vld [vmem:[%s5360_s3 + $0x2] ss:$0 sm:$0xff]  ;;  %v2795_v55 = vld [vmem:[%s5360_s3 + $0x9] ss:$0 sm:$0xff] }
  0x68   : > { %1341 = vrot.lane.b32.xlu1 %v2789_v44, %s3102_s10  ;;  %v2820_v44 = vld [vmem:[%s5360_s3 + $0x28] ss:$0 sm:$0xff] }
  0x69   : > { %v350_v57 = vrot.slane %v349_v56, 4 }
  0x6a   : > { %1453 = vrot.lane.b32.xlu0 %v2793_v50, %s3102_s10  ;;  %v2824_v50 = vld [vmem:[%s5360_s3 + $0x14] ss:$0 sm:$0xff] }
  0x6b   : > { %v351_v58 = vmax.f32 %v349_v56, %v350_v57  ;;  %v2797_v56 = vld [vmem:[%s5360_s3 + $0x17] ss:$0 sm:$0xff]  ;;  %v2796_v57 = vld [vmem:[%s5360_s3 + $0x10] ss:$0 sm:$0xff] }
  0x6c   : > { %1369 = vrot.lane.b32.xlu1 %v2790_v48, %s3102_s10  ;;  %v2823_v48 = vld [vmem:[%s5360_s3 + $0xd] ss:$0 sm:$0xff] }
  0x6d   : > { %v352_v59 = vrot.slane %v351_v58, 2 }
  0x6e   : > { %1481 = vrot.lane.b32.xlu0 %v2794_v54, %s3103_s23 }
  0x6f   : > { %v353_v62 = vmax.f32 %v351_v58, %v352_v59  ;;  %v2799_v58 = vld [vmem:[%s5360_s3 + $0x25] ss:$0 sm:$0xff]  ;;  %v2798_v59 = vld [vmem:[%s5360_s3 + $0x1e] ss:$0 sm:$0xff] }
  0x70   : > { %1425 = vrot.lane.b32.xlu1 %v2792_v52, %s3102_s10  ;;  %v2826_v52 = vld [vmem:[%s5360_s3 + $0x22] ss:$0 sm:$0xff] }
  0x71   : > { %v354_v15 = vrot.slane %v353_v62, 1 }
  0x72   : > { %1558 = vrot.lane.b32.xlu0 %v2797_v56, %s3103_s23 }
  0x73   : > { %v355_v18 = vmax.f32 %v353_v62, %v354_v15  ;;  %v2803_v62 = vld [vmem:[%s5360_s3 + $0x11] ss:$0 sm:$0xff]  ;;  %v2804_v15 = vld [vmem:[%s5360_s3 + $0x18] ss:$0 sm:$0xff] }
  0x74   : > { %1502 = vrot.lane.b32.xlu1 %v2795_v55, %s3103_s23 }
  0x75   : > { %452 = vmatprep.mubr.f32.mxu1 %v355_v18  ;;  %v2808_v18 = vld [vmem:[%s5360_s3 + $0x4] ss:$0 sm:$0xff] }
  0x76   : > { %1614 = vrot.lane.b32.xlu0 %v2799_v58, %s3103_s23  ;;  %v2828_v58 = vld [vmem:[%s5360_s3 + $0x30] ss:$0 sm:$0xff] }
  0x78   : > { %1530 = vrot.lane.b32.xlu1 %v2796_v57, %s3103_s23 }
  0x7a   : > { %1691 = vrot.lane.b32.xlu0 %v2802_v60, %s3104_s11  ;;  %v2827_v60 = vld [vmem:[%s5360_s3 + $0x29] ss:$0 sm:$0xff] }
  0x7c   : > { %1586 = vrot.lane.b32.xlu1 %v2798_v59, %s3103_s23  ;;  %v2825_v59 = vld [vmem:[%s5360_s3 + $0x1b] ss:$0 sm:$0xff] }
  0x7e   : > { %1719 = vrot.lane.b32.xlu0 %v2803_v62, %s3104_s11 }
  0x80   : > { %1642 = vrot.lane.b32.xlu1 %v2800_v61, %s3103_s23  ;;  %s3115_s23 = smov [#allocation6]  }
  0x82   : > { %1775 = vrot.lane.b32.xlu0 %v2805_v0, %s3104_s11 }
  0x84   : > { %1670 = vrot.lane.b32.xlu1 %v2801_v63, %s3104_s11 }
  0x86   : > { %1831 = vrot.lane.b32.xlu0 %v2807_v16, %s3104_s11  ;;  %v5364_v16 = vlaneseq }
  0x88   : > { %1747 = vrot.lane.b32.xlu1 %v2804_v15, %s3104_s11 }
  0x8a   : > { %1859 = vrot.lane.b32.xlu0 %v2808_v18, %s3105_s25 }
  0x8c   : > { %1803 = vrot.lane.b32.xlu1 %v2806_v17, %s3104_s11  ;;  %v3648_v17 = vshrl.u32 %v5364_v16, 7 }
  0x8e   : > { %1936 = vrot.lane.b32.xlu0 %v2811_v22, %s3105_s25  ;;  %5478 = vst [vmem:[#allocation9_spill] sm:$0xff] %v3648_v17  ;;  %v3651_v18 = vsub.s32 0, %v3648_v17 }
  0x90   : > { %1880 = vrot.lane.b32.xlu1 %v2809_v20, %s3105_s25  ;;  %5479 = vst [vmem:[#allocation10_spill] sm:$0xff] %v3651_v18 }
 0x119   : > { %v2870_v24 = vpop.f32.mrf.mxu0 }
 0x11b   : > { %v2871_v26 = vpop.f32.mrf.mxu0 }
 0x11c   : > { %v2872_v28 = vadd.f32 %v2871_v26, %v2870_v24  ;;  %v2810_v24 = vld [vmem:[%s5360_s3 + $0x12] ss:$0 sm:$0xff]  ;;  %v2813_v26 = vld [vmem:[%s5360_s3 + $0x27] ss:$0 sm:$0xff] }
 0x11d   : > { %1908 = vrot.lane.b32.xlu1 %v2810_v24, %s3105_s25  ;;  %1992 = vrot.lane.b32.xlu0 %v2813_v26, %s3105_s25 }
 0x11e   : > { %v318_v30 = vmul.f32 0.00390625, %v2872_v28  ;;  %v2812_v28 = vld [vmem:[%s5360_s3 + $0x20] ss:$0 sm:$0xff] }
 0x120   : > { %453 = vmatmul.mubr.f32.vlgmr.msra.gmra.mxu1 %v318_v30  ;;  %v2816_v30 = vld [vmem:[%s5360_s3 + $0xc] ss:$0 sm:$0xff] }
 0x121   : > { %1964 = vrot.lane.b32.xlu1 %v2812_v28, %s3105_s25  ;;  %2069 = vrot.lane.b32.xlu0 %v2816_v30, %s3106_s12 }
 0x125   : > { %2020 = vrot.lane.b32.xlu1 %v2814_v32, %s3105_s25  ;;  %2097 = vrot.lane.b32.xlu0 %v2817_v34, %s3106_s12  ;;  %v3684_v32 = vpop.permute.xlu1 %1292  ;;  %s3034_s25 = sshll.u32 %s3115_s23, 4  ;;  %s3035_s25 = int_to_ptr.vmem [resolvable:$false] %s3034_s25 }
 0x126   : > { %s3036_s20 = scalar_lea.vmem %s3035_s25, 8192 }
 0x129   : > { %2048 = vrot.lane.b32.xlu1 %v2815_v36, %s3106_s12  ;;  %2153 = vrot.lane.b32.xlu0 %v2819_v38, %s3106_s12 }
 0x12d   : > { %2125 = vrot.lane.b32.xlu1 %v2818_v40, %s3106_s12  ;;  %2209 = vrot.lane.b32.xlu0 %v2821_v42, %s3106_s12 }
 0x131   : > { %2181 = vrot.lane.b32.xlu1 %v2820_v44, %s3106_s12  ;;  %2237 = vrot.lane.b32.xlu0 %v2822_v46, %s3107_s30 }
 0x135   : > { %2258 = vrot.lane.b32.xlu1 %v2823_v48, %s3107_s30  ;;  %2314 = vrot.lane.b32.xlu0 %v2825_v59, %s3107_s30 }
 0x139   : > { %2286 = vrot.lane.b32.xlu1 %v2824_v50, %s3107_s30  ;;  %2370 = vrot.lane.b32.xlu0 %v2827_v60, %s3107_s30 }
 0x13d   : > { %2342 = vrot.lane.b32.xlu1 %v2826_v52, %s3107_s30 }
 0x141   : > { %2398 = vrot.lane.b32.xlu1 %v2828_v58, %s3107_s30  ;;  %s3112_s30 = smov 123  }
 0x1e0   : > { %v2905_v54 = vpop.f32.mrf.mxu1 }
 0x1e2   : > { %v2906_v55 = vpop.f32.mrf.mxu1 }
 0x1e3   : > { %v2907_v56 = vadd.f32 %v2906_v55, %v2905_v54 }
 0x1e5   : > { %v458_v57 = vmax.f32 %v2907_v56, 0.0 }
 0x1e7   : > { %2922 = vmatmul.mubr.msk.f32.vlgmr.msra.gmra.mxu0 %vm463_vm1, %v458_v57  ;;  %vm1255_vm1 = vcmask 1042432  }
 0x2a7   : > { %v533_v61 = vpop.f32.mrf.mxu0 }
 0x2a8   : > { %v2779_v62 = vmul.f32 -1.442695, %v533_v61 }
 0x2a9   : > { %v2923_v63 = vpop.f32.mrf.mxu0 }
 0x2aa   : > { %2990 = vpow2.f32 %v2779_v62 }
 0x2b7   : > { %v2991_v0 = vpop.eup %2990 }
 0x2b8   : > { %v540_v15 = vadd.f32 1.0, %v2991_v0 }
 0x2ba   : > { %2992 = vrcp.f32 %v540_v15 }
 0x2c7   : > { %v2993_v20 = vpop.eup %2992 }
 0x2c8   : > { %v3654_v22 = vrot.slane %v2993_v20, %v3651_v18 }
 0x2ca   : > { %v3658_v24 = vmul.f32 %v3654_v22, %v3410_v45  ;;  %v3662_v26 = vmul.f32 %v3654_v22, %v3438_v53  ;;  %v3668_v28 = vmul.f32 %v3654_v22, %v3396_v41  ;;  %v3672_v30 = vmul.f32 %v3654_v22, %v3424_v49 }
 0x2cb   : > { %v3678_v45 = vmul.f32 %v3654_v22, %v3368_v33  ;;  %v3682_v53 = vmul.f32 %v3654_v22, %v3382_v37  ;;  %v3690_v41 = vmul.f32 %v3654_v22, %v3340_v25  ;;  %v3694_v49 = vmul.f32 %v3654_v22, %v3354_v29  ;;  %v3698_v33 = vpop.permute.xlu1 %1341 }
 0x2cc   : > { %5480 = vst [vmem:[#allocation11_spill] sm:$0xff] %v3658_v24  ;;  %5481 = vst [vmem:[#allocation12_spill] sm:$0xff] %v3662_v26  ;;  %583 = vadd.xlane.f32.xlu1 %v3658_v24  ;;  %579 = vadd.xlane.f32.xlu0 %v3662_v26  ;;  %v3702_v37 = vmul.f32 %v3654_v22, %v3302_v14  ;;  %v3706_v34 = vmul.f32 %v3654_v22, %v3326_v21  ;;  %v3720_v14 = vpop.permute.xlu0 %1313 }
 0x2cd   : > { %5482 = vst [vmem:[#allocation13_spill] sm:$0xff] %v3668_v28  ;;  %5483 = vst [vmem:[#allocation14_spill] sm:$0xff] %v3672_v30  ;;  %v3712_v25 = vmul.f32 %v3654_v22, %v3287_v10  ;;  %v3716_v29 = vmul.f32 %v3654_v22, %v3295_v12  ;;  %v3726_v21 = vmul.f32 %v3654_v22, %v3271_v6 }
 0x2ce   : > { %5484 = vst [vmem:[#allocation15_spill] sm:$0xff] %v3678_v45  ;;  %5485 = vst [vmem:[#allocation16_spill] sm:$0xff] %v3682_v53  ;;  %v3730_v10 = vmul.f32 %v3654_v22, %v3279_v8  ;;  %v3740_v40 = vmul.f32 %v3654_v22, %v3256_v2  ;;  %v3744_v6 = vmul.f32 %v3654_v22, %v3263_v4 }
 0x2cf   : > { %5486 = vst [vmem:[#allocation17_spill] sm:$0xff] %v3690_v41  ;;  %5487 = vst [vmem:[#allocation18_spill] sm:$0xff] %v3694_v49  ;;  %v3718_v36 = vpop.permute.xlu1 %1369  ;;  %v3750_v8 = vmul.f32 %v3654_v22, %v3417_v47  ;;  %v3754_v42 = vmul.f32 %v3654_v22, %v3431_v51  ;;  %v3764_v4 = vmul.f32 %v3654_v22, %v3389_v39 }
 0x2d0   : > { %585 = vadd.xlane.f32.xlu1 %v3668_v28  ;;  %581 = vadd.xlane.f32.xlu0 %v3672_v30  ;;  %5488 = vst [vmem:[#allocation19_spill] sm:$0xff] %v3702_v37  ;;  %5489 = vst [vmem:[#allocation20_spill] sm:$0xff] %v3706_v34  ;;  %v3736_v38 = vpop.permute.xlu0 %1397  ;;  %v3768_v47 = vmul.f32 %v3654_v22, %v3403_v43  ;;  %v3778_v48 = vmul.f32 %v3654_v22, %v3361_v31 }
 0x2d1   : > { %5490 = vst [vmem:[#allocation21_spill] sm:$0xff] %v3712_v25  ;;  %5491 = vst [vmem:[#allocation22_spill] sm:$0xff] %v3716_v29  ;;  %v3782_v39 = vmul.f32 %v3654_v22, %v3375_v35  ;;  %v3788_v43 = vmul.f32 %v3654_v22, %v3333_v23  ;;  %v3792_v50 = vmul.f32 %v3654_v22, %v3347_v27 }
 0x2d2   : > { %5492 = vst [vmem:[#allocation23_spill] sm:$0xff] %v3726_v21  ;;  %5493 = vst [vmem:[#allocation24_spill] sm:$0xff] %v3730_v10  ;;  %v3802_v35 = vmul.f32 %v3654_v22, %v3299_v13  ;;  %v3806_v23 = vmul.f32 %v3654_v22, %v3319_v19  ;;  %v3816_v55 = vmul.f32 %v3654_v22, %v3283_v9 }
 0x2d3   : > { %v3734_v12 = vpop.permute.xlu1 %1425  ;;  %5494 = vst [vmem:[#allocation25_spill] sm:$0xff] %v3740_v40  ;;  %5495 = vst [vmem:[#allocation26_spill] sm:$0xff] %v3744_v6  ;;  %v3820_v13 = vmul.f32 %v3654_v22, %v3291_v11  ;;  %v3826_v19 = vmul.f32 %v3654_v22, %v3267_v5  ;;  %v3830_v56 = vmul.f32 %v3654_v22, %v3275_v7 }
 0x2d4   : > { %589 = vadd.xlane.f32.xlu1 %v3678_v45  ;;  %587 = vadd.xlane.f32.xlu0 %v3682_v53  ;;  %5496 = vst [vmem:[#allocation27_spill] sm:$0xff] %v3750_v8  ;;  %5497 = vst [vmem:[#allocation28_spill] sm:$0xff] %v3754_v42  ;;  %v3758_v2 = vpop.permute.xlu0 %1453  ;;  %v3840_v11 = vmul.f32 %v3654_v22, %v3253_v1  ;;  %v3844_v5 = vmul.f32 %v3654_v22, %v3259_v3 }
 0x2d5   : > { %5498 = vst [vmem:[#allocation29_spill] sm:$0xff] %v3764_v4  ;;  %5499 = vst [vmem:[#allocation30_spill] sm:$0xff] %v3768_v47 }
 0x2d6   : > { %5500 = vst [vmem:[#allocation31_spill] sm:$0xff] %v3778_v48  ;;  %5501 = vst [vmem:[#allocation32_spill] sm:$0xff] %v3782_v39 }
 0x2d7   : > { %v3756_v44 = vpop.permute.xlu1 %1502  ;;  %5502 = vst [vmem:[#allocation33_spill] sm:$0xff] %v3788_v43  ;;  %5503 = vst [vmem:[#allocation34_spill] sm:$0xff] %v3792_v50 }
 0x2d8   : > { %593 = vadd.xlane.f32.xlu1 %v3690_v41  ;;  %591 = vadd.xlane.f32.xlu0 %v3694_v49  ;;  %v3774_v46 = vpop.permute.xlu0 %1481  ;;  %5504 = vst [vmem:[#allocation35_spill] sm:$0xff] %v3802_v35  ;;  %5505 = vst [vmem:[#allocation36_spill] sm:$0xff] %v3806_v23 }
 0x2d9   : > { %5507 = vst [vmem:[#allocation38_spill] sm:$0xff] %v3816_v55  ;;  %5508 = vst [vmem:[#allocation39_spill] sm:$0xff] %v3820_v13 }
 0x2da   : > { %5509 = vst [vmem:[#allocation40_spill] sm:$0xff] %v3826_v19  ;;  %5510 = vst [vmem:[#allocation41_spill] sm:$0xff] %v3830_v56 }
 0x2db   : > { %v3772_v51 = vpop.permute.xlu1 %1530  ;;  %5512 = vst [vmem:[#allocation43_spill] sm:$0xff] %v3840_v11  ;;  %5513 = vst [vmem:[#allocation44_spill] sm:$0xff] %v3844_v5 }
 0x2dc   : > { %597 = vadd.xlane.f32.xlu1 %v3702_v37  ;;  %595 = vadd.xlane.f32.xlu0 %v3706_v34  ;;  %v3796_v31 = vpop.permute.xlu0 %1558 }
 0x2df   : > { %v3794_v52 = vpop.permute.xlu1 %1586 }
 0x2e0   : > { %601 = vadd.xlane.f32.xlu1 %v3712_v25  ;;  %599 = vadd.xlane.f32.xlu0 %v3716_v29  ;;  %v3812_v54 = vpop.permute.xlu0 %1614 }
 0x2e3   : > { %v3810_v27 = vpop.permute.xlu1 %1642 }
 0x2e4   : > { %605 = vadd.xlane.f32.xlu1 %v3726_v21  ;;  %603 = vadd.xlane.f32.xlu0 %v3730_v10  ;;  %5506 = vst [vmem:[#allocation37_spill] sm:$0xff] %v3810_v27  ;;  %v3834_v9 = vpop.permute.xlu0 %1691 }
 0x2e5   : > { %5511 = vst [vmem:[#allocation42_spill] sm:$0xff] %v3834_v9 }
 0x2e7   : > { %v3832_v57 = vpop.permute.xlu1 %1670 }
 0x2e8   : > { %609 = vadd.xlane.f32.xlu1 %v3740_v40  ;;  %607 = vadd.xlane.f32.xlu0 %v3744_v6  ;;  %v3850_v58 = vpop.permute.xlu0 %1719 }
 0x2e9   : > { %5515 = vst [vmem:[#allocation46_spill] sm:$0xff] %v3850_v58 }
 0x2eb   : > { %v3848_v7 = vpop.permute.xlu1 %1747 }
 0x2ec   : > { %613 = vadd.xlane.f32.xlu1 %v3750_v8  ;;  %611 = vadd.xlane.f32.xlu0 %v3754_v42  ;;  %5514 = vst [vmem:[#allocation45_spill] sm:$0xff] %v3848_v7  ;;  %v3856_v1 = vpop.permute.xlu0 %1775 }
 0x2ed   : > { %5517 = vst [vmem:[#allocation48_spill] sm:$0xff] %v3856_v1 }
 0x2ef   : > { %v3854_v59 = vpop.permute.xlu1 %1803 }
 0x2f0   : > { %617 = vadd.xlane.f32.xlu1 %v3764_v4  ;;  %615 = vadd.xlane.f32.xlu0 %v3768_v47  ;;  %5516 = vst [vmem:[#allocation47_spill] sm:$0xff] %v3854_v59  ;;  %v3864_v60 = vpop.permute.xlu0 %1831 }
 0x2f1   : > { %5518 = vst [vmem:[#allocation49_spill] sm:$0xff] %v3864_v60 }
 0x2f3   : > { %v3862_v3 = vpop.permute.xlu1 %1880 }
 0x2f4   : > { %621 = vadd.xlane.f32.xlu1 %v3778_v48  ;;  %619 = vadd.xlane.f32.xlu0 %v3782_v39  ;;  %v3870_v62 = vpop.permute.xlu0 %1859 }
 0x2f7   : > { %v3868_v61 = vpop.permute.xlu1 %1908 }
 0x2f8   : > { %625 = vadd.xlane.f32.xlu1 %v3788_v43  ;;  %623 = vadd.xlane.f32.xlu0 %v3792_v50  ;;  %v3878_v0 = vpop.permute.xlu0 %1936 }
 0x2fb   : > { %v3876_v63 = vpop.permute.xlu1 %1964 }
 0x2fc   : > { %629 = vadd.xlane.f32.xlu1 %v3802_v35  ;;  %627 = vadd.xlane.f32.xlu0 %v3806_v23  ;;  %v3884_v20 = vpop.permute.xlu0 %1992 }
 0x2ff   : > { %v3882_v15 = vpop.permute.xlu1 %2020 }
 0x300   : > { %633 = vadd.xlane.f32.xlu1 %v3816_v55  ;;  %631 = vadd.xlane.f32.xlu0 %v3820_v13  ;;  %v3892_v16 = vpop.permute.xlu0 %2069 }
 0x301   : > { %5519 = vst [vmem:[#allocation50_spill] sm:$0xff] %v3892_v16 }
 0x303   : > { %v3890_v22 = vpop.permute.xlu1 %2048 }
 0x304   : > { %637 = vadd.xlane.f32.xlu1 %v3826_v19  ;;  %635 = vadd.xlane.f32.xlu0 %v3830_v56 }
 0x308   : > { %641 = vadd.xlane.f32.xlu1 %v3840_v11  ;;  %639 = vadd.xlane.f32.xlu0 %v3844_v5 }
 0x30c   : > { %678 = vmax.xlane.f32.xlu1 %v3672_v30  ;;  %676 = vmax.xlane.f32.xlu0 %v3662_v26 }
 0x310   : > { %682 = vmax.xlane.f32.xlu1 %v3668_v28  ;;  %680 = vmax.xlane.f32.xlu0 %v3658_v24 }
 0x314   : > { %710 = vmax.xlane.f32.xlu1 %v3750_v8  ;;  %708 = vmax.xlane.f32.xlu0 %v3754_v42 }
 0x318   : > { %714 = vmax.xlane.f32.xlu1 %v3764_v4  ;;  %712 = vmax.xlane.f32.xlu0 %v3768_v47 }
 0x31c   : > { %686 = vmax.xlane.f32.xlu1 %v3678_v45  ;;  %684 = vmax.xlane.f32.xlu0 %v3682_v53 }
 0x320   : > { %718 = vmax.xlane.f32.xlu1 %v3778_v48  ;;  %716 = vmax.xlane.f32.xlu0 %v3782_v39  ;;  %v3896_v39 = vpop.permute.xlu1 %2125  ;;  %v3898_v48 = vpop.permute.xlu0 %2097 }
 0x321   : > { %5520 = vst [vmem:[#allocation51_spill] sm:$0xff] %v3896_v39  ;;  %5521 = vst [vmem:[#allocation52_spill] sm:$0xff] %v3898_v48 }
 0x324   : > { %690 = vmax.xlane.f32.xlu1 %v3690_v41  ;;  %688 = vmax.xlane.f32.xlu0 %v3694_v49 }
 0x328   : > { %722 = vmax.xlane.f32.xlu1 %v3788_v43  ;;  %720 = vmax.xlane.f32.xlu0 %v3792_v50  ;;  %v3904_v50 = vpop.permute.xlu1 %2181  ;;  %v3906_v43 = vpop.permute.xlu0 %2153 }
 0x329   : > { %5522 = vst [vmem:[#allocation53_spill] sm:$0xff] %v3904_v50  ;;  %5523 = vst [vmem:[#allocation54_spill] sm:$0xff] %v3906_v43 }
 0x32c   : > { %694 = vmax.xlane.f32.xlu1 %v3702_v37  ;;  %692 = vmax.xlane.f32.xlu0 %v3706_v34 }
 0x330   : > { %726 = vmax.xlane.f32.xlu1 %v3802_v35  ;;  %724 = vmax.xlane.f32.xlu0 %v3806_v23  ;;  %v3910_v23 = vpop.permute.xlu1 %2258  ;;  %v3912_v35 = vpop.permute.xlu0 %2209 }
 0x331   : > { %5524 = vst [vmem:[#allocation55_spill] sm:$0xff] %v3910_v23  ;;  %5525 = vst [vmem:[#allocation56_spill] sm:$0xff] %v3912_v35 }
 0x334   : > { %698 = vmax.xlane.f32.xlu1 %v3712_v25  ;;  %696 = vmax.xlane.f32.xlu0 %v3716_v29  ;;  %v5532_v29 = vlaneseq }
 0x336   : > { %v3933_v25 = vand.u32 127, %v5532_v29 }
 0x338   : > { %730 = vmax.xlane.f32.xlu1 %v3816_v55  ;;  %728 = vmax.xlane.f32.xlu0 %v3820_v13  ;;  %v3918_v13 = vpop.permute.xlu1 %2286  ;;  %v3920_v55 = vpop.permute.xlu0 %2237  ;;  %v777_v37 = vadd.s32 4294967293, %v3933_v25 }
 0x339   : > { %5526 = vst [vmem:[#allocation57_spill] sm:$0xff] %v3918_v13  ;;  %5527 = vst [vmem:[#allocation58_spill] sm:$0xff] %v3920_v55 }
 0x33a   : > { %v3941_v28 = vsub.s32 %v777_v37, %v3648_v17 }
 0x33c   : > { %702 = vmax.xlane.f32.xlu1 %v3726_v21  ;;  %700 = vmax.xlane.f32.xlu0 %v3730_v10  ;;  %v3924_v47 = vpop.permute.xlu1 %2342  ;;  %v3926_v4 = vpop.permute.xlu0 %2314 }
 0x33d   : > { %5528 = vst [vmem:[#allocation59_spill] sm:$0xff] %v3924_v47  ;;  %5529 = vst [vmem:[#allocation60_spill] sm:$0xff] %v3926_v4 }
 0x340   : > { %734 = vmax.xlane.f32.xlu1 %v3826_v19  ;;  %732 = vmax.xlane.f32.xlu0 %v3830_v56  ;;  %v3928_v42 = vpop.permute.xlu1 %2398  ;;  %v3930_v19 = vpop.permute.xlu0 %2370 }
 0x341   : > { %5530 = vst [vmem:[#allocation61_spill] sm:$0xff] %v3928_v42  ;;  %5531 = vst [vmem:[#allocation62_spill] sm:$0xff] %v3930_v19 }
 0x344   : > { %706 = vmax.xlane.f32.xlu1 %v3740_v40  ;;  %704 = vmax.xlane.f32.xlu0 %v3744_v6 }
 0x348   : > { %738 = vmax.xlane.f32.xlu1 %v3840_v11  ;;  %736 = vmax.xlane.f32.xlu0 %v3844_v5  ;;  %v782_v11 = vadd.s32 4294967285, %v3933_v25 }
 0x34a   : > { %v3938_v49 = vsub.s32 %v782_v11, %v3648_v17 }
 0x355   : > { %v584_v56 = vpop.xlane.xlu1 %583  ;;  %v580_v8 = vpop.xlane.xlu0 %579 }
 0x356   : > { %v646_v26 = vmul.f32 0.0078125, %v584_v56  ;;  %v644_v30 = vmul.f32 0.0078125, %v580_v8 }
 0x358   : > { %v792_v37 = vrot.slane %v646_v26, %v3941_v28  ;;  %v781_v56 = vrot.slane %v644_v30, %v3941_v28 }
 0x359   : > { %v586_v40 = vpop.xlane.xlu1 %585  ;;  %v582_v6 = vpop.xlane.xlu0 %581 }
 0x35a   : > { %v647_v41 = vmul.f32 0.0078125, %v586_v40  ;;  %v645_v53 = vmul.f32 0.0078125, %v582_v6 }
 0x35c   : > { %v796_v58 = vrot.slane %v647_v41, %v3938_v49  ;;  %v786_v9 = vrot.slane %v645_v53, %v3938_v49 }
 0x35d   : > { %v590_v10 = vpop.xlane.xlu1 %589  ;;  %v588_v21 = vpop.xlane.xlu0 %587 }
 0x35e   : > { %v649_v29 = vmul.f32 0.0078125, %v590_v10  ;;  %v648_v18 = vmul.f32 0.0078125, %v588_v21 }
 0x360   : > { %v805_v10 = vrot.slane %v649_v29, %v3938_v49  ;;  %v801_v21 = vrot.slane %v648_v18, %v3941_v28 }
 0x361   : > { %v594_v5 = vpop.xlane.xlu1 %593  ;;  %v592_v34 = vpop.xlane.xlu0 %591 }
 0x362   : > { %v651_v1 = vmul.f32 0.0078125, %v594_v5  ;;  %v650_v7 = vmul.f32 0.0078125, %v592_v34 }
 0x364   : > { %v814_v41 = vrot.slane %v651_v1, %v3938_v49  ;;  %v810_v53 = vrot.slane %v650_v7, %v3941_v28  ;;  %v806_v1 = vsel %vm787_vm2, %v805_v10, %v801_v21 }
 0x365   : > { %v598_v45 = vpop.xlane.xlu1 %597  ;;  %v596_v24 = vpop.xlane.xlu0 %595 }
 0x366   : > { %v653_v27 = vmul.f32 0.0078125, %v598_v45  ;;  %v652_v11 = vmul.f32 0.0078125, %v596_v24  ;;  %v797_v24 = vsel %vm787_vm2, %v796_v58, %v792_v37  ;;  %v788_v45 = vsel %vm787_vm2, %v786_v9, %v781_v56 }
 0x367   : > { %v815_v7 = vsel %vm787_vm2, %v814_v41, %v810_v53  ;;  %v925_v58 = vsel %vm924_vm3, %v797_v24, %v788_v45 }
 0x368   : > { %v823_v34 = vrot.slane %v653_v27, %v3938_v49  ;;  %v819_v8 = vrot.slane %v652_v11, %v3941_v28 }
 0x369   : > { %v602_v60 = vpop.xlane.xlu1 %601  ;;  %v600_v40 = vpop.xlane.xlu0 %599 }
 0x36a   : > { %v655_v6 = vmul.f32 0.0078125, %v602_v60  ;;  %v654_v59 = vmul.f32 0.0078125, %v600_v40  ;;  %v824_v11 = vsel %vm787_vm2, %v823_v34, %v819_v8 }
 0x36c   : > { %v832_v30 = vrot.slane %v655_v6, %v3938_v49  ;;  %v828_v60 = vrot.slane %v654_v59, %v3941_v28  ;;  %v927_v6 = vsel %vm926_vm4, %v806_v1, %v925_v58 }
 0x36d   : > { %v606_v26 = vpop.xlane.xlu1 %605  ;;  %v604_v5 = vpop.xlane.xlu0 %603  ;;  %v929_v21 = vsel %vm928_vm5, %v815_v7, %v927_v6 }
 0x36e   : > { %v657_v18 = vmul.f32 0.0078125, %v606_v26  ;;  %v656_v29 = vmul.f32 0.0078125, %v604_v5  ;;  %v833_v37 = vsel %vm787_vm2, %v832_v30, %v828_v60  ;;  %v931_v53 = vsel %vm930_vm6, %v824_v11, %v929_v21 }
 0x36f   : > { %v933_v34 = vsel %vm932_vm7, %v833_v37, %v931_v53 }
 0x370   : > { %v841_v9 = vrot.slane %v657_v18, %v3938_v49  ;;  %v837_v27 = vrot.slane %v656_v29, %v3941_v28 }
 0x371   : > { %v610_v40 = vpop.xlane.xlu1 %609  ;;  %v608_v59 = vpop.xlane.xlu0 %607 }
 0x372   : > { %v659_v56 = vmul.f32 0.0078125, %v610_v40  ;;  %v658_v10 = vmul.f32 0.0078125, %v608_v59  ;;  %v842_v41 = vsel %vm787_vm2, %v841_v9, %v837_v27 }
 0x373   : > { %v935_v5 = vsel %vm934_vm8, %v842_v41, %v933_v34 }
 0x374   : > { %v850_v24 = vrot.slane %v659_v56, %v3938_v49  ;;  %v846_v45 = vrot.slane %v658_v10, %v3941_v28 }
 0x375   : > { %v614_v8 = vpop.xlane.xlu1 %613  ;;  %v612_v26 = vpop.xlane.xlu0 %611 }
 0x376   : > { %v851_v30 = vsel %vm787_vm2, %v850_v24, %v846_v45  ;;  %v661_v56 = vmul.f32 0.0078125, %v614_v8  ;;  %v660_v10 = vmul.f32 0.0078125, %v612_v26 }
 0x377   : > { %v937_v60 = vsel %vm936_vm9, %v851_v30, %v935_v5 }
 0x378   : > { %948 = vst.msk [vmem:[#allocation2 + $0x3] sm:$0xff] %vm947_vm10, %v937_v60  ;;  %v855_v8 = vrot.slane %v660_v10, %v3941_v28 }
 0x379   : > { %v618_v18 = vpop.xlane.xlu1 %617  ;;  %v616_v29 = vpop.xlane.xlu0 %615 }
 0x37a   : > { %v663_v58 = vmul.f32 0.0078125, %v618_v18  ;;  %v662_v11 = vmul.f32 0.0078125, %v616_v29 }
 0x37c   : > { %v868_v53 = vrot.slane %v663_v58, %v3938_v49  ;;  %v864_v24 = vrot.slane %v662_v11, %v3941_v28 }
 0x37d   : > { %v622_v1 = vpop.xlane.xlu1 %621  ;;  %v620_v7 = vpop.xlane.xlu0 %619 }
 0x37e   : > { %v665_v6 = vmul.f32 0.0078125, %v622_v1  ;;  %v664_v37 = vmul.f32 0.0078125, %v620_v7  ;;  %v859_v1 = vrot.slane %v661_v56, %v3938_v49 }
 0x380   : > { %v877_v18 = vrot.slane %v665_v6, %v3938_v49  ;;  %v873_v29 = vrot.slane %v664_v37, %v3941_v28 }
 0x381   : > { %v626_v9 = vpop.xlane.xlu1 %625  ;;  %v624_v27 = vpop.xlane.xlu0 %623 }
 0x382   : > { %v667_v21 = vmul.f32 0.0078125, %v626_v9  ;;  %v666_v41 = vmul.f32 0.0078125, %v624_v27  ;;  %v869_v9 = vsel %vm787_vm2, %v868_v53, %v864_v24  ;;  %v878_v10 = vsel %vm787_vm2, %v877_v18, %v873_v29 }
 0x384   : > { %v886_v26 = vrot.slane %v667_v21, %v3938_v49  ;;  %v882_v7 = vrot.slane %v666_v41, %v3941_v28  ;;  %v860_v21 = vsel %vm787_vm2, %v859_v1, %v855_v8 }
 0x385   : > { %v630_v40 = vpop.xlane.xlu1 %629  ;;  %v628_v59 = vpop.xlane.xlu0 %627 }
 0x386   : > { %v669_v45 = vmul.f32 0.0078125, %v630_v40  ;;  %v668_v34 = vmul.f32 0.0078125, %v628_v59  ;;  %v887_v41 = vsel %vm787_vm2, %v886_v26, %v882_v7 }
 0x388   : > { %v895_v27 = vrot.slane %v669_v45, %v3938_v49  ;;  %v891_v58 = vrot.slane %v668_v34, %v3941_v28  ;;  %v938_v45 = vsel %vm924_vm3, %v869_v9, %v860_v21 }
 0x389   : > { %v634_v5 = vpop.xlane.xlu1 %633  ;;  %v632_v30 = vpop.xlane.xlu0 %631 }
 0x38a   : > { %v671_v60 = vmul.f32 0.0078125, %v634_v5  ;;  %v670_v42 = vmul.f32 0.0078125, %v632_v30  ;;  %v896_v34 = vsel %vm787_vm2, %v895_v27, %v891_v58 }
 0x38c   : > { %v904_v59 = vrot.slane %v671_v60, %v3938_v49  ;;  %v900_v6 = vrot.slane %v670_v42, %v3941_v28  ;;  %v939_v42 = vsel %vm926_vm4, %v878_v10, %v938_v45 }
 0x38d   : > { %v638_v11 = vpop.xlane.xlu1 %637  ;;  %v636_v40 = vpop.xlane.xlu0 %635  ;;  %v940_v29 = vsel %vm928_vm5, %v887_v41, %v939_v42 }
 0x38e   : > { %v673_v37 = vmul.f32 0.0078125, %v638_v11  ;;  %v672_v56 = vmul.f32 0.0078125, %v636_v40  ;;  %v905_v60 = vsel %vm787_vm2, %v904_v59, %v900_v6  ;;  %v941_v8 = vsel %vm930_vm6, %v896_v34, %v940_v29 }
 0x38f   : > { %v942_v9 = vsel %vm932_vm7, %v905_v60, %v941_v8  ;;  %v982_v8 = vadd.s32 4294967271, %v3933_v25 }
 0x390   : > { %v913_v53 = vrot.slane %v673_v37, %v3938_v49  ;;  %v909_v24 = vrot.slane %v672_v56, %v3941_v28 }
 0x391   : > { %v642_v5 = vpop.xlane.xlu1 %641  ;;  %v640_v30 = vpop.xlane.xlu0 %639 }
 0x392   : > { %v675_v11 = vmul.f32 0.0078125, %v642_v5  ;;  %v674_v18 = vmul.f32 0.0078125, %v640_v30  ;;  %v914_v1 = vsel %vm787_vm2, %v913_v53, %v909_v24 }
 0x393   : > { %v943_v40 = vsel %vm934_vm8, %v914_v1, %v942_v9  ;;  %v987_v1 = vadd.s32 4294967263, %v3933_v25 }
 0x394   : > { %v922_v26 = vrot.slane %v675_v11, %v3938_v49  ;;  %v918_v7 = vrot.slane %v674_v18, %v3941_v28 }
 0x395   : > { %v679_v27 = vpop.xlane.xlu1 %678  ;;  %v677_v58 = vpop.xlane.xlu0 %676  ;;  %v4018_v9 = vsub.s32 %v987_v1, %v3648_v17 }
 0x396   : > { %v923_v59 = vsel %vm787_vm2, %v922_v26, %v918_v7  ;;  %vm1276_vm2 = vcmask 1041408  }
 0x397   : > { %v944_v6 = vsel %vm936_vm9, %v923_v59, %v943_v40  ;;  %v4021_v40 = vsub.s32 %v982_v8, %v3648_v17  ;;  %v991_v4 = vrot.slane %v679_v27, %v4018_v9 }
 0x398   : > { %949 = vst.msk [vmem:[#allocation2 + $0xb] sm:$0xff] %vm947_vm10, %v944_v6 }
 0x399   : > { %v683_v37 = vpop.xlane.xlu1 %682  ;;  %v681_v56 = vpop.xlane.xlu0 %680  ;;  %v986_v13 = vrot.slane %v677_v58, %v4021_v40 }
 0x39a   : > { %v1001_v59 = vrot.slane %v683_v37, %v4018_v9  ;;  %v997_v6 = vrot.slane %v681_v56, %v4021_v40 }
 0x39c   : > { %v1002_v1 = vsel %vm992_vm11, %v1001_v59, %v997_v6 }
 0x39d   : > { %v711_v10 = vpop.xlane.xlu1 %710  ;;  %v709_v21 = vpop.xlane.xlu0 %708 }
 0x39e   : > { %v1064_v8 = vrot.slane %v711_v10, %v4018_v9  ;;  %v1060_v17 = vrot.slane %v709_v21, %v4021_v40 }
 0x3a1   : > { %v715_v41 = vpop.xlane.xlu1 %714  ;;  %v713_v49 = vpop.xlane.xlu0 %712 }
 0x3a2   : > { %v1073_v56 = vrot.slane %v715_v41, %v4018_v9  ;;  %v1069_v35 = vrot.slane %v713_v49, %v4021_v40 }
 0x3a5   : > { %v687_v53 = vpop.xlane.xlu1 %686  ;;  %v685_v28 = vpop.xlane.xlu0 %684 }
 0x3a6   : > { %v1010_v25 = vrot.slane %v687_v53, %v4018_v9  ;;  %v1006_v23 = vrot.slane %v685_v28, %v4021_v40  ;;  %v993_v53 = vsel %vm992_vm11, %v991_v4, %v986_v13 }
 0x3a8   : > { %v1011_v28 = vsel %vm992_vm11, %v1010_v25, %v1006_v23 }
 0x3a9   : > { %v719_v24 = vpop.xlane.xlu1 %718  ;;  %v717_v45 = vpop.xlane.xlu0 %716 }
 0x3aa   : > { %v1082_v21 = vrot.slane %v719_v24, %v4018_v9  ;;  %v1078_v6 = vrot.slane %v717_v45, %v4021_v40 }
 0x3ad   : > { %v691_v34 = vpop.xlane.xlu1 %690  ;;  %v689_v5 = vpop.xlane.xlu0 %688 }
 0x3ae   : > { %v1019_v27 = vrot.slane %v691_v34, %v4018_v9  ;;  %v1015_v58 = vrot.slane %v689_v5, %v4021_v40  ;;  %v1129_v34 = vsel %vm924_vm3, %v1002_v1, %v993_v53  ;;  %v1065_v5 = vsel %vm992_vm11, %v1064_v8, %v1060_v17 }
 0x3b0   : > { %v1020_v24 = vsel %vm992_vm11, %v1019_v27, %v1015_v58 }
 0x3b1   : > { %v4007_v30 = vpop.xlane.xlu1 %722  ;;  %v4009_v42 = vpop.xlane.xlu0 %720 }
 0x3b2   : > { %v1091_v45 = vrot.slane %v4007_v30, %v4018_v9 }
 0x3b5   : > { %v695_v60 = vpop.xlane.xlu1 %694  ;;  %v693_v11 = vpop.xlane.xlu0 %692 }
 0x3b6   : > { %v1028_v59 = vrot.slane %v695_v60, %v4018_v9  ;;  %v1024_v10 = vrot.slane %v693_v11, %v4021_v40  ;;  %v1074_v11 = vsel %vm992_vm11, %v1073_v56, %v1069_v35  ;;  %v1083_v35 = vsel %vm992_vm11, %v1082_v21, %v1078_v6 }
 0x3b8   : > { %v1029_v17 = vsel %vm992_vm11, %v1028_v59, %v1024_v10 }
 0x3b9   : > { %v4011_v18 = vpop.xlane.xlu1 %726  ;;  %v4013_v29 = vpop.xlane.xlu0 %724 }
 0x3ba   : > { %v1100_v25 = vrot.slane %v4011_v18, %v4018_v9 }
 0x3bd   : > { %v699_v26 = vpop.xlane.xlu1 %698  ;;  %v697_v7 = vpop.xlane.xlu0 %696 }
 0x3be   : > { %v1037_v41 = vrot.slane %v699_v26, %v4018_v9  ;;  %v1033_v49 = vrot.slane %v697_v7, %v4021_v40  ;;  %v1087_v26 = vrot.slane %v4009_v42, %v4021_v40  ;;  %v1130_v7 = vsel %vm926_vm4, %v1011_v28, %v1129_v34 }
 0x3bf   : > { %v1131_v42 = vsel %vm928_vm5, %v1020_v24, %v1130_v7 }
 0x3c0   : > { %v1038_v1 = vsel %vm992_vm11, %v1037_v41, %v1033_v49  ;;  %v1132_v53 = vsel %vm930_vm6, %v1029_v17, %v1131_v42 }
 0x3c1   : > { %v731_v19 = vpop.xlane.xlu1 %730  ;;  %v729_v47 = vpop.xlane.xlu0 %728  ;;  %v1133_v10 = vsel %vm932_vm7, %v1038_v1, %v1132_v53 }
 0x3c2   : > { %v1109_v8 = vrot.slane %v731_v19, %v4018_v9  ;;  %v1105_v30 = vrot.slane %v729_v47, %v4021_v40  ;;  %v1136_v47 = vsel %vm924_vm3, %v1074_v11, %v1065_v5 }
 0x3c3   : > { %v1137_v21 = vsel %vm926_vm4, %v1083_v35, %v1136_v47 }
 0x3c4   : > { %v1110_v6 = vsel %vm992_vm11, %v1109_v8, %v1105_v30 }
 0x3c5   : > { %v703_v37 = vpop.xlane.xlu1 %702  ;;  %v701_v55 = vpop.xlane.xlu0 %700 }
 0x3c6   : > { %v1046_v4 = vrot.slane %v703_v37, %v4018_v9  ;;  %v1042_v23 = vrot.slane %v701_v55, %v4021_v40  ;;  %v1096_v55 = vrot.slane %v4013_v29, %v4021_v40  ;;  %v1092_v29 = vsel %vm992_vm11, %v1091_v45, %v1087_v26 }
 0x3c7   : > { %v1138_v34 = vsel %vm928_vm5, %v1092_v29, %v1137_v21 }
 0x3c8   : > { %v1047_v37 = vsel %vm992_vm11, %v1046_v4, %v1042_v23  ;;  %v1101_v59 = vsel %vm992_vm11, %v1100_v25, %v1096_v55 }
 0x3c9   : > { %v735_v13 = vpop.xlane.xlu1 %734  ;;  %v733_v60 = vpop.xlane.xlu0 %732  ;;  %v1134_v41 = vsel %vm934_vm8, %v1047_v37, %v1133_v10 }
 0x3ca   : > { %v1118_v56 = vrot.slane %v735_v13, %v4018_v9  ;;  %v1114_v27 = vrot.slane %v733_v60, %v4021_v40  ;;  %v1139_v60 = vsel %vm930_vm6, %v1101_v59, %v1138_v34 }
 0x3cb   : > { %v1140_v45 = vsel %vm932_vm7, %v1110_v6, %v1139_v60 }
 0x3cc   : > { %v1119_v4 = vsel %vm992_vm11, %v1118_v56, %v1114_v27 }
 0x3cd   : > { %v707_v18 = vpop.xlane.xlu1 %706  ;;  %v705_v58 = vpop.xlane.xlu0 %704  ;;  %v1141_v26 = vsel %vm934_vm8, %v1119_v4, %v1140_v45  ;;  %v5559_v45 = vld [vmem:[#allocation55_spill] sm:$0xff] }
 0x3ce   : > { %v1055_v28 = vrot.slane %v707_v18, %v4018_v9  ;;  %v1051_v19 = vrot.slane %v705_v58, %v4021_v40 }
 0x3d0   : > { %v1056_v49 = vsel %vm992_vm11, %v1055_v28, %v1051_v19 }
 0x3d1   : > { %v1135_v23 = vsel %vm936_vm9, %v1056_v49, %v1134_v41  ;;  %v739_v5 = vpop.xlane.xlu1 %738  ;;  %v737_v13 = vpop.xlane.xlu0 %736 }
 0x3d2   : > { %1146 = vst.msk [vmem:[#allocation2 + $0x3] sm:$0xff] %vm1145_vm12, %v1135_v23  ;;  %v1127_v11 = vrot.slane %v739_v5, %v4018_v9  ;;  %v1123_v24 = vrot.slane %v737_v13, %v4021_v40  ;;  %v5556_v13 = vld [vmem:[#allocation56_spill] sm:$0xff] }
 0x3d4   : > { %v1128_v7 = vsel %vm992_vm11, %v1127_v11, %v1123_v24  ;;  %v5558_v11 = vld [vmem:[#allocation58_spill] sm:$0xff] }
 0x3d5   : > { %v1142_v17 = vsel %vm936_vm9, %v1128_v7, %v1141_v26 }
 0x3d6   : > { %1147 = vst.msk [vmem:[#allocation2 + $0xb] sm:$0xff] %vm1145_vm12, %v1142_v17  ;;  %v5561_v17 = vld [vmem:[#allocation57_spill] sm:$0xff] }
 0x3d9   : > { %v4091_v25 = vld [vmem:[#allocation2] sm:$0xff] }
 0x3da   : > { %5533 = vst [vmem:[#allocation63_spill] sm:$0xff] %v4091_v25  ;;  %v1295_v55 = vmul.f32 %v3684_v32, %v4091_v25  ;;  %v4098_v9 = vmul.f32 %v3720_v14, %v4091_v25  ;;  %v4102_v40 = vmul.f32 %v3698_v33, %v4091_v25  ;;  %v4106_v35 = vmul.f32 %v3718_v36, %v4091_v25 }
 0x3db   : > { %v4110_v1 = vmul.f32 %v3736_v38, %v4091_v25  ;;  %v4114_v8 = vmul.f32 %v3734_v12, %v4091_v25  ;;  %v4118_v30 = vmul.f32 %v3758_v2, %v4091_v25  ;;  %v1484_v42 = vmul.f32 %v3774_v46, %v4091_v25 }
 0x3dc   : > { %1299 = vrot.lane.b32.xlu0 %v1295_v55, %s3108_s26  ;;  %5534 = vst [vmem:[#allocation64_spill] sm:$0xff] %v4102_v40  ;;  %5535 = vst [vmem:[#allocation65_spill] sm:$0xff] %v4106_v35  ;;  %v4126_v56 = vmul.f32 %v3756_v44, %v4091_v25  ;;  %v4130_v27 = vmul.f32 %v3772_v51, %v4091_v25  ;;  %v4134_v18 = vmul.f32 %v3796_v31, %v4091_v25  ;;  %v5595_v40 = vld [vmem:[#allocation62_spill] sm:$0xff] }
 0x3dd   : > { %5536 = vst [vmem:[#allocation66_spill] sm:$0xff] %v4110_v1  ;;  %5537 = vst [vmem:[#allocation67_spill] sm:$0xff] %v4114_v8  ;;  %v4122_v37 = vld [vmem:[#allocation2 + $0x8] sm:$0xff]  ;;  %v4138_v58 = vmul.f32 %v3794_v52, %v4091_v25  ;;  %v4142_v29 = vmul.f32 %v3812_v54, %v4091_v25  ;;  %v1673_v53 = vmul.f32 %v3832_v57, %v4091_v25 }
 0x3de   : > { %5538 = vst [vmem:[#allocation68_spill] sm:$0xff] %v4118_v30  ;;  %5539 = vst [vmem:[#allocation69_spill] sm:$0xff] %v4122_v37  ;;  %v4148_v28 = vmul.f32 %v3870_v62, %v4091_v25  ;;  %v4152_v19 = vmul.f32 %v3862_v3, %v4091_v25  ;;  %v4156_v47 = vmul.f32 %v3868_v61, %v4091_v25  ;;  %v5589_v30 = vld [vmem:[#allocation60_spill] sm:$0xff]  ;;  %v5592_v8 = vld [vmem:[#allocation59_spill] sm:$0xff] }
 0x3df   : > { %5540 = vst [vmem:[#allocation70_spill] sm:$0xff] %v4126_v56  ;;  %5541 = vst [vmem:[#allocation71_spill] sm:$0xff] %v4130_v27  ;;  %v4160_v59 = vmul.f32 %v3878_v0, %v4091_v25  ;;  %v4164_v10 = vmul.f32 %v3876_v63, %v4091_v25  ;;  %v1296_v21 = vmul.f32 %v3684_v32, %v4122_v37 }
 0x3e0   : > { %5542 = vst [vmem:[#allocation72_spill] sm:$0xff] %v4134_v18  ;;  %5543 = vst [vmem:[#allocation73_spill] sm:$0xff] %v4138_v58  ;;  %v4170_v6 = vmul.f32 %v3884_v20, %v4091_v25  ;;  %v4174_v41 = vmul.f32 %v3882_v15, %v4091_v25  ;;  %v4178_v49 = vmul.f32 %v3890_v22, %v4091_v25  ;;  %v5565_v58 = vld [vmem:[#allocation59_spill] sm:$0xff]  ;;  %v5587_v18 = vld [vmem:[#allocation57_spill] sm:$0xff] }
 0x3e1   : > { %5544 = vst [vmem:[#allocation74_spill] sm:$0xff] %v4142_v29  ;;  %5545 = vst [vmem:[#allocation75_spill] sm:$0xff] %v4152_v19  ;;  %v4182_v34 = vmul.f32 %v3892_v16, %v4091_v25  ;;  %v4186_v4 = vmul.f32 %v3898_v48, %v4091_v25  ;;  %v4190_v32 = vmul.f32 %v3896_v39, %v4091_v25  ;;  %1301 = vrot.lane.b32.xlu1 %v1296_v21, %s3108_s26  ;;  %v5563_v21 = vld [vmem:[#allocation60_spill] sm:$0xff]  ;;  %v5585_v19 = vld [vmem:[#allocation55_spill] sm:$0xff] }
 0x3e2   : > { %5546 = vst [vmem:[#allocation76_spill] sm:$0xff] %v4156_v47  ;;  %5547 = vst [vmem:[#allocation77_spill] sm:$0xff] %v4160_v59  ;;  %v4194_v23 = vmul.f32 %v3906_v43, %v4091_v25  ;;  %v4198_v5 = vmul.f32 %v3904_v50, %v4091_v25  ;;  %v4203_v60 = vmul.f32 %v5556_v13, %v4091_v25  ;;  %v5567_v50 = vld [vmem:[#allocation62_spill] sm:$0xff]  ;;  %v5584_v59 = vld [vmem:[#allocation56_spill] sm:$0xff] }
 0x3e3   : > { %5548 = vst [vmem:[#allocation78_spill] sm:$0xff] %v4164_v10  ;;  %5549 = vst [vmem:[#allocation79_spill] sm:$0xff] %v4170_v6  ;;  %v4207_v24 = vmul.f32 %v5558_v11, %v4091_v25  ;;  %v4211_v26 = vmul.f32 %v5559_v45, %v4091_v25  ;;  %v1485_v7 = vmul.f32 %v3774_v46, %v4122_v37  ;;  %v5569_v45 = vld [vmem:[#allocation61_spill] sm:$0xff] }
 0x3e4   : > { %5550 = vst [vmem:[#allocation80_spill] sm:$0xff] %v4174_v41  ;;  %5551 = vst [vmem:[#allocation81_spill] sm:$0xff] %v4182_v34  ;;  %v4217_v55 = vmul.f32 %v5561_v17, %v4091_v25  ;;  %v4221_v29 = vmul.f32 %v5563_v21, %v4091_v25  ;;  %v4225_v13 = vmul.f32 %v5565_v58, %v4091_v25  ;;  %v4257_v17 = vld [vmem:[#allocation2 + $0x10] sm:$0x3f]  ;;  %v5583_v6 = vld [vmem:[#allocation53_spill] sm:$0xff] }
 0x3e5   : > { %5552 = vst [vmem:[#allocation82_spill] sm:$0xff] %v4186_v4  ;;  %5553 = vst [vmem:[#allocation83_spill] sm:$0xff] %v4190_v32  ;;  %v4229_v43 = vmul.f32 %v5567_v50, %v4091_v25  ;;  %v4233_v39 = vmul.f32 %v5569_v45, %v4091_v25  ;;  %1490 = vrot.lane.b32.xlu0 %v1485_v7, %s3109_s8  ;;  %1488 = vrot.lane.b32.xlu1 %v1484_v42, %s3109_s8 }
 0x3e6   : > { %5554 = vst [vmem:[#allocation84_spill] sm:$0xff] %v4194_v23  ;;  %5555 = vst [vmem:[#allocation85_spill] sm:$0xff] %v4198_v5  ;;  %v1674_v50 = vmul.f32 %v3832_v57, %v4122_v37  ;;  %v4272_v58 = vmul.f32 %v3720_v14, %v4122_v37  ;;  %v4276_v7 = vmul.f32 %v3720_v14, %v4257_v17 }
 0x3e7   : > { %5557 = vst [vmem:[#allocation86_spill] sm:$0xff] %v4203_v60  ;;  %5560 = vst [vmem:[#allocation58_spill] sm:$0xff] %v4211_v26  ;;  %v4282_v25 = vmul.f32 %v3698_v33, %v4122_v37  ;;  %v4286_v16 = vmul.f32 %v3698_v33, %v4257_v17  ;;  %v4294_v46 = vmul.f32 %v3718_v36, %v4257_v17 }
 0x3e8   : > { %5562 = vst [vmem:[#allocation87_spill] sm:$0xff] %v4217_v55  ;;  %5564 = vst [vmem:[#allocation88_spill] sm:$0xff] %v4221_v29  ;;  %v4300_v14 = vmul.f32 %v3736_v38, %v4122_v37  ;;  %v4304_v33 = vmul.f32 %v3736_v38, %v4257_v17  ;;  %v4321_v42 = vmul.f32 %v3758_v2, %v4257_v17 }
 0x3e9   : > { %5566 = vst [vmem:[#allocation89_spill] sm:$0xff] %v4225_v13  ;;  %5568 = vst [vmem:[#allocation90_spill] sm:$0xff] %v4229_v43  ;;  %1677 = vrot.lane.b32.xlu0 %v1673_v53, %s3110_s22  ;;  %1679 = vrot.lane.b32.xlu1 %v1674_v50, %s3110_s22  ;;  %v1863_v50 = vmul.f32 %v3870_v62, %v4122_v37  ;;  %v4290_v53 = vmul.f32 %v3718_v36, %v4122_v37  ;;  %v5577_v13 = vld [vmem:[#allocation49_spill] sm:$0xff] }
 0x3ea   : > { %5570 = vst [vmem:[#allocation61_spill] sm:$0xff] %v4233_v39  ;;  %v4308_v62 = vmul.f32 %v3734_v12, %v4122_v37  ;;  %v4312_v36 = vmul.f32 %v3734_v12, %v4257_v17  ;;  %v4325_v38 = vmul.f32 %v3756_v44, %v4122_v37  ;;  %v4329_v57 = vmul.f32 %v3756_v44, %v4257_v17 }
 0x3eb   : > { %v4333_v12 = vmul.f32 %v3772_v51, %v4122_v37  ;;  %v2052_v21 = vmul.f32 %v3890_v22, %v4122_v37  ;;  %v4347_v48 = vmul.f32 %v3796_v31, %v4257_v17  ;;  %v4351_v44 = vmul.f32 %v3794_v52, %v4122_v37  ;;  %v5575_v22 = vld [vmem:[#allocation47_spill] sm:$0xff] }
 0x3ec   : > { %v4355_v39 = vmul.f32 %v3794_v52, %v4257_v17  ;;  %v4369_v43 = vmul.f32 %v5575_v22, %v4122_v37  ;;  %v4373_v52 = vmul.f32 %v5575_v22, %v4257_v17  ;;  %v4377_v29 = vmul.f32 %v5577_v13, %v4122_v37 }
 0x3ed   : > { %1866 = vrot.lane.b32.xlu0 %v4148_v28, %s3111_s29  ;;  %1868 = vrot.lane.b32.xlu1 %v1863_v50, %s3111_s29  ;;  %v4317_v28 = vmul.f32 %v3758_v2, %v4122_v37  ;;  %v4337_v50 = vmul.f32 %v3772_v51, %v4257_v17  ;;  %v4341_v2 = vmul.f32 %v3796_v31, %v4122_v37 }
 0x3ee   : > { %5571 = vst [vmem:[#allocation91_spill] sm:$0xff] %v4351_v44  ;;  %5572 = vst [vmem:[#allocation92_spill] sm:$0xff] %v4355_v39  ;;  %v4359_v51 = vmul.f32 %v3812_v54, %v4122_v37  ;;  %v4365_v31 = vmul.f32 %v3812_v54, %v4257_v17  ;;  %v4386_v54 = vmul.f32 %v3862_v3, %v4122_v37  ;;  %v5604_v39 = vld [vmem:[#allocation64_spill] sm:$0xff] }
 0x3ef   : > { %5576 = vst [vmem:[#allocation95_spill] sm:$0xff] %v4369_v43  ;;  %5578 = vst [vmem:[#allocation96_spill] sm:$0xff] %v4377_v29  ;;  %v4394_v22 = vmul.f32 %v3868_v61, %v4122_v37  ;;  %v4412_v55 = vmul.f32 %v3876_v63, %v4122_v37  ;;  %v4416_v26 = vmul.f32 %v3876_v63, %v4257_v17 }
 0x3f0   : > { %5573 = vst [vmem:[#allocation93_spill] sm:$0xff] %v4359_v51  ;;  %5574 = vst [vmem:[#allocation94_spill] sm:$0xff] %v4365_v31  ;;  %v4390_v31 = vmul.f32 %v3862_v3, %v4257_v17  ;;  %v4398_v51 = vmul.f32 %v3868_v61, %v4257_v17  ;;  %v2241_v3 = vmul.f32 %v5558_v11, %v4122_v37  ;;  %v5579_v11 = vld [vmem:[#allocation50_spill] sm:$0xff] }
 0x3f1   : > { %2055 = vrot.lane.b32.xlu0 %v4178_v49, %s3112_s30  ;;  %2057 = vrot.lane.b32.xlu1 %v2052_v21, %s3112_s30  ;;  %v4382_v49 = vmul.f32 %v5577_v13, %v4257_v17  ;;  %v4402_v21 = vmul.f32 %v3878_v0, %v4122_v37  ;;  %v4406_v13 = vmul.f32 %v3878_v0, %v4257_v17 }
 0x3f2   : > { %v4420_v61 = vmul.f32 %v3884_v20, %v4122_v37  ;;  %v4424_v60 = vmul.f32 %v3884_v20, %v4257_v17  ;;  %v4430_v0 = vmul.f32 %v3882_v15, %v4122_v37  ;;  %v4434_v63 = vmul.f32 %v3882_v15, %v4257_v17  ;;  %v5581_v15 = vld [vmem:[#allocation51_spill] sm:$0xff] }
 0x3f3   : > { %v4438_v5 = vmul.f32 %v5579_v11, %v4122_v37  ;;  %v4442_v20 = vmul.f32 %v5579_v11, %v4257_v17  ;;  %v4455_v4 = vmul.f32 %v5581_v15, %v4122_v37  ;;  %v4459_v34 = vmul.f32 %v5581_v15, %v4257_v17  ;;  %v5582_v11 = vld [vmem:[#allocation54_spill] sm:$0xff] }
 0x3f4   : > { %v4463_v41 = vmul.f32 %v5582_v11, %v4122_v37  ;;  %v4475_v10 = vmul.f32 %v5583_v6, %v4257_v17  ;;  %v4479_v15 = vmul.f32 %v5584_v59, %v4122_v37  ;;  %v4483_v47 = vmul.f32 %v5584_v59, %v4257_v17 }
 0x3f5   : > { %2244 = vrot.lane.b32.xlu0 %v4207_v24, %s3113_s5  ;;  %2246 = vrot.lane.b32.xlu1 %v2241_v3, %s3113_s5  ;;  %v5580_v24 = vld [vmem:[#allocation52_spill] sm:$0xff]  ;;  %v4467_v3 = vmul.f32 %v5582_v11, %v4257_v17  ;;  %v4487_v11 = vmul.f32 %v5585_v19, %v4122_v37  ;;  %v4491_v27 = vmul.f32 %v5585_v19, %v4257_v17 }
 0x3f6   : > { %v4447_v23 = vmul.f32 %v5580_v24, %v4122_v37  ;;  %v4451_v32 = vmul.f32 %v5580_v24, %v4257_v17  ;;  %v4471_v24 = vmul.f32 %v5583_v6, %v4122_v37  ;;  %v4495_v6 = vmul.f32 %v5587_v18, %v4122_v37 }
 0x3f7   : > { %5586 = vst [vmem:[#allocation50_spill] sm:$0xff] %v4491_v27  ;;  %v4499_v56 = vmul.f32 %v5587_v18, %v4257_v17  ;;  %v4503_v59 = vmul.f32 %v5589_v30, %v4122_v37  ;;  %v4507_v1 = vmul.f32 %v5589_v30, %v4257_v17  ;;  %v4511_v19 = vmul.f32 %v5592_v8, %v4122_v37 }
 0x3f8   : > { %v4515_v35 = vmul.f32 %v5592_v8, %v4257_v17  ;;  %v4519_v18 = vmul.f32 %v5595_v40, %v4122_v37  ;;  %v4527_v30 = vmul.f32 %v5569_v45, %v4122_v37  ;;  %v1323_v8 = vrot.slane %v4272_v58, 1 }
 0x3f9   : > { %5588 = vst [vmem:[#allocation52_spill] sm:$0xff] %v4499_v56  ;;  %5590 = vst [vmem:[#allocation51_spill] sm:$0xff] %v4503_v59  ;;  %v4523_v56 = vmul.f32 %v5595_v40, %v4257_v17  ;;  %v1843_v40 = vrot.slane %v4382_v49, 6  ;;  %v5599_v37 = vrot.slane %v4098_v9, 1  ;;  %v5686_v58 = vrot.slane %v4430_v0, 6 }
 0x3fa   : > { %5591 = vst [vmem:[#allocation54_spill] sm:$0xff] %v4507_v1  ;;  %5593 = vst [vmem:[#allocation53_spill] sm:$0xff] %v4511_v19  ;;  %v4531_v19 = vmul.f32 %v5569_v45, %v4257_v17  ;;  %v5601_v45 = vmov %v4503_v59 }
 0x3fb   : > { %5594 = vst [vmem:[#allocation56_spill] sm:$0xff] %v4515_v35  ;;  %5596 = vst [vmem:[#allocation55_spill] sm:$0xff] %v4519_v18  ;;  %v1325_v35 = vrot.slane %v4276_v7, 1  ;;  %v1353_v18 = vrot.slane %v4286_v16, 2  ;;  %v1324_v16 = vsel %vm1171_vm13, %v5599_v37, %v1323_v8  ;;  %v5603_v7 = vrot.slane %v4282_v25, 2 }
 0x3fc   : > { %5597 = vst [vmem:[#allocation57_spill] sm:$0xff] %v4523_v56  ;;  %5598 = vst [vmem:[#allocation60_spill] sm:$0xff] %v4527_v30  ;;  %1327 = vrot.lane.b32.xlu1 %v1324_v16, %s3108_s26  ;;  %v5609_v56 = vrot.slane %v4294_v46, 3  ;;  %v5610_v16 = vrot.slane %v4290_v53, 3  ;;  %v5612_v25 = vrot.slane %v4300_v14, 4  ;;  %v5616_v46 = vrot.slane %v4308_v62, 5 }
 0x3fd   : > { %v1326_v1 = vsel %vm1171_vm13, %v1323_v8, %v1325_v35  ;;  %v5605_v35 = vrot.slane %v5604_v39, 2  ;;  %v5606_v37 = vmov %v5603_v7  ;;  %v5611_v39 = vrot.slane %v4304_v33, 4  ;;  %v5617_v30 = vld [vmem:[#allocation67_spill] sm:$0xff]  ;;  %v5628_v14 = vld [vmem:[#allocation70_spill] sm:$0xff] }
 0x3fe   : > { %1329 = vrot.lane.b32.xlu0 %v1326_v1, %s3108_s26  ;;  %v1354_v8 = vsel %vm1192_vm14, %v5606_v37, %v1353_v18  ;;  %v1382_v1 = vsel %vm1213_vm15, %v5610_v16, %v5609_v56  ;;  %v5618_v59 = vrot.slane %v5617_v30, 5  ;;  %v5633_v62 = vrot.slane %v4333_v12, 2 }
 0x3ff   : > { %v1352_v9 = vsel %vm1192_vm14, %v5605_v35, %v5603_v7  ;;  %v1410_v18 = vsel %vm1234_vm0, %v5612_v25, %v5611_v39  ;;  %v5613_v7 = vmov %v5610_v16  ;;  %v5614_v35 = vld [vmem:[#allocation65_spill] sm:$0xff]  ;;  %v5620_v16 = vld [vmem:[#allocation66_spill] sm:$0xff]  ;;  %v5622_v39 = vrot.slane %v4317_v28, 6  ;;  %v5637_v28 = vld [vmem:[#allocation72_spill] sm:$0xff] }
 0x400   : > { %v5600_v49 = vld [vmem:[#allocation52_spill] sm:$0xff]  ;;  %1357 = vrot.lane.b32.xlu1 %v1354_v8, %s3108_s26  ;;  %v5615_v37 = vrot.slane %v5614_v35, 3  ;;  %v1436_v56 = vsel %vm1255_vm1, %v5618_v59, %v5616_v46  ;;  %v5619_v8 = vmov %v5612_v25  ;;  %v5621_v33 = vrot.slane %v5620_v16, 4 }
 0x401   : > { %v5607_v44 = vld [vmem:[#allocation53_spill] sm:$0xff]  ;;  %v5623_v25 = vld [vmem:[#allocation68_spill] sm:$0xff]  ;;  %v5627_v59 = vrot.slane %v4325_v38, 1  ;;  %v5646_v12 = vrot.slane %v4373_v52, 5  ;;  %v2781_v52 = vld [vmem:[%s5360_s3 + $0x7] ss:$0 sm:$0xff] }
 0x402   : > { %1355 = vrot.lane.b32.xlu0 %v1352_v9, %s3108_s26  ;;  %v1380_v9 = vsel %vm1213_vm15, %v5615_v37, %v5613_v7  ;;  %v1408_v27 = vsel %vm1234_vm0, %v5621_v33, %v5619_v8  ;;  %v5624_v53 = vrot.slane %v5623_v25, 6  ;;  %v5625_v7 = vrot.slane %v4312_v36, 5 }
 0x403   : > { %v5626_v37 = vmov %v5616_v46  ;;  %v5629_v46 = vrot.slane %v5628_v14, 1  ;;  %v5630_v8 = vrot.slane %v4321_v42, 6  ;;  %v5631_v33 = vmov %v5622_v39 }
 0x404   : > { %v4635_v35 = vsel %vm1276_vm2, %v5624_v53, %v5622_v39  ;;  %v1438_v30 = vsel %vm1255_vm1, %v5626_v37, %v5625_v7  ;;  %v5632_v36 = vrot.slane %v4337_v50, 2  ;;  %v5634_v53 = vrot.slane %v4329_v57, 1  ;;  %1383 = vrot.lane.b32.xlu1 %v1380_v9, %s3108_s26  ;;  %v2782_v9 = vld [vmem:[%s5360_s3 + $0xe] ss:$0 sm:$0xff] }
 0x405   : > { %v4647_v16 = vsel %vm1171_vm13, %v5629_v46, %v5627_v59  ;;  %v4654_v39 = vsel %vm1276_vm2, %v5631_v33, %v5630_v8  ;;  %v5635_v7 = vmov %v5627_v59  ;;  %v5636_v42 = vrot.slane %v4341_v2, 3  ;;  %v5640_v46 = vld [vmem:[#allocation71_spill] sm:$0xff] }
 0x406   : > { %v4661_v25 = vsel %vm1192_vm14, %v5633_v62, %v5632_v36  ;;  %v4668_v37 = vsel %vm1171_vm13, %v5635_v7, %v5634_v53  ;;  %v5638_v59 = vrot.slane %v5637_v28, 3  ;;  %v5639_v50 = vmov %v5633_v62  ;;  %v4694_v62 = vld [vmem:[%s5360_s3] ss:$0 sm:$0xff]  ;;  %1385 = vrot.lane.b32.xlu0 %v1382_v1, %s3108_s26  ;;  %v5650_v28 = vld [vmem:[#allocation75_spill] sm:$0xff] }
 0x407   : > { %v5641_v8 = vrot.slane %v5640_v46, 2  ;;  %v5642_v57 = vrot.slane %v4347_v48, 3  ;;  %v5643_v38 = vmov %v5636_v42  ;;  %v5647_v48 = vrot.slane %v4369_v43, 5 }
 0x408   : > { %v4675_v14 = vsel %vm1213_vm15, %v5638_v59, %v5636_v42  ;;  %v5649_v42 = vrot.slane %v4386_v54, 1  ;;  %v5651_v59 = vrot.slane %v5650_v28, 1  ;;  %v5653_v46 = vrot.slane %v4377_v29, 6  ;;  %1411 = vrot.lane.b32.xlu1 %v1408_v27, %s3108_s26 }
 0x409   : > { %v4682_v33 = vsel %vm1192_vm14, %v5641_v8, %v5639_v50  ;;  %v4689_v36 = vsel %vm1213_vm15, %v5643_v38, %v5642_v57  ;;  %v4704_v2 = vsel %vm1255_vm1, %v5647_v48, %v5646_v12  ;;  %v5655_v8 = vrot.slane %v4394_v22, 2  ;;  %v5656_v57 = vld [vmem:[#allocation76_spill] sm:$0xff] }
 0x40a   : > { %5644 = vst [vmem:[#allocation59_spill] sm:$0xff] %v4689_v36  ;;  %5648 = vst [vmem:[#allocation62_spill] sm:$0xff] %v4704_v2  ;;  %v4711_v50 = vsel %vm1171_vm13, %v5651_v59, %v5649_v42  ;;  %v4716_v1 = vsel %vm1276_vm2, %v5653_v46, %v1843_v40  ;;  %v5657_v38 = vrot.slane %v5656_v57, 2  ;;  %v5659_v48 = vrot.slane %v4390_v31, 1  ;;  %v5663_v59 = vld [vmem:[#allocation77_spill] sm:$0xff]  ;;  %1413 = vrot.lane.b32.xlu0 %v1410_v18, %s3108_s26 }
 0x40b   : > { %5652 = vst [vmem:[#allocation52_spill] sm:$0xff] %v4711_v50  ;;  %5654 = vst [vmem:[#allocation51_spill] sm:$0xff] %v4716_v1  ;;  %v5660_v40 = vmov %v5649_v42  ;;  %v5662_v28 = vrot.slane %v4402_v21, 3  ;;  %v5664_v46 = vrot.slane %v5663_v59, 3  ;;  %v5666_v50 = vrot.slane %v4398_v51, 2  ;;  %v5677_v59 = vld [vmem:[#allocation79_spill] sm:$0xff] }
 0x40c   : > { %v4729_v12 = vsel %vm1192_vm14, %v5657_v38, %v5655_v8  ;;  %v4736_v42 = vsel %vm1171_vm13, %v5660_v40, %v5659_v48  ;;  %v5667_v57 = vmov %v5655_v8  ;;  %v2783_v31 = vld [vmem:[%s5360_s3 + $0x15] ss:$0 sm:$0xff]  ;;  %v5669_v54 = vrot.slane %v4412_v55, 4  ;;  %v5670_v38 = vld [vmem:[#allocation78_spill] sm:$0xff]  ;;  %1441 = vrot.lane.b32.xlu1 %v1438_v30, %s3108_s26 }
 0x40d   : > { %5658 = vst [vmem:[#allocation64_spill] sm:$0xff] %v4729_v12  ;;  %5661 = vst [vmem:[#allocation53_spill] sm:$0xff] %v4736_v42  ;;  %v4743_v7 = vsel %vm1213_vm15, %v5664_v46, %v5662_v28  ;;  %v4750_v8 = vsel %vm1192_vm14, %v5667_v57, %v5666_v50  ;;  %v5671_v48 = vrot.slane %v5670_v38, 4  ;;  %v5673_v28 = vrot.slane %v4406_v13, 3  ;;  %v2784_v13 = vld [vmem:[%s5360_s3 + $0x1c] ss:$0 sm:$0xff] }
 0x40e   : > { %5665 = vst [vmem:[#allocation65_spill] sm:$0xff] %v4743_v7  ;;  %5668 = vst [vmem:[#allocation67_spill] sm:$0xff] %v4750_v8  ;;  %v5674_v51 = vrot.slane %v4402_v21, 3  ;;  %v5676_v50 = vrot.slane %v4420_v61, 5  ;;  %v5678_v46 = vrot.slane %v5677_v59, 5  ;;  %v5680_v7 = vrot.slane %v4416_v26, 4  ;;  %1439 = vrot.lane.b32.xlu0 %v1436_v56, %s3108_s26 }
 0x40f   : > { %v4760_v40 = vsel %vm1234_vm0, %v5671_v48, %v5669_v54  ;;  %v5681_v38 = vmov %v5669_v54  ;;  %v5683_v21 = vld [vmem:[#allocation63_spill] sm:$0xff]  ;;  %v5687_v56 = vld [vmem:[#allocation80_spill] sm:$0xff] }
 0x410   : > { %5672 = vst [vmem:[#allocation66_spill] sm:$0xff] %v4760_v40  ;;  %v4767_v22 = vsel %vm1213_vm15, %v5674_v51, %v5673_v28  ;;  %v4774_v57 = vsel %vm1255_vm1, %v5678_v46, %v5676_v50  ;;  %v4781_v54 = vsel %vm1234_vm0, %v5681_v38, %v5680_v7  ;;  %v1156_v48 = vmul.f32 %v4694_v62, %v5683_v21  ;;  %v5684_v51 = vld [vmem:[#allocation69_spill] sm:$0xff]  ;;  %v2786_v42 = vld [vmem:[%s5360_s3 + $0x2a] ss:$0 sm:$0xff] }
 0x411   : > { %5675 = vst [vmem:[#allocation68_spill] sm:$0xff] %v4767_v22  ;;  %5679 = vst [vmem:[#allocation70_spill] sm:$0xff] %v4774_v57  ;;  %v1165_v28 = vmul.f32 %v2781_v52, %v5683_v21  ;;  %v1166_v59 = vmul.f32 %v2781_v52, %v5684_v51  ;;  %v1186_v50 = vmul.f32 %v2782_v9, %v5683_v21  ;;  %v2785_v57 = vld [vmem:[%s5360_s3 + $0x23] ss:$0 sm:$0xff]  ;;  %v5688_v36 = vrot.slane %v5687_v56, 6 }
 0x412   : > { %5682 = vst [vmem:[#allocation72_spill] sm:$0xff] %v4781_v54  ;;  %v1187_v55 = vmul.f32 %v2782_v9, %v5684_v51  ;;  %v1207_v7 = vmul.f32 %v2783_v31, %v5683_v21  ;;  %v1208_v38 = vmul.f32 %v2783_v31, %v5684_v51  ;;  %v1228_v8 = vmul.f32 %v2784_v13, %v5683_v21 }
 0x413   : > { %v1172_v54 = vrot.slane %v1165_v28, 1  ;;  %v1173_v40 = vrot.slane %v1166_v59, 1  ;;  %v1193_v22 = vrot.slane %v1186_v50, 2  ;;  %v1229_v27 = vmul.f32 %v2784_v13, %v5684_v51  ;;  %1467 = vrot.lane.b32.xlu0 %v4635_v35, %s3108_s26  ;;  %1469 = vrot.lane.b32.xlu1 %v4654_v39, %s3108_s26  ;;  %s3114_s26 = smov 106  }
 0x414   : > { %v1194_v26 = vrot.slane %v1187_v55, 2  ;;  %v1214_v12 = vrot.slane %v1207_v7, 3  ;;  %v1215_v18 = vrot.slane %v1208_v38, 3  ;;  %v1235_v29 = vrot.slane %v1228_v8, 4 }
 0x415   : > { %v1174_v1 = vsel %vm1171_vm13, %v1172_v54, %v1173_v40  ;;  %v1249_v2 = vmul.f32 %v2785_v57, %v5683_v21  ;;  %v1250_v28 = vmul.f32 %v2785_v57, %v5684_v51  ;;  %v1236_v7 = vrot.slane %v1229_v27, 4 }
 0x416   : > { %v1179_v59 = vadd.f32 %v1174_v1, %v1156_v48  ;;  %v1195_v50 = vsel %vm1192_vm14, %v1193_v22, %v1194_v26  ;;  %v1216_v55 = vsel %vm1213_vm15, %v1214_v12, %v1215_v18  ;;  %v1270_v46 = vmul.f32 %v2786_v42, %v5683_v21 }
 0x417   : > { %v1256_v38 = vrot.slane %v1249_v2, 5  ;;  %v1257_v43 = vrot.slane %v1250_v28, 5  ;;  %v1271_v8 = vmul.f32 %v2786_v42, %v5684_v51  ;;  %v1237_v53 = vsel %vm1234_vm0, %v1235_v29, %v1236_v7  ;;  %v5691_v28 = vld [vmem:[#allocation60_spill] sm:$0xff]  ;;  %1516 = vrot.lane.b32.xlu0 %v4647_v16, %s3109_s8  ;;  %1518 = vrot.lane.b32.xlu1 %v4668_v37, %s3109_s8 }
 0x418   : > { %v1200_v54 = vadd.f32 %v1195_v50, %v1179_v59  ;;  %v4820_v30 = vsel %vm1276_vm2, %v5688_v36, %v5686_v58  ;;  %v5689_v1 = vrot.slane %v4424_v60, 5  ;;  %v5690_v12 = vrot.slane %v4420_v61, 5 }
 0x419   : > { %v1258_v22 = vsel %vm1255_vm1, %v1256_v38, %v1257_v43  ;;  %v1277_v48 = vrot.slane %v1270_v46, 6  ;;  %v1278_v27 = vrot.slane %v1271_v8, 6  ;;  %v1167_v29 = vmul.f32 %v2781_v52, %v4257_v17 }
 0x41a   : > { %v4827_v2 = vsel %vm1255_vm1, %v5690_v12, %v5689_v1  ;;  %v2408_v59 = vrot.slane %v5691_v28, 6  ;;  %v1221_v60 = vadd.f32 %v1216_v55, %v1200_v54  ;;  %v1188_v61 = vmul.f32 %v2782_v9, %v4257_v17 }
 0x41b   : > { %v1209_v58 = vmul.f32 %v2783_v31, %v4257_v17  ;;  %v1279_v36 = vsel %vm1276_vm2, %v1277_v48, %v1278_v27  ;;  %v1175_v50 = vrot.slane %v1167_v29, 1  ;;  %v1230_v46 = vmul.f32 %v2784_v13, %v4257_v17  ;;  %1546 = vrot.lane.b32.xlu0 %v4661_v25, %s3109_s8  ;;  %1544 = vrot.lane.b32.xlu1 %v4682_v33, %s3109_s8  ;;  %v5713_v25 = vld [vmem:[#allocation85_spill] sm:$0xff] }
 0x41c   : > { %v1251_v52 = vmul.f32 %v2785_v57, %v4257_v17  ;;  %v1242_v38 = vadd.f32 %v1237_v53, %v1221_v60  ;;  %v1196_v8 = vrot.slane %v1188_v61, 2  ;;  %v1272_v35 = vmul.f32 %v2786_v42, %v4257_v17 }
 0x41d   : > { %v1217_v56 = vrot.slane %v1209_v58, 3  ;;  %v1238_v1 = vrot.slane %v1230_v46, 4  ;;  %v1157_v39 = vmul.f32 %v4694_v62, %v5684_v51  ;;  %v1176_v9 = vsel %vm1171_vm13, %v1173_v40, %v1175_v50  ;;  %v5693_v40 = vld [vmem:[#allocation81_spill] sm:$0xff] }
 0x41e   : > { %v1259_v12 = vrot.slane %v1251_v52, 5  ;;  %v1263_v31 = vadd.f32 %v1258_v22, %v1242_v38  ;;  %v1280_v57 = vrot.slane %v1272_v35, 6  ;;  %v1197_v53 = vsel %vm1192_vm14, %v1194_v26, %v1196_v8  ;;  %v5708_v35 = vld [vmem:[#allocation84_spill] sm:$0xff] }
 0x41f   : > { %v1218_v13 = vsel %vm1213_vm15, %v1215_v18, %v1217_v56  ;;  %v1180_v42 = vadd.f32 %v1176_v9, %v1157_v39  ;;  %v1239_v55 = vsel %vm1234_vm0, %v1236_v7, %v1238_v1  ;;  %v5692_v62 = vrot.slane %v4438_v5, 1  ;;  %v5698_v7 = vld [vmem:[#allocation82_spill] sm:$0xff]  ;;  %1572 = vrot.lane.b32.xlu0 %v4675_v14, %s3109_s8 }
 0x420   : > { %v1260_v54 = vsel %vm1255_vm1, %v1257_v43, %v1259_v12  ;;  %v5694_v48 = vrot.slane %v5693_v40, 1  ;;  %v4860_v29 = vadd.f32 %v1279_v36, %v1263_v31  ;;  %v1281_v37 = vsel %vm1276_vm2, %v1278_v27, %v1280_v57 }
 0x421   : > { %v5695_v26 = vrot.slane %v4434_v63, 6  ;;  %v5696_v18 = vrot.slane %v4430_v0, 6  ;;  %v5697_v43 = vrot.slane %v4447_v23, 2  ;;  %v5699_v60 = vrot.slane %v5698_v7, 2  ;;  %v5703_v63 = vld [vmem:[#allocation83_spill] sm:$0xff] }
 0x422   : > { %v4858_v16 = vsel %vm1171_vm13, %v5694_v48, %v5692_v62  ;;  %v1201_v58 = vadd.f32 %v1197_v53, %v1180_v42  ;;  %v5700_v36 = vrot.slane %v4442_v20, 1  ;;  %v5701_v50 = vmov %v5692_v62 }
 0x423   : > { %v4868_v22 = vsel %vm1276_vm2, %v5696_v18, %v5695_v26  ;;  %v4875_v61 = vsel %vm1192_vm14, %v5699_v60, %v5697_v43  ;;  %v5702_v0 = vrot.slane %v4455_v4, 3  ;;  %v5704_v46 = vrot.slane %v5703_v63, 3  ;;  %v5718_v4 = vld [vmem:[#allocation86_spill] sm:$0xff] }
 0x424   : > { %v4882_v27 = vsel %vm1171_vm13, %v5701_v50, %v5700_v36  ;;  %v5705_v38 = vrot.slane %v4451_v32, 2  ;;  %v5706_v8 = vmov %v5697_v43  ;;  %v2410_v20 = vrot.slane %v4531_v19, 6 }
 0x425   : > { %v4889_v52 = vsel %vm1213_vm15, %v5704_v46, %v5702_v0  ;;  %v5707_v5 = vrot.slane %v4463_v41, 4  ;;  %v5709_v1 = vrot.slane %v5708_v35, 4  ;;  %v5710_v32 = vrot.slane %v4459_v34, 3  ;;  %v5723_v41 = vld [vmem:[#allocation58_spill] sm:$0xff] }
 0x426   : > { %v4896_v56 = vsel %vm1192_vm14, %v5706_v8, %v5705_v38  ;;  %v5711_v23 = vmov %v5702_v0  ;;  %v5712_v19 = vrot.slane %v4471_v24, 5  ;;  %v5714_v9 = vrot.slane %v5713_v25, 5  ;;  %v5728_v24 = vld [vmem:[#allocation87_spill] sm:$0xff]  ;;  %v5730_v0 = vld [vmem:[#allocation50_spill] sm:$0xff]  ;;  %v5734_v8 = vld [vmem:[#allocation88_spill] sm:$0xff] }
 0x427   : > { %v4908_v12 = vsel %vm1234_vm0, %v5709_v1, %v5707_v5  ;;  %v4915_v39 = vsel %vm1213_vm15, %v5711_v23, %v5710_v32  ;;  %v1222_v31 = vadd.f32 %v1218_v13, %v1201_v58  ;;  %v5715_v57 = vrot.slane %v4467_v3, 4 }
 0x428   : > { %v4922_v33 = vsel %vm1255_vm1, %v5714_v9, %v5712_v19  ;;  %v5716_v53 = vmov %v5707_v5  ;;  %v5717_v34 = vrot.slane %v4479_v15, 6  ;;  %v5719_v62 = vrot.slane %v5718_v4, 6  ;;  %v5741_v9 = vld [vmem:[#allocation73_spill] sm:$0xff]  ;;  %v5746_v4 = vld [vmem:[#allocation55_spill] sm:$0xff] }
 0x429   : > { %v4929_v42 = vsel %vm1234_vm0, %v5716_v53, %v5715_v57  ;;  %v5720_v48 = vrot.slane %v4475_v10, 5  ;;  %v5721_v26 = vmov %v5712_v19  ;;  %v5722_v3 = vrot.slane %v4487_v11, 1  ;;  %v5739_v19 = vld [vmem:[#allocation89_spill] sm:$0xff]  ;;  %v5742_v57 = vld [vmem:[#allocation59_spill] sm:$0xff] }
 0x42a   : > { %v4936_v40 = vsel %vm1276_vm2, %v5719_v62, %v5717_v34  ;;  %v5724_v18 = vrot.slane %v5723_v41, 1  ;;  %v5725_v7 = vrot.slane %v4483_v47, 6  ;;  %v5726_v60 = vmov %v5717_v34  ;;  %1574 = vrot.lane.b32.xlu1 %v5742_v57, %s3109_s8  ;;  %v5750_v41 = vld [vmem:[#allocation56_spill] sm:$0xff] }
 0x42b   : > { %v4943_v13 = vsel %vm1255_vm1, %v5721_v26, %v5720_v48  ;;  %v5727_v10 = vrot.slane %v4495_v6, 2  ;;  %v5729_v36 = vrot.slane %v5728_v24, 2  ;;  %v5731_v63 = vrot.slane %v5730_v0, 1  ;;  %v5748_v48 = vld [vmem:[#allocation90_spill] sm:$0xff] }
 0x42c   : > { %v4950_v43 = vsel %vm1171_vm13, %v5724_v18, %v5722_v3  ;;  %v4957_v58 = vsel %vm1276_vm2, %v5726_v60, %v5725_v7  ;;  %v5732_v46 = vmov %v5722_v3  ;;  %v1243_v47 = vadd.f32 %v1239_v55, %v1222_v31 }
 0x42d   : > { %v4964_v50 = vsel %vm1192_vm14, %v5729_v36, %v5727_v10  ;;  %v4971_v38 = vsel %vm1171_vm13, %v5732_v46, %v5731_v63  ;;  %v5733_v15 = vrot.slane %v5601_v45, 3  ;;  %v5735_v5 = vrot.slane %v5734_v8, 3  ;;  %v5753_v45 = vld [vmem:[#allocation61_spill] sm:$0xff] }
 0x42e   : > { %v5736_v1 = vrot.slane %v5600_v49, 2  ;;  %v5737_v32 = vmov %v5727_v10  ;;  %v5738_v11 = vrot.slane %v5607_v44, 4  ;;  %v5740_v25 = vrot.slane %v5739_v19, 4  ;;  %v5743_v49 = vld [vmem:[#allocation54_spill] sm:$0xff]  ;;  %v5755_v36 = vld [vmem:[#allocation57_spill] sm:$0xff] }
 0x42f   : > { %v4978_v35 = vsel %vm1213_vm15, %v5735_v5, %v5733_v15  ;;  %v1595_v31 = vrot.slane %v5741_v9, 4  ;;  %v5744_v6 = vrot.slane %v5743_v49, 3  ;;  %v5745_v53 = vmov %v5733_v15  ;;  %v5759_v8 = vld [vmem:[#allocation93_spill] sm:$0xff]  ;;  %v5763_v9 = vld [vmem:[#allocation92_spill] sm:$0xff] }
 0x430   : > { %v4985_v23 = vsel %vm1192_vm14, %v5737_v32, %v5736_v1  ;;  %v4992_v55 = vsel %vm1234_vm0, %v5740_v25, %v5738_v11  ;;  %v5747_v62 = vrot.slane %v5746_v4, 5  ;;  %v5749_v26 = vrot.slane %v5748_v48, 5  ;;  %v5760_v1 = vld [vmem:[#allocation94_spill] sm:$0xff] }
 0x431   : > { %v5004_v34 = vsel %vm1213_vm15, %v5745_v53, %v5744_v6  ;;  %v5751_v18 = vrot.slane %v5750_v41, 4  ;;  %v5752_v14 = vmov %v5738_v11  ;;  %v1264_v60 = vadd.f32 %v1260_v54, %v1243_v47  ;;  %v5758_v54 = vld [vmem:[#allocation37_spill] sm:$0xff]  ;;  %v5761_v11 = vld [vmem:[#allocation91_spill] sm:$0xff]  ;;  %v5766_v6 = vld [vmem:[#allocation74_spill] sm:$0xff] }
 0x432   : > { %v5011_v3 = vsel %vm1255_vm1, %v5749_v26, %v5747_v62  ;;  %v5754_v10 = vrot.slane %v5753_v45, 6  ;;  %v5756_v0 = vrot.slane %v5755_v36, 5  ;;  %v5757_v63 = vmov %v5747_v62  ;;  %v5767_v4 = vld [vmem:[#allocation42_spill] sm:$0xff] }
 0x433   : > { %v5018_v7 = vsel %vm1234_vm0, %v5752_v14, %v5751_v18  ;;  %v5037_v44 = vsel %vm1276_vm2, %v2408_v59, %v2410_v20  ;;  %v1646_v47 = vmul.f32 %v5758_v54, %v5684_v51  ;;  %v1647_v15 = vmul.f32 %v5758_v54, %v4257_v17 }
 0x434   : > { %v5025_v24 = vsel %vm1276_vm2, %v5754_v10, %v2408_v59  ;;  %v5032_v46 = vsel %vm1255_vm1, %v5757_v63, %v5756_v0  ;;  %v1624_v5 = vrot.slane %v5759_v8, 5  ;;  %v1626_v32 = vrot.slane %v5760_v1, 5  ;;  %v5769_v8 = vld [vmem:[#allocation45_spill] sm:$0xff] }
 0x435   : > { %v5762_v19 = vrot.slane %v5761_v11, 4  ;;  %v5764_v57 = vrot.slane %v5763_v9, 4  ;;  %v5053_v20 = vadd.f32 %v1281_v37, %v1264_v60  ;;  %v1645_v49 = vmul.f32 %v5758_v54, %v5683_v21  ;;  %v5768_v60 = vld [vmem:[#allocation46_spill] sm:$0xff] }
 0x436   : > { %v1623_v53 = vrot.slane %v5766_v6, 5  ;;  %v1696_v62 = vmul.f32 %v5767_v4, %v4257_v17  ;;  %v1652_v48 = vrot.slane %v1646_v47, 6  ;;  %v1654_v26 = vrot.slane %v1647_v15, 6 }
 0x437   : > { %v1597_v25 = vsel %vm1234_vm0, %v1595_v31, %v5762_v19  ;;  %v5765_v28 = vmov %v5762_v19  ;;  %v1695_v31 = vmul.f32 %v5767_v4, %v5684_v51  ;;  %v1627_v41 = vsel %vm1255_vm1, %v1624_v5, %v1626_v32 }
 0x438   : > { %v1599_v59 = vsel %vm1234_vm0, %v5765_v28, %v5764_v57  ;;  %1600 = vrot.lane.b32.xlu0 %v1597_v25, %s3109_s8  ;;  %v1625_v37 = vsel %vm1255_vm1, %v1623_v53, %v1624_v5  ;;  %v1694_v18 = vmul.f32 %v5767_v4, %v5683_v21  ;;  %v1651_v14 = vrot.slane %v1645_v49, 6  ;;  %v5770_v28 = vld [vmem:[#allocation48_spill] sm:$0xff] }
 0x439   : > { %1602 = vrot.lane.b32.xlu1 %v1599_v59, %s3109_s8  ;;  %v1723_v45 = vmul.f32 %v5768_v60, %v5684_v51  ;;  %v1724_v10 = vmul.f32 %v5768_v60, %v4257_v17  ;;  %v1701_v36 = vrot.slane %v1695_v31, 1  ;;  %v1703_v0 = vrot.slane %v1696_v62, 1 }
 0x43a   : > { %v1653_v63 = vsel %vm1276_vm2, %v1651_v14, %v1652_v48  ;;  %v1655_v54 = vsel %vm1276_vm2, %v1652_v48, %v1654_v26  ;;  %v1722_v47 = vmul.f32 %v5768_v60, %v5683_v21  ;;  %v1700_v15 = vrot.slane %v1694_v18, 1 }
 0x43b   : > { %v1751_v5 = vmul.f32 %v5769_v8, %v5684_v51  ;;  %v1752_v1 = vmul.f32 %v5769_v8, %v4257_v17  ;;  %v1729_v32 = vrot.slane %v1723_v45, 2  ;;  %v1731_v11 = vrot.slane %v1724_v10, 2  ;;  %v5772_v10 = vld [vmem:[#allocation49_spill] sm:$0xff] }
 0x43c   : > { %1628 = vrot.lane.b32.xlu0 %v1625_v37, %s3109_s8  ;;  %v1702_v19 = vsel %vm1171_vm13, %v1700_v15, %v1701_v36  ;;  %v1704_v25 = vsel %vm1171_vm13, %v1701_v36, %v1703_v0  ;;  %v1750_v9 = vmul.f32 %v5769_v8, %v5683_v21  ;;  %v1728_v57 = vrot.slane %v1722_v47, 2  ;;  %v5775_v15 = vld [vmem:[#allocation62_spill] sm:$0xff] }
 0x43d   : > { %1630 = vrot.lane.b32.xlu1 %v1627_v41, %s3109_s8  ;;  %v1779_v59 = vmul.f32 %v5770_v28, %v5684_v51  ;;  %v1780_v49 = vmul.f32 %v5770_v28, %v4257_v17  ;;  %v1757_v6 = vrot.slane %v1751_v5, 3  ;;  %v1759_v53 = vrot.slane %v1752_v1, 3  ;;  %v5771_v41 = vld [vmem:[#allocation47_spill] sm:$0xff]  ;;  %v5776_v5 = vld [vmem:[#allocation96_spill] sm:$0xff] }
 0x43e   : > { %v1730_v4 = vsel %vm1192_vm14, %v1728_v57, %v1729_v32  ;;  %v1732_v31 = vsel %vm1192_vm14, %v1729_v32, %v1731_v11  ;;  %v1778_v62 = vmul.f32 %v5770_v28, %v5683_v21  ;;  %v1756_v48 = vrot.slane %v1750_v9, 3  ;;  %v5778_v11 = vld [vmem:[#allocation51_spill] sm:$0xff] }
 0x43f   : > { %v1785_v26 = vrot.slane %v1779_v59, 4  ;;  %v1787_v37 = vrot.slane %v1780_v49, 4  ;;  %v1760_v17 = vsel %vm1213_vm15, %v1757_v6, %v1759_v53  ;;  %v1806_v18 = vmul.f32 %v5771_v41, %v5683_v21  ;;  %v5782_v9 = vld [vmem:[#allocation67_spill] sm:$0xff]  ;;  %v5783_v59 = vld [vmem:[#allocation65_spill] sm:$0xff]  ;;  %v5784_v49 = vld [vmem:[#allocation68_spill] sm:$0xff] }
 0x440   : > { %1656 = vrot.lane.b32.xlu0 %v1653_v63, %s3109_s8  ;;  %v1758_v51 = vsel %vm1213_vm15, %v1756_v48, %v1757_v6  ;;  %v1784_v14 = vrot.slane %v1778_v62, 4  ;;  %v1834_v36 = vmul.f32 %v5772_v10, %v5683_v21  ;;  %v5773_v63 = vld [vmem:[#allocation95_spill] sm:$0xff]  ;;  %v5777_v1 = vrot.slane %v5776_v5, 6  ;;  %v5779_v21 = vld [vmem:[#allocation52_spill] sm:$0xff]  ;;  %v5785_v6 = vld [vmem:[#allocation66_spill] sm:$0xff] }
 0x441   : > { %1658 = vrot.lane.b32.xlu1 %v1655_v54, %s3109_s8  ;;  %v1788_v45 = vsel %vm1234_vm0, %v1785_v26, %v1787_v37  ;;  %v1812_v0 = vrot.slane %v1806_v18, 5  ;;  %v5774_v54 = vrot.slane %v5773_v63, 5  ;;  %v5786_v53 = vld [vmem:[#allocation72_spill] sm:$0xff]  ;;  %v5787_v62 = vld [vmem:[#allocation70_spill] sm:$0xff]  ;;  %s5244_s8 = scalar_lea.vmem [#allocation6], %s2776_s14  ;;  %s2837_s14 = sshll.u32 %s3164_s19, 12 }
 0x442   : > { %v1786_v60 = vsel %vm1234_vm0, %v1784_v14, %v1785_v26  ;;  %v1840_v8 = vrot.slane %v1834_v36, 6  ;;  %s2683_s19 = scalar_lea.sflag [#allocation5], %s3239_s13 }
 0x443   : > { %v1814_v47 = vsel %vm1255_vm1, %v1812_v0, %v5774_v54 }
 0x444   : > { %1705 = vrot.lane.b32.xlu0 %v1702_v19, %s3110_s22  ;;  %v1842_v32 = vsel %vm1276_vm2, %v1840_v8, %v5777_v1  ;;  %v5780_v19 = vld [vmem:[#allocation53_spill] sm:$0xff] }
 0x445   : > { %1707 = vrot.lane.b32.xlu1 %v1704_v25, %s3110_s22  ;;  %v5781_v25 = vld [vmem:[#allocation64_spill] sm:$0xff] }
 0x448   : > { %1733 = vrot.lane.b32.xlu0 %v1730_v4, %s3110_s22 }
 0x449   : > { %1735 = vrot.lane.b32.xlu1 %v1732_v31, %s3110_s22 }
 0x44c   : > { %1761 = vrot.lane.b32.xlu0 %v1758_v51, %s3110_s22 }
 0x44d   : > { %1763 = vrot.lane.b32.xlu1 %v1760_v17, %s3110_s22 }
 0x44e   : > { %v1300_v57 = vpop.permute.xlu0 %1299 }
 0x450   : > { %1789 = vrot.lane.b32.xlu0 %v1786_v60, %s3110_s22 }
 0x451   : > { %1791 = vrot.lane.b32.xlu1 %v1788_v45, %s3110_s22 }
 0x453   : > { %v5132_v28 = vpop.permute.xlu1 %1301 }
 0x454   : > { %1817 = vrot.lane.b32.xlu0 %v1814_v47, %s3110_s22 }
 0x455   : > { %1819 = vrot.lane.b32.xlu1 %v5775_v15, %s3110_s22 }
 0x457   : > { %v5142_v4 = vpop.permute.xlu0 %1490  ;;  %v5144_v31 = vpop.permute.xlu1 %1488 }
 0x458   : > { %1845 = vrot.lane.b32.xlu0 %v1842_v32, %s3110_s22 }
 0x459   : > { %1847 = vrot.lane.b32.xlu1 %v5778_v11, %s3110_s22  ;;  %s2696_s22 = sshll.u32 %s5244_s8, 4  ;;  %s5311_s22 = int_to_ptr.vmem [resolvable:$true] %s2696_s22 }
 0x45a   : > { %s3030_s9 = scalar_lea.vmem %s5311_s22, 4096  ;;  %p3037_p5 = scmp.lt.s32.totalorder %s5311_s22, %s3035_s25 }
 0x45b   : > { %v5150_v48 = vpop.permute.xlu0 %1677  ;;  %v5152_v26 = vpop.permute.xlu1 %1679  ;;  %p3031_p10 = scmp.ne.s32.totalorder %s5311_s22, %s3030_s9  ;;  %p3038_p7 = scmp.lt.s32.totalorder %s3036_s20, %s3030_s9 }
 0x45c   : > { %1894 = vrot.lane.b32.xlu0 %v5779_v21, %s3111_s29 }
 0x45d   : > { %1896 = vrot.lane.b32.xlu1 %v5780_v19, %s3111_s29  ;;  %p3032_p12 = pnand %p3031_p10, %p5822_p11  ;;  %p3039_p8 = por %p3038_p7, %p3037_p5 }
 0x45f   : > { %v5162_v37 = vpop.permute.xlu0 %1866  ;;  %v5164_v51 = vpop.permute.xlu1 %1868  ;;  %p3033_p4 = pneg %p3032_p12 }
 0x460   : > { %1922 = vrot.lane.b32.xlu0 %v5781_v25, %s3111_s29 }
 0x461   : > { %1924 = vrot.lane.b32.xlu1 %v5782_v9, %s3111_s29  ;;  %p3040_p9 = pnand %p3039_p8, %p3033_p4 }
 0x464   : > { %1950 = vrot.lane.b32.xlu0 %v5783_v59, %s3111_s29 }
 0x465   : > { %1952 = vrot.lane.b32.xlu1 %v5784_v49, %s3111_s29 }
 0x468   : > { %1978 = vrot.lane.b32.xlu0 %v5785_v6, %s3111_s29 }
 0x469   : > { %1980 = vrot.lane.b32.xlu1 %v5786_v53, %s3111_s29 }
 0x46c   : > { %2006 = vrot.lane.b32.xlu0 %v5787_v62, %s3111_s29 }
 0x46d   : > { %2008 = vrot.lane.b32.xlu1 %v4827_v2, %s3111_s29  ;;  %v5172_v2 = vpop.permute.xlu1 %2057 }
 0x470   : > { %2034 = vrot.lane.b32.xlu0 %v4820_v30, %s3111_s29  ;;  %v5170_v30 = vpop.permute.xlu0 %2055 }
 0x471   : > { %2036 = vrot.lane.b32.xlu1 %v4868_v22, %s3111_s29  ;;  %v5184_v22 = vpop.permute.xlu1 %2246 }
 0x474   : > { %2083 = vrot.lane.b32.xlu0 %v4858_v16, %s3112_s30  ;;  %v5180_v16 = vpop.permute.xlu0 %2244 }
 0x475   : > { %2085 = vrot.lane.b32.xlu1 %v4882_v27, %s3112_s30  ;;  %v1328_v27 = vpop.permute.xlu1 %1327 }
 0x478   : > { %2111 = vrot.lane.b32.xlu0 %v4875_v61, %s3112_s30  ;;  %v1330_v61 = vpop.permute.xlu0 %1329 }
 0x479   : > { %2113 = vrot.lane.b32.xlu1 %v4896_v56, %s3112_s30  ;;  %v1358_v56 = vpop.permute.xlu1 %1357 }
 0x47c   : > { %2139 = vrot.lane.b32.xlu0 %v4889_v52, %s3112_s30  ;;  %v1356_v52 = vpop.permute.xlu0 %1355 }
 0x47d   : > { %2141 = vrot.lane.b32.xlu1 %v4915_v39, %s3112_s30  ;;  %v1384_v39 = vpop.permute.xlu1 %1383 }
 0x480   : > { %2167 = vrot.lane.b32.xlu0 %v4908_v12, %s3112_s30  ;;  %v1386_v12 = vpop.permute.xlu0 %1385 }
 0x481   : > { %2169 = vrot.lane.b32.xlu1 %v4929_v42, %s3112_s30  ;;  %v1412_v42 = vpop.permute.xlu1 %1411 }
 0x484   : > { %2195 = vrot.lane.b32.xlu0 %v4922_v33, %s3112_s30  ;;  %v1414_v33 = vpop.permute.xlu0 %1413 }
 0x485   : > { %2197 = vrot.lane.b32.xlu1 %v4943_v13, %s3112_s30  ;;  %v1442_v13 = vpop.permute.xlu1 %1441 }
 0x488   : > { %2223 = vrot.lane.b32.xlu0 %v4936_v40, %s3112_s30  ;;  %v1440_v40 = vpop.permute.xlu0 %1439 }
 0x489   : > { %2225 = vrot.lane.b32.xlu1 %v4957_v58, %s3112_s30  ;;  %v1470_v58 = vpop.permute.xlu1 %1469 }
 0x48c   : > { %2272 = vrot.lane.b32.xlu0 %v4950_v43, %s3113_s5  ;;  %v1468_v43 = vpop.permute.xlu0 %1467 }
 0x48d   : > { %2274 = vrot.lane.b32.xlu1 %v4971_v38, %s3113_s5  ;;  %v1519_v38 = vpop.permute.xlu1 %1518 }
 0x490   : > { %2300 = vrot.lane.b32.xlu0 %v4964_v50, %s3113_s5  ;;  %v1517_v50 = vpop.permute.xlu0 %1516 }
 0x491   : > { %2302 = vrot.lane.b32.xlu1 %v4985_v23, %s3113_s5  ;;  %v1545_v23 = vpop.permute.xlu1 %1544 }
 0x494   : > { %2328 = vrot.lane.b32.xlu0 %v4978_v35, %s3113_s5  ;;  %v1547_v35 = vpop.permute.xlu0 %1546 }
 0x495   : > { %2330 = vrot.lane.b32.xlu1 %v5004_v34, %s3113_s5 }
 0x498   : > { %2356 = vrot.lane.b32.xlu0 %v4992_v55, %s3113_s5  ;;  %v1305_v55 = vadd.f32 %v1300_v57, %v4860_v29 }
 0x499   : > { %2358 = vrot.lane.b32.xlu1 %v5018_v7, %s3113_s5  ;;  %v1573_v7 = vpop.permute.xlu0 %1572 }
 0x49a   : > { %v1333_v34 = vadd.f32 %v1328_v27, %v1305_v55 }
 0x49c   : > { %2384 = vrot.lane.b32.xlu0 %v5011_v3, %s3113_s5  ;;  %v1575_v17 = vpop.permute.xlu1 %1574  ;;  %v1306_v3 = vadd.f32 %v5132_v28, %v5053_v20 }
 0x49d   : > { %2386 = vrot.lane.b32.xlu1 %v5032_v46, %s3113_s5  ;;  %v1361_v46 = vadd.f32 %v1356_v52, %v1333_v34 }
 0x49e   : > { %v1334_v41 = vadd.f32 %v1330_v61, %v1306_v3 }
 0x49f   : > { %v1389_v45 = vadd.f32 %v1384_v39, %v1361_v46 }
 0x4a0   : > { %2412 = vrot.lane.b32.xlu0 %v5025_v24, %s3113_s5  ;;  %v1362_v60 = vadd.f32 %v1358_v56, %v1334_v41 }
 0x4a1   : > { %2414 = vrot.lane.b32.xlu1 %v5037_v44, %s3113_s5  ;;  %v1417_v24 = vadd.f32 %v1412_v42, %v1389_v45  ;;  %s5309_s5 = scalar_lea.hbm %s5361_s4, %s2837_s14 }
 0x4a2   : > { %v1390_v44 = vadd.f32 %v1386_v12, %v1362_v60 }
 0x4a3   : > { %v1445_v0 = vadd.f32 %v1440_v40, %v1417_v24 }
 0x4a4   : > { %v1418_v29 = vadd.f32 %v1414_v33, %v1390_v44 }
 0x4a5   : > { %v1473_v15 = vadd.f32 %v1468_v43, %v1445_v0 }
 0x4a6   : > { %v1446_v47 = vadd.f32 %v1442_v13, %v1418_v29 }
 0x4a7   : > { %v1494_v20 = vadd.f32 %v5144_v31, %v1473_v15 }
 0x4a8   : > { %v1474_v1 = vadd.f32 %v1470_v58, %v1446_v47 }
 0x4a9   : > { %v1522_v19 = vadd.f32 %v1517_v50, %v1494_v20 }
 0x4aa   : > { %v1601_v18 = vpop.permute.xlu0 %1600  ;;  %v1495_v21 = vadd.f32 %v5142_v4, %v1474_v1 }
 0x4ab   : > { %v1603_v14 = vpop.permute.xlu1 %1602  ;;  %v1550_v28 = vadd.f32 %v1545_v23, %v1522_v19 }
 0x4ac   : > { %v1523_v57 = vadd.f32 %v1519_v38, %v1495_v21 }
 0x4ad   : > { %v1578_v53 = vadd.f32 %v1573_v7, %v1550_v28 }
 0x4ae   : > { %v1629_v10 = vpop.permute.xlu0 %1628  ;;  %v1551_v6 = vadd.f32 %v1547_v35, %v1523_v57 }
 0x4af   : > { %v1631_v36 = vpop.permute.xlu1 %1630  ;;  %v1606_v52 = vadd.f32 %v1601_v18, %v1578_v53 }
 0x4b0   : > { %v1579_v62 = vadd.f32 %v1575_v17, %v1551_v6 }
 0x4b1   : > { %v1634_v12 = vadd.f32 %v1629_v10, %v1606_v52 }
 0x4b2   : > { %v1657_v63 = vpop.permute.xlu0 %1656  ;;  %v1607_v56 = vadd.f32 %v1603_v14, %v1579_v62 }
 0x4b3   : > { %v1659_v54 = vpop.permute.xlu1 %1658  ;;  %v1662_v42 = vadd.f32 %v1657_v63, %v1634_v12 }
 0x4b4   : > { %v1635_v31 = vadd.f32 %v1631_v36, %v1607_v56 }
 0x4b5   : > { %v1683_v43 = vadd.f32 %v5150_v48, %v1662_v42 }
 0x4b6   : > { %v1706_v8 = vpop.permute.xlu0 %1705  ;;  %v1663_v4 = vadd.f32 %v1659_v54, %v1635_v31 }
 0x4b7   : > { %v1708_v5 = vpop.permute.xlu1 %1707  ;;  %v1711_v35 = vadd.f32 %v1706_v8, %v1683_v43 }
 0x4b8   : > { %v1684_v58 = vadd.f32 %v5152_v26, %v1663_v4 }
 0x4ba   : > { %v1734_v32 = vpop.permute.xlu0 %1733  ;;  %v1712_v23 = vadd.f32 %v1708_v5, %v1684_v58 }
 0x4bb   : > { %v1736_v11 = vpop.permute.xlu1 %1735  ;;  %v1739_v55 = vadd.f32 %v1734_v32, %v1711_v35 }
 0x4bc   : > { %v1740_v34 = vadd.f32 %v1736_v11, %v1712_v23 }
 0x4be   : > { %v1762_v25 = vpop.permute.xlu0 %1761 }
 0x4bf   : > { %v1764_v9 = vpop.permute.xlu1 %1763  ;;  %v1767_v3 = vadd.f32 %v1762_v25, %v1739_v55 }
 0x4c0   : > { %v1768_v41 = vadd.f32 %v1764_v9, %v1740_v34 }
 0x4c2   : > { %v1790_v59 = vpop.permute.xlu0 %1789 }
 0x4c3   : > { %v1792_v49 = vpop.permute.xlu1 %1791  ;;  %v1795_v46 = vadd.f32 %v1790_v59, %v1767_v3 }
 0x4c4   : > { %v1796_v18 = vadd.f32 %v1792_v49, %v1768_v41 }
 0x4c6   : > { %v1818_v61 = vpop.permute.xlu0 %1817 }
 0x4c7   : > { %v1820_v27 = vpop.permute.xlu1 %1819  ;;  %v1823_v45 = vadd.f32 %v1818_v61, %v1795_v46 }
 0x4c8   : > { %v1824_v24 = vadd.f32 %v1820_v27, %v1796_v18 }
 0x4ca   : > { %v1846_v39 = vpop.permute.xlu0 %1845 }
 0x4cb   : > { %v1848_v33 = vpop.permute.xlu1 %1847  ;;  %v1851_v10 = vadd.f32 %v1846_v39, %v1823_v45 }
 0x4cc   : > { %v1852_v48 = vadd.f32 %v1848_v33, %v1824_v24 }
 0x4cd   : > { %v1872_v44 = vadd.f32 %v5162_v37, %v1851_v10 }
 0x4ce   : > { %v1895_v40 = vpop.permute.xlu0 %1894  ;;  %v1873_v0 = vadd.f32 %v5164_v51, %v1852_v48 }
 0x4cf   : > { %v1897_v13 = vpop.permute.xlu1 %1896  ;;  %v1900_v29 = vadd.f32 %v1895_v40, %v1872_v44 }
 0x4d0   : > { %v1901_v47 = vadd.f32 %v1897_v13, %v1873_v0 }
 0x4d2   : > { %v1923_v50 = vpop.permute.xlu0 %1922 }
 0x4d3   : > { %v1925_v38 = vpop.permute.xlu1 %1924  ;;  %v1928_v5 = vadd.f32 %v1923_v50, %v1900_v29 }
 0x4d4   : > { %v1929_v1 = vadd.f32 %v1925_v38, %v1901_v47 }
 0x4d6   : > { %v1951_v7 = vpop.permute.xlu0 %1950 }
 0x4d7   : > { %v1953_v17 = vpop.permute.xlu1 %1952  ;;  %v1956_v20 = vadd.f32 %v1951_v7, %v1928_v5 }
 0x4d8   : > { %v1957_v32 = vadd.f32 %v1953_v17, %v1929_v1 }
 0x4da   : > { %v1979_v14 = vpop.permute.xlu0 %1978 }
 0x4db   : > { %v1981_v60 = vpop.permute.xlu1 %1980  ;;  %v1984_v19 = vadd.f32 %v1979_v14, %v1956_v20 }
 0x4dc   : > { %v1985_v25 = vadd.f32 %v1981_v60, %v1957_v32 }
 0x4de   : > { %v2007_v36 = vpop.permute.xlu0 %2006 }
 0x4df   : > { %v2009_v26 = vpop.permute.xlu1 %2008  ;;  %v2012_v9 = vadd.f32 %v2007_v36, %v1984_v19 }
 0x4e0   : > { %v2013_v57 = vadd.f32 %v2009_v26, %v1985_v25  ;;  %v5789_v25 = vld [vmem:[#allocation9_spill] sm:$0xff] }
 0x4e2   : > { %v2035_v63 = vpop.permute.xlu0 %2034 }
 0x4e3   : > { %v2037_v54 = vpop.permute.xlu1 %2036  ;;  %v2040_v59 = vadd.f32 %v2035_v63, %v2012_v9  ;;  %v2455_v9 = vsub.s32 1, %v5789_v25 }
 0x4e4   : > { %v2041_v51 = vadd.f32 %v2037_v54, %v2013_v57 }
 0x4e5   : > { %v2061_v53 = vadd.f32 %v5170_v30, %v2040_v59  ;;  %v2477_v59 = vsub.s32 3, %v5789_v25 }
 0x4e6   : > { %v2084_v15 = vpop.permute.xlu0 %2083  ;;  %v2062_v62 = vadd.f32 %v5172_v2, %v2041_v51 }
 0x4e7   : > { %v2086_v8 = vpop.permute.xlu1 %2085  ;;  %v2089_v52 = vadd.f32 %v2084_v15, %v2061_v53  ;;  %v2488_v53 = vsub.s32 4, %v5789_v25 }
 0x4e8   : > { %v2090_v56 = vadd.f32 %v2086_v8, %v2062_v62 }
 0x4ea   : > { %v2112_v11 = vpop.permute.xlu0 %2111 }
 0x4eb   : > { %v2114_v21 = vpop.permute.xlu1 %2113  ;;  %v2117_v12 = vadd.f32 %v2112_v11, %v2089_v52  ;;  %v2510_v52 = vsub.s32 6, %v5789_v25 }
 0x4ec   : > { %v2118_v31 = vadd.f32 %v2114_v21, %v2090_v56  ;;  %v5788_v21 = vld [vmem:[#allocation10_spill] sm:$0xff] }
 0x4ee   : > { %v2140_v28 = vpop.permute.xlu0 %2139 }
 0x4ef   : > { %v2142_v37 = vpop.permute.xlu1 %2141  ;;  %v2145_v42 = vadd.f32 %v2140_v28, %v2117_v12  ;;  %v2466_v28 = vsub.s32 2, %v5789_v25  ;;  %v2521_v12 = vsub.s32 7, %v5789_v25 }
 0x4f0   : > { %v2146_v4 = vadd.f32 %v2142_v37, %v2118_v31 }
 0x4f2   : > { %v2168_v49 = vpop.permute.xlu0 %2167 }
 0x4f3   : > { %v2170_v6 = vpop.permute.xlu1 %2169  ;;  %v2173_v40 = vadd.f32 %v2168_v49, %v2145_v42 }
 0x4f4   : > { %v2174_v13 = vadd.f32 %v2170_v6, %v2146_v4 }
 0x4f6   : > { %v2196_v61 = vpop.permute.xlu0 %2195 }
 0x4f7   : > { %v2198_v27 = vpop.permute.xlu1 %2197  ;;  %v2201_v50 = vadd.f32 %v2196_v61, %v2173_v40  ;;  %v2499_v61 = vsub.s32 5, %v5789_v25  ;;  %v5802_v25 = vld [vmem:[#allocation23_spill] sm:$0xff] }
 0x4f8   : > { %v2202_v38 = vadd.f32 %v2198_v27, %v2174_v13 }
 0x4fa   : > { %v2224_v39 = vpop.permute.xlu0 %2223 }
 0x4fb   : > { %v2226_v33 = vpop.permute.xlu1 %2225  ;;  %v2229_v35 = vadd.f32 %v2224_v39, %v2201_v50 }
 0x4fc   : > { %v2230_v30 = vadd.f32 %v2226_v33, %v2202_v38 }
 0x4fd   : > { %v2250_v55 = vadd.f32 %v5180_v16, %v2229_v35 }
 0x4fe   : > { %v2273_v43 = vpop.permute.xlu0 %2272  ;;  %v2251_v34 = vadd.f32 %v5184_v22, %v2230_v30  ;;  %v5790_v30 = vld [vmem:[#allocation14_spill] sm:$0xff] }
 0x4ff   : > { %v2275_v58 = vpop.permute.xlu1 %2274  ;;  %v2278_v3 = vadd.f32 %v2273_v43, %v2250_v55 }
 0x500   : > { %v2279_v41 = vadd.f32 %v2275_v58, %v2251_v34 }
 0x502   : > { %v2301_v23 = vpop.permute.xlu0 %2300 }
 0x503   : > { %v2303_v2 = vpop.permute.xlu1 %2302  ;;  %v2306_v14 = vadd.f32 %v2301_v23, %v2278_v3 }
 0x504   : > { %v2307_v60 = vadd.f32 %v2303_v2, %v2279_v41  ;;  %v5791_v2 = vld [vmem:[#allocation12_spill] sm:$0xff]  ;;  %v5793_v41 = vld [vmem:[#allocation11_spill] sm:$0xff] }
 0x506   : > { %v2329_v7 = vpop.permute.xlu0 %2328 }
 0x507   : > { %v2331_v17 = vpop.permute.xlu1 %2330  ;;  %v2334_v45 = vadd.f32 %v2329_v7, %v2306_v14 }
 0x508   : > { %v2335_v24 = vadd.f32 %v2331_v17, %v2307_v60  ;;  %v5792_v17 = vld [vmem:[#allocation13_spill] sm:$0xff]  ;;  %v5794_v60 = vld [vmem:[#allocation15_spill] sm:$0xff] }
 0x50a   : > { %v2357_v46 = vpop.permute.xlu0 %2356 }
 0x50b   : > { %v2359_v18 = vpop.permute.xlu1 %2358  ;;  %v2362_v36 = vadd.f32 %v2357_v46, %v2334_v45 }
 0x50c   : > { %v2363_v26 = vadd.f32 %v2359_v18, %v2335_v24  ;;  %v5795_v24 = vld [vmem:[#allocation16_spill] sm:$0xff] }
 0x50e   : > { %v2385_v10 = vpop.permute.xlu0 %2384 }
 0x50f   : > { %v2387_v48 = vpop.permute.xlu1 %2386  ;;  %v2390_v44 = vadd.f32 %v2385_v10, %v2362_v36 }
 0x510   : > { %v2391_v0 = vadd.f32 %v2387_v48, %v2363_v26  ;;  %v5796_v26 = vld [vmem:[#allocation17_spill] sm:$0xff] }
 0x512   : > { %v2413_v63 = vpop.permute.xlu0 %2412 }
 0x513   : > { %v2415_v16 = vpop.permute.xlu1 %2414  ;;  %v2418_v54 = vadd.f32 %v2413_v63, %v2390_v44 }
 0x514   : > { %v2419_v22 = vadd.f32 %v2415_v16, %v2391_v0  ;;  %v5797_v0 = vld [vmem:[#allocation18_spill] sm:$0xff] }
 0x515   : > { %2422 = vrot.lane.b32.xlu0 %v2418_v54, %s3114_s26 }
 0x516   : > { %2424 = vrot.lane.b32.xlu1 %v2419_v22, %s3114_s26 }
 0x587   : > { %v2423_v29 = vpop.permute.xlu0 %2422 }
 0x588   : > { %v2428_v47 = vadd.f32 %v2423_v29, %v2418_v54  ;;  %v2425_v1 = vpop.permute.xlu1 %2424 }
 0x589   : > { %v2429_v20 = vadd.f32 %v2425_v1, %v2419_v22  ;;  %v5798_v22 = vld [vmem:[#allocation19_spill] sm:$0xff]  ;;  %v5800_v1 = vld [vmem:[#allocation21_spill] sm:$0xff] }
 0x58a   : > { %v2829_v15 = vmul.f32 -1.442695, %v2428_v47  ;;  %v5799_v47 = vld [vmem:[#allocation20_spill] sm:$0xff] }
 0x58b   : > { %v2830_v32 = vmul.f32 -1.442695, %v2429_v20 }
 0x58c   : > { %2994 = vpow2.f32 %v2829_v15 }
 0x599   : > { %v2995_v8 = vpop.eup %2994 }
 0x59a   : > { %v2436_v5 = vadd.f32 1.0, %v2995_v8 }
 0x59c   : > { %2996 = vrcp.f32 %v2436_v5 }
 0x59d   : > { %2998 = vpow2.f32 %v2830_v32  ;;  %v5801_v32 = vld [vmem:[#allocation22_spill] sm:$0xff] }
 0x5a9   : > { %v2997_v11 = vpop.eup %2996 }
 0x5aa   : > { %v2445_v19 = vrot.slane %v2997_v11, %v5788_v21  ;;  %v2456_v57 = vrot.slane %v2997_v11, %v2455_v9  ;;  %v2467_v37 = vrot.slane %v2997_v11, %v2466_v28  ;;  %v2999_v51 = vpop.eup %2998  ;;  %v2478_v6 = vrot.slane %v2997_v11, %v2477_v59 }
 0x5ab   : > { %v2437_v49 = vadd.f32 1.0, %v2999_v51  ;;  %v2489_v62 = vrot.slane %v2997_v11, %v2488_v53  ;;  %v2500_v27 = vrot.slane %v2997_v11, %v2499_v61  ;;  %v2511_v56 = vrot.slane %v2997_v11, %v2510_v52  ;;  %v5804_v51 = vld [vmem:[#allocation25_spill] sm:$0xff] }
 0x5ac   : > { %2451 = vbcast.lane.b32.xlu1 %v2445_v19, 264  ;;  %2447 = vbcast.lane.b32.xlu0 %v2445_v19, 256  ;;  %v2522_v31 = vrot.slane %v2997_v11, %v2521_v12 }
 0x5ad   : > { %3000 = vrcp.f32 %v2437_v49 }
 0x5b0   : > { %2462 = vbcast.lane.b32.xlu1 %v2456_v57, 264  ;;  %2458 = vbcast.lane.b32.xlu0 %v2456_v57, 256  ;;  %v5803_v57 = vld [vmem:[#allocation24_spill] sm:$0xff] }
 0x5b4   : > { %2473 = vbcast.lane.b32.xlu1 %v2467_v37, 264  ;;  %2469 = vbcast.lane.b32.xlu0 %v2467_v37, 256 }
 0x5b8   : > { %2484 = vbcast.lane.b32.xlu1 %v2478_v6, 264  ;;  %2480 = vbcast.lane.b32.xlu0 %v2478_v6, 256  ;;  %v5805_v6 = vld [vmem:[#allocation26_spill] sm:$0xff] }
 0x5ba   : > { %v3001_v39 = vpop.eup %3000 }
 0x5bb   : > { %v2533_v33 = vrot.slane %v3001_v39, %v5788_v21  ;;  %v2544_v42 = vrot.slane %v3001_v39, %v2455_v9  ;;  %v2555_v4 = vrot.slane %v3001_v39, %v2466_v28  ;;  %v2566_v40 = vrot.slane %v3001_v39, %v2477_v59 }
 0x5bc   : > { %2495 = vbcast.lane.b32.xlu1 %v2489_v62, 264  ;;  %2491 = vbcast.lane.b32.xlu0 %v2489_v62, 256  ;;  %v2577_v13 = vrot.slane %v3001_v39, %v2488_v53  ;;  %v2588_v43 = vrot.slane %v3001_v39, %v2499_v61  ;;  %v2599_v58 = vrot.slane %v3001_v39, %v2510_v52 }
 0x5bd   : > { %v2610_v50 = vrot.slane %v3001_v39, %v2521_v12 }
 0x5c0   : > { %2506 = vbcast.lane.b32.xlu1 %v2500_v27, 264  ;;  %2502 = vbcast.lane.b32.xlu0 %v2500_v27, 256  ;;  %v5806_v27 = vld [vmem:[#allocation27_spill] sm:$0xff] }
 0x5c4   : > { %2517 = vbcast.lane.b32.xlu1 %v2511_v56, 264  ;;  %2513 = vbcast.lane.b32.xlu0 %v2511_v56, 256  ;;  %v5807_v56 = vld [vmem:[#allocation28_spill] sm:$0xff] }
 0x5c8   : > { %2528 = vbcast.lane.b32.xlu1 %v2522_v31, 264  ;;  %2524 = vbcast.lane.b32.xlu0 %v2522_v31, 256 }
 0x5cc   : > { %2539 = vbcast.lane.b32.xlu1 %v2533_v33, 264  ;;  %2535 = vbcast.lane.b32.xlu0 %v2533_v33, 256  ;;  %v5808_v33 = vld [vmem:[#allocation29_spill] sm:$0xff] }
 0x5d0   : > { %2550 = vbcast.lane.b32.xlu1 %v2544_v42, 264  ;;  %2546 = vbcast.lane.b32.xlu0 %v2544_v42, 256 }
 0x5d4   : > { %2561 = vbcast.lane.b32.xlu1 %v2555_v4, 264  ;;  %2557 = vbcast.lane.b32.xlu0 %v2555_v4, 256  ;;  %v5809_v4 = vld [vmem:[#allocation30_spill] sm:$0xff] }
 0x5d8   : > { %2572 = vbcast.lane.b32.xlu1 %v2566_v40, 264  ;;  %2568 = vbcast.lane.b32.xlu0 %v2566_v40, 256 }
 0x5dc   : > { %2583 = vbcast.lane.b32.xlu1 %v2577_v13, 264  ;;  %2579 = vbcast.lane.b32.xlu0 %v2577_v13, 256 }
 0x5e0   : > { %2594 = vbcast.lane.b32.xlu1 %v2588_v43, 264  ;;  %2590 = vbcast.lane.b32.xlu0 %v2588_v43, 256 }
 0x5e4   : > { %2605 = vbcast.lane.b32.xlu1 %v2599_v58, 264  ;;  %2601 = vbcast.lane.b32.xlu0 %v2599_v58, 256  ;;  %v5810_v58 = vld [vmem:[#allocation31_spill] sm:$0xff] }
 0x5e8   : > { %2616 = vbcast.lane.b32.xlu1 %v2610_v50, 264  ;;  %2612 = vbcast.lane.b32.xlu0 %v2610_v50, 256 }
 0x61e   : > { %v2452_v38 = vpop.permute.xlu1 %2451  ;;  %v2448_v35 = vpop.permute.xlu0 %2447 }
 0x61f   : > { %v2619_v23 = vmul.f32 %v2452_v38, %v5790_v30  ;;  %v2618_v55 = vmul.f32 %v2448_v35, %v5791_v2  ;;  %v5811_v38 = vld [vmem:[#allocation32_spill] sm:$0xff]  ;;  %v5812_v2 = vld [vmem:[#allocation33_spill] sm:$0xff] }
 0x621   : > { %2651 = vst [vmem:[%s5244_s8 + $0x8] sm:$0xff] %v2619_v23  ;;  %2650 = vst [vmem:[%s5244_s8] sm:$0xff] %v2618_v55 }
 0x622   : > { %v2463_v34 = vpop.permute.xlu1 %2462  ;;  %v2459_v7 = vpop.permute.xlu0 %2458 }
 0x623   : > { %v2621_v3 = vmul.f32 %v2463_v34, %v5792_v17  ;;  %v2620_v46 = vmul.f32 %v2459_v7, %v5793_v41  ;;  %v5813_v34 = vld [vmem:[#allocation34_spill] sm:$0xff]  ;;  %v5814_v41 = vld [vmem:[#allocation35_spill] sm:$0xff] }
 0x625   : > { %2653 = vst [vmem:[%s5244_s8 + $0x18] sm:$0xff] %v2621_v3  ;;  %2652 = vst [vmem:[%s5244_s8 + $0x10] sm:$0xff] %v2620_v46 }
 0x626   : > { %v2474_v18 = vpop.permute.xlu1 %2473  ;;  %v2470_v14 = vpop.permute.xlu0 %2469 }
 0x627   : > { %v2623_v45 = vmul.f32 %v2474_v18, %v5794_v60  ;;  %v2622_v10 = vmul.f32 %v2470_v14, %v5795_v24  ;;  %v5815_v18 = vld [vmem:[#allocation36_spill] sm:$0xff]  ;;  %v5816_v24 = vld [vmem:[#allocation38_spill] sm:$0xff] }
 0x629   : > { %2655 = vst [vmem:[%s5244_s8 + $0x28] sm:$0xff] %v2623_v45  ;;  %2654 = vst [vmem:[%s5244_s8 + $0x20] sm:$0xff] %v2622_v10 }
 0x62a   : > { %v2485_v48 = vpop.permute.xlu1 %2484  ;;  %v2481_v36 = vpop.permute.xlu0 %2480 }
 0x62b   : > { %v2625_v44 = vmul.f32 %v2485_v48, %v5796_v26  ;;  %v2624_v63 = vmul.f32 %v2481_v36, %v5797_v0  ;;  %v5817_v48 = vld [vmem:[#allocation39_spill] sm:$0xff]  ;;  %v5818_v0 = vld [vmem:[#allocation40_spill] sm:$0xff] }
 0x62d   : > { %2657 = vst [vmem:[%s5244_s8 + $0x38] sm:$0xff] %v2625_v44  ;;  %2656 = vst [vmem:[%s5244_s8 + $0x30] sm:$0xff] %v2624_v63 }
 0x62e   : > { %v2496_v16 = vpop.permute.xlu1 %2495  ;;  %v2492_v54 = vpop.permute.xlu0 %2491 }
 0x62f   : > { %v2627_v29 = vmul.f32 %v2496_v16, %v5798_v22  ;;  %v2626_v15 = vmul.f32 %v2492_v54, %v5799_v47  ;;  %v5819_v16 = vld [vmem:[#allocation41_spill] sm:$0xff]  ;;  %v5820_v47 = vld [vmem:[#allocation43_spill] sm:$0xff] }
 0x631   : > { %2659 = vst [vmem:[%s5244_s8 + $0x48] sm:$0xff] %v2627_v29  ;;  %2658 = vst [vmem:[%s5244_s8 + $0x40] sm:$0xff] %v2626_v15 }
 0x632   : > { %v2507_v8 = vpop.permute.xlu1 %2506  ;;  %v2503_v5 = vpop.permute.xlu0 %2502 }
 0x633   : > { %v2629_v20 = vmul.f32 %v2507_v8, %v5800_v1  ;;  %v2628_v11 = vmul.f32 %v2503_v5, %v5801_v32  ;;  %v5821_v8 = vld [vmem:[#allocation44_spill] sm:$0xff] }
 0x635   : > { %2661 = vst [vmem:[%s5244_s8 + $0x58] sm:$0xff] %v2629_v20  ;;  %2660 = vst [vmem:[%s5244_s8 + $0x50] sm:$0xff] %v2628_v11 }
 0x636   : > { %v2518_v21 = vpop.permute.xlu1 %2517  ;;  %v2514_v19 = vpop.permute.xlu0 %2513 }
 0x637   : > { %v2631_v9 = vmul.f32 %v2518_v21, %v5802_v25  ;;  %v2630_v28 = vmul.f32 %v2514_v19, %v5803_v57 }
 0x639   : > { %2663 = vst [vmem:[%s5244_s8 + $0x68] sm:$0xff] %v2631_v9  ;;  %2662 = vst [vmem:[%s5244_s8 + $0x60] sm:$0xff] %v2630_v28 }
 0x63a   : > { %v2529_v37 = vpop.permute.xlu1 %2528  ;;  %v2525_v59 = vpop.permute.xlu0 %2524 }
 0x63b   : > { %v2633_v49 = vmul.f32 %v2529_v37, %v5804_v51  ;;  %v2632_v53 = vmul.f32 %v2525_v59, %v5805_v6 }
 0x63d   : > { %2665 = vst [vmem:[%s5244_s8 + $0x78] sm:$0xff] %v2633_v49  ;;  %2664 = vst [vmem:[%s5244_s8 + $0x70] sm:$0xff] %v2632_v53 }
 0x63e   : > { %v2540_v62 = vpop.permute.xlu1 %2539  ;;  %v2536_v61 = vpop.permute.xlu0 %2535 }
 0x63f   : > { %v2635_v52 = vmul.f32 %v2540_v62, %v5806_v27  ;;  %v2634_v12 = vmul.f32 %v2536_v61, %v5807_v56 }
 0x641   : > { %2667 = vst [vmem:[%s5244_s8 + $0x88] sm:$0xff] %v2635_v52  ;;  %2666 = vst [vmem:[%s5244_s8 + $0x80] sm:$0xff] %v2634_v12 }
 0x642   : > { %v2551_v31 = vpop.permute.xlu1 %2550  ;;  %v2547_v39 = vpop.permute.xlu0 %2546 }
 0x643   : > { %v2637_v42 = vmul.f32 %v2551_v31, %v5808_v33  ;;  %v2636_v40 = vmul.f32 %v2547_v39, %v5809_v4 }
 0x645   : > { %2669 = vst [vmem:[%s5244_s8 + $0x98] sm:$0xff] %v2637_v42  ;;  %2668 = vst [vmem:[%s5244_s8 + $0x90] sm:$0xff] %v2636_v40 }
 0x646   : > { %v2562_v13 = vpop.permute.xlu1 %2561  ;;  %v2558_v43 = vpop.permute.xlu0 %2557 }
 0x647   : > { %v2639_v50 = vmul.f32 %v2562_v13, %v5810_v58  ;;  %v2638_v35 = vmul.f32 %v2558_v43, %v5811_v38 }
 0x649   : > { %2671 = vst [vmem:[%s5244_s8 + $0xa8] sm:$0xff] %v2639_v50  ;;  %2670 = vst [vmem:[%s5244_s8 + $0xa0] sm:$0xff] %v2638_v35 }
 0x64a   : > { %v2573_v30 = vpop.permute.xlu1 %2572  ;;  %v2569_v23 = vpop.permute.xlu0 %2568 }
 0x64b   : > { %v2641_v55 = vmul.f32 %v2573_v30, %v5812_v2  ;;  %v2640_v7 = vmul.f32 %v2569_v23, %v5813_v34 }
 0x64d   : > { %2673 = vst [vmem:[%s5244_s8 + $0xb8] sm:$0xff] %v2641_v55  ;;  %2672 = vst [vmem:[%s5244_s8 + $0xb0] sm:$0xff] %v2640_v7 }
 0x64e   : > { %v2584_v17 = vpop.permute.xlu1 %2583  ;;  %v2580_v3 = vpop.permute.xlu0 %2579 }
 0x64f   : > { %v2643_v46 = vmul.f32 %v2584_v17, %v5814_v41  ;;  %v2642_v14 = vmul.f32 %v2580_v3, %v5815_v18 }
 0x651   : > { %2675 = vst [vmem:[%s5244_s8 + $0xc8] sm:$0xff] %v2643_v46  ;;  %2674 = vst [vmem:[%s5244_s8 + $0xc0] sm:$0xff] %v2642_v14 }
 0x652   : > { %v2595_v60 = vpop.permute.xlu1 %2594  ;;  %v2591_v45 = vpop.permute.xlu0 %2590 }
 0x653   : > { %v2645_v10 = vmul.f32 %v2595_v60, %v5816_v24  ;;  %v2644_v36 = vmul.f32 %v2591_v45, %v5817_v48 }
 0x655   : > { %2677 = vst [vmem:[%s5244_s8 + $0xd8] sm:$0xff] %v2645_v10  ;;  %2676 = vst [vmem:[%s5244_s8 + $0xd0] sm:$0xff] %v2644_v36 }
 0x656   : > { %v2606_v26 = vpop.permute.xlu1 %2605  ;;  %v2602_v44 = vpop.permute.xlu0 %2601 }
 0x657   : > { %v2647_v63 = vmul.f32 %v2606_v26, %v5818_v0  ;;  %v2646_v54 = vmul.f32 %v2602_v44, %v5819_v16 }
 0x659   : > { %2679 = vst [vmem:[%s5244_s8 + $0xe8] sm:$0xff] %v2647_v63  ;;  %2678 = vst [vmem:[%s5244_s8 + $0xe0] sm:$0xff] %v2646_v54 }
 0x65a   : > { %v2617_v22 = vpop.permute.xlu1 %2616  ;;  %v2613_v29 = vpop.permute.xlu0 %2612 }
 0x65b   : > { %v2649_v15 = vmul.f32 %v2617_v22, %v5820_v47  ;;  %v2648_v5 = vmul.f32 %v2613_v29, %v5821_v8 }
 0x65d   : > { %2681 = vst [vmem:[%s5244_s8 + $0xf8] sm:$0xff] %v2649_v15  ;;  %2680 = vst [vmem:[%s5244_s8 + $0xf0] sm:$0xff] %v2648_v5 }
 0x65e   : > { %3043 = shalt.err (!%p3040_p9)
}
 0x65f   : > { %s3044_s6 = scalar_lea.hbm %s5309_s5, 4096  ;;  %s3048_s12 = scalar_lea.hbm %s5361_s4, 16384 }
 0x660   : > { %p3045_p13 = scmp.ne.s32.totalorder %s5309_s5, %s3044_s6  ;;  %p3049_p2 = scmp.lt.s32.totalorder %s5309_s5, %s5361_s4 }
 0x661   : > { %p3050_p3 = scmp.lt.s32.totalorder %s3048_s12, %s3044_s6 }
 0x662   : > { %p3046_p1 = pnand %p3045_p13, %p5822_p11 }
 0x663   : > { %p3051_p6 = por %p3050_p3, %p3049_p2 }
 0x664   : > { %p3047_p0 = pneg %p3046_p1 }
 0x666   : > { %p3052_p10 = pnand %p3051_p6, %p3047_p0 }
 0x668   : > { %3055 = shalt.err (!%p3052_p10)
}
 0x669   : > { %s3116_s8 = smov 128   ;;  %s3117_s14 = smov 8  }
 0x66a   : > { %2926 = dma.vmem_to_hbm [thread:$0]  (%p5822_p11), %s5311_s22, 4096, %s5309_s5, %s2683_s19, %s3116_s8, %s3116_s8, %s3117_s14  }
 0x66b PF: > { %p2937_p12 = scmp.ge.s32.totalorder %s3094_s18, 2  ;;  %s2711_s29 = sand.u32 1, %s3082_s15  }
 0x66c   : > { %p5823_p4 = scmp.ne.s32.totalorder %s5475_s28, 0  ;;  %s2712_s30 = scalar_lea.sflag [#allocation5], %s2711_s29 }
 0x66e   : > { %p2933_p5 = pnand %p2937_p12, %p5823_p4 }
 0x670   : > { %p2934_p7 = pneg %p2933_p5 }
 0x672   : > { %3077 = dma.done.wait (%p2934_p7), %s2712_s30, 4096  }
 0x673   : > { %3079 = vsyncadd (%p2934_p7), %s2712_s30, 4294963200  ;;  %p17_p8 = scmp.ge.s32.totalorder %s3168_s21, 6   ;;  %s5824_s15 = smov %s3086_s16 }
 0x674   : > { %s5825_s16 = smov %s3090_s17  ;;  %s5826_s17 = smov %s3180_s24 }
 0x675   : > { %s5827_s18 = smov %s3168_s21  ;;  %19 = sbr.rel (!%p17_p8) target bundleno = 5 (0x5), region = 81 }
 0x67a   :  { %2717 = vsyncpa [#allocation4], 1 }
 0x67b   :  { %2719 = vsyncpa [#allocation4 + $0x1], 1 }
 0x67c   :  { %2720 = vsyncpa [#allocation5], 1 }
 0x67d   :  { %2722 = vsyncpa [#allocation5 + $0x1], 1 }

</bundles_post_ra>
